<compile_context>
chip_gen: v6e
topology: v6e:2x2x1
jax: 0.10.0
libtpu: 0.0.40
codegen_flags: <defaults>
</compile_context>

<pallas_src>
import jax
import jax.numpy as jnp
from jax.experimental import pallas as pl
from jax.experimental.pallas import tpu as pltpu


def _round_up(a, b):
    return ((a + b - 1) // b) * b


def _build_kernel(Wp, We, M1pad, M3pad):
    """Kernel computing the fused stride-1 (16ch, 5x5) conv and conv3 (stride 2)."""

    def kernel(xf_ref, xeo_ref, w56_ref, w3_ref, b56_ref, b3_ref, o1_ref, o3_ref):
        # ---- fused stride-1 conv (conv2 + zero-embedded conv1), 25 taps ----
        acc1 = jnp.zeros(o1_ref.shape, jnp.float32)          # (16, M1pad)
        for kh in range(5):
            for kw in range(5):
                off = (kh + 1) * Wp + (kw + 1)                # pad-3 image, pad-2 conv
                xs = xf_ref[:, off:off + M1pad]               # (8, M1pad) bf16 slice
                wt = w56_ref[kh * 5 + kw]                     # (16, 8) bf16
                acc1 = acc1 + jnp.dot(wt, xs, preferred_element_type=jnp.float32)
        o1_ref[...] = acc1 + b56_ref[...]

        # ---- conv3: 7x7, stride 2, via even/odd column-phase pack, 28 taps ----
        acc3 = jnp.zeros(o3_ref.shape, jnp.float32)           # (8, M3pad)
        for kh in range(7):
            for t in range(4):
                off = kh * We + t
                xs = xeo_ref[:, off:off + M3pad]               # (8, M3pad) bf16 slice
                wt = w3_ref[kh * 4 + t]                        # (8, 8) bf16
                acc3 = acc3 + jnp.dot(wt, xs, preferred_element_type=jnp.float32)
        o3_ref[...] = acc3 + b3_ref[...]

    return kernel


def fused_convs_pallas(x, w56, b56, w3, b3):
    """Computes:
         v56 = conv(x, w56, b56), 5x5, stride 1, pad 2   -> (N, 16, H, W)
         v4  = conv(x, w3,  b3 ), 7x7, stride 2, pad 3   -> (N, 8, H', W')
       with a single merged Pallas call (NCHW in/out, OIHW weights)."""
    N, Cin, H, W = x.shape
    assert Cin == 3, "module is defined for 3 input channels"
    PAD = 3
    Hp = H + 2 * PAD
    Wp = W + 2 * PAD
    Wp = Wp + (Wp % 2)                       # even width for the stride-2 phase split
    We = Wp // 2
    Ho, Wo = H, W                            # stride-1, pad 2, k=5 keeps spatial dims
    Ho3 = (H + 2 * PAD - 7) // 2 + 1
    Wo3 = (W + 2 * PAD - 7) // 2 + 1

    # Output pixels are indexed flat by p = i*Wp + j (columns j >= Wo are garbage
    # that is sliced off afterwards); conv3 uses the same indexing (rows i map to
    # input rows 2i automatically through the phase split).
    M1, M3 = Ho * Wp, Ho3 * Wp
    M1pad, M3pad = _round_up(M1, 128), _round_up(M3, 128)
    L1 = _round_up(max(Hp * Wp, M1pad + 5 * Wp + 5), 128)
    L3 = _round_up(max(Hp * We, M3pad + 6 * We + 3), 128)

    cdt = jnp.bfloat16
    xb = x.astype(cdt)
    xp = jnp.pad(xb, ((0, 0), (0, 0), (PAD, PAD), (PAD, Wp - W - PAD)))

    # stride-1 flat image, channels padded 3 -> 8 (zero channels pair with zero weights)
    xf = xp.reshape(N, Cin, Hp * Wp)
    xf = jnp.pad(xf, ((0, 0), (0, 8 - Cin), (0, L1 - Hp * Wp)))

    # stride-2: even/odd column phases packed into one 8-channel slab
    xe = xp[:, :, :, 0::2].reshape(N, Cin, Hp * We)
    xo = xp[:, :, :, 1::2].reshape(N, Cin, Hp * We)
    xeo = jnp.concatenate([xe, xo, jnp.zeros((N, 2, Hp * We), cdt)], axis=1)
    xeo = jnp.pad(xeo, ((0, 0), (0, 0), (0, L3 - Hp * We)))

    # per-tap weights: (tap, Cout, 8)
    w56t = jnp.transpose(w56, (2, 3, 0, 1)).reshape(25, 16, Cin)        # (25,16,3)
    w56t = jnp.pad(w56t, ((0, 0), (0, 0), (0, 8 - Cin))).astype(cdt)    # (25,16,8)

    w3r = jnp.transpose(w3, (2, 3, 0, 1))                               # (7,7,8,3)
    w3r = jnp.pad(w3r, ((0, 0), (0, 1), (0, 0), (0, 0)))                # (7,8,8,3)
    w3r = w3r.reshape(7, 4, 2, 8, Cin)                                  # kw = 2t+parity
    w3t = jnp.concatenate(
        [w3r[:, :, 0], w3r[:, :, 1], jnp.zeros((7, 4, 8, 8 - 2 * Cin), w3.dtype)],
        axis=-1)                                                        # (7,4,8,8)
    w3t = w3t.reshape(28, 8, 8).astype(cdt)

    b56c = b56.reshape(16, 1).astype(jnp.float32)
    b3c = b3.reshape(8, 1).astype(jnp.float32)

    flops = 2 * N * (16 * 8 * 25 * M1pad + 8 * 8 * 28 * M3pad)
    bytes_accessed = (
        xf.size * 2 + xeo.size * 2 + w56t.size * 2 + w3t.size * 2
        + b56c.size * 4 + b3c.size * 4
        + N * 16 * M1pad * 4 + N * 8 * M3pad * 4)

    # TODO(synk): the whole (padded, flattened) image is one VMEM tile per grid
    # step (~1 MiB at 64x64); very large images would need an M-tiled variant
    # with haloed slices (pl.ds with a program_id-dependent base offset).
    o1, o3 = pl.pallas_call(
        _build_kernel(Wp, We, M1pad, M3pad),
        out_shape=(jax.ShapeDtypeStruct((N, 16, M1pad), jnp.float32),
                   jax.ShapeDtypeStruct((N, 8, M3pad), jnp.float32)),
        grid=(N,),
        in_specs=[
            pl.BlockSpec((None, 8, L1), lambda n: (n, 0, 0)),    # flat image
            pl.BlockSpec((None, 8, L3), lambda n: (n, 0, 0)),    # even/odd phase pack
            pl.BlockSpec((25, 16, 8), lambda n: (0, 0, 0)),      # resident weights
            pl.BlockSpec((28, 8, 8), lambda n: (0, 0, 0)),
            pl.BlockSpec((16, 1), lambda n: (0, 0)),             # biases (f32)
            pl.BlockSpec((8, 1), lambda n: (0, 0)),
        ],
        out_specs=(
            pl.BlockSpec((None, 16, M1pad), lambda n: (n, 0, 0)),
            pl.BlockSpec((None, 8, M3pad), lambda n: (n, 0, 0)),
        ),
        compiler_params=pltpu.CompilerParams(
            dimension_semantics=("parallel",)),
        cost_estimate=pl.CostEstimate(
            flops=flops, transcendentals=0, bytes_accessed=bytes_accessed),
    )(xf, xeo, w56t, w3t, b56c, b3c)

    # (N, Cout, M) is already channel-major: slice off the garbage columns only.
    v56 = o1[:, :, :M1].reshape(N, 16, Ho, Wp)[:, :, :, :Wo]
    v4 = o3[:, :, :M3].reshape(N, 8, Ho3, Wp)[:, :, :, :Wo3]
    return v4, v56


def init_params(key):
    """Deterministic torch-style (Kaiming-uniform) conv parameter init."""
    def conv_init(k, cout, cin, ksz):
        k1, k2 = jax.random.split(k)
        fan_in = cin * ksz * ksz
        bound = 1.0 / (fan_in ** 0.5)
        w = jax.random.uniform(k1, (cout, cin, ksz, ksz), jnp.float32, -bound, bound)
        b = jax.random.uniform(k2, (cout,), jnp.float32, -bound, bound)
        return w, b

    k1, k2, k3 = jax.random.split(key, 3)
    w1, b1 = conv_init(k1, 8, 3, 3)   # conv1: 3x3, stride 1, pad 1
    w2, b2 = conv_init(k2, 8, 3, 5)   # conv2: 5x5, stride 1, pad 2
    w3, b3 = conv_init(k3, 8, 3, 7)   # conv3: 7x7, stride 2, pad 3
    return dict(w1=w1, b1=b1, w2=w2, b2=b2, w3=w3, b3=b3)


def model_forward(params, x):
    # Zero-embed the 3x3 conv1 weights into a 5x5 layout so one stride-1 conv
    # yields [v5, v6] already concatenated along channels.
    w56 = jnp.concatenate(
        [params["w2"], jnp.pad(params["w1"], ((0, 0), (0, 0), (1, 1), (1, 1)))],
        axis=0)                                                 # (16, 3, 5, 5)
    b56 = jnp.concatenate([params["b2"], params["b1"]])
    v4, v56 = fused_convs_pallas(x, w56, b56, params["w3"], params["b3"])
    # TODO(synk): the reference torch.cat([v4, v5, v6], dim=1) is shape-invalid
    # (conv3 has stride 2, so v4's spatial dims are half of v5/v6's); we return
    # v4 alongside the concatenated compatible pair cat([v5, v6], dim=1).
    return v4, v56


def _lax_conv_ref(x, w, b, stride, pad):
    y = jax.lax.conv_general_dilated(
        x, w, window_strides=(stride, stride),
        padding=[(pad, pad), (pad, pad)],
        dimension_numbers=("NCHW", "OIHW", "NCHW"),
        precision=jax.lax.Precision.HIGHEST,
    )
    return y + b[None, :, None, None]


if __name__ == "__main__":
    key = jax.random.PRNGKey(0)
    kx, kp = jax.random.split(key)

    # small shapes consistent with the module (Cin must be 3)
    x = jax.random.normal(kx, (2, 3, 16, 16), dtype=jnp.float32)
    params = init_params(kp)

    fwd = jax.jit(model_forward)
    v4, v56 = jax.block_until_ready(fwd(params, x))

    assert v4.shape == (2, 8, 8, 8), v4.shape
    assert v56.shape == (2, 16, 16, 16), v56.shape

    # sanity-check the Pallas convs against lax reference convs
    # (inputs/weights are bf16 in the kernel -> tolerance 2e-2)
    r4 = _lax_conv_ref(x, params["w3"], params["b3"], 2, 3)
    r5 = _lax_conv_ref(x, params["w2"], params["b2"], 1, 2)
    r6 = _lax_conv_ref(x, params["w1"], params["b1"], 1, 1)
    r56 = jnp.concatenate([r5, r6], axis=1)
    if not (jnp.allclose(v4, r4, atol=2e-2, rtol=2e-2)
            and jnp.allclose(v56, r56, atol=2e-2, rtol=2e-2)):
        raise AssertionError("Pallas conv output mismatch vs lax reference")

    print("KERNEL_OK")
</pallas_src>

<mosaic_0001>
module attributes {stable_mosaic.version = 11 : i64} {
  func.func @kernel(%arg0: i32, %arg1: memref<1x8x512xbf16, #tpu.memory_space<vmem>>, %arg2: memref<1x8x384xbf16, #tpu.memory_space<vmem>>, %arg3: memref<25x16x8xbf16, #tpu.memory_space<vmem>>, %arg4: memref<28x8x8xbf16, #tpu.memory_space<vmem>>, %arg5: memref<16x1xf32, #tpu.memory_space<vmem>>, %arg6: memref<8x1xf32, #tpu.memory_space<vmem>>, %arg7: memref<1x16x384xf32, #tpu.memory_space<vmem>>, %arg8: memref<1x8x256xf32, #tpu.memory_space<vmem>>) attributes {dimension_semantics = [#tpu.dimension_semantics<parallel>], iteration_bounds = array<i64: 2>, scalar_prefetch = 0 : i64, scratch_operands = 0 : i64, tpu.core_type = #tpu.core_type<tc>, window_params = [{transform_indices = @transform_0, window_bounds = array<i64: 1, 8, 512>}, {transform_indices = @transform_1, window_bounds = array<i64: 1, 8, 384>}, {pipeline_mode = #tpu.pipeline_mode<synchronous>, transform_indices = @transform_2, window_bounds = array<i64: 25, 16, 8>}, {pipeline_mode = #tpu.pipeline_mode<synchronous>, transform_indices = @transform_3, window_bounds = array<i64: 28, 8, 8>}, {pipeline_mode = #tpu.pipeline_mode<synchronous>, transform_indices = @transform_4, window_bounds = array<i64: 16, 1>}, {pipeline_mode = #tpu.pipeline_mode<synchronous>, transform_indices = @transform_5, window_bounds = array<i64: 8, 1>}, {transform_indices = @transform_6, window_bounds = array<i64: 1, 16, 384>}, {transform_indices = @transform_7, window_bounds = array<i64: 1, 8, 256>}]} {
    %cst = arith.constant 0.000000e+00 : f32
    %0 = vector.broadcast %cst : f32 to vector<16x384xf32>
    %c0 = arith.constant 0 : index
    %c0_0 = arith.constant 0 : index
    %c23 = arith.constant 23 : index
    %1 = vector.load %arg1[%c0, %c0_0, %c23] : memref<1x8x512xbf16, #tpu.memory_space<vmem>>, vector<1x8x384xbf16>
    %2 = vector.shape_cast %1 : vector<1x8x384xbf16> to vector<8x384xbf16>
    %c0_1 = arith.constant 0 : index
    %c0_2 = arith.constant 0 : index
    %c0_3 = arith.constant 0 : index
    %3 = vector.load %arg3[%c0_1, %c0_2, %c0_3] : memref<25x16x8xbf16, #tpu.memory_space<vmem>>, vector<1x16x8xbf16>
    %4 = vector.shape_cast %3 : vector<1x16x8xbf16> to vector<16x8xbf16>
    %cst_4 = arith.constant dense<0.000000e+00> : vector<16x384xf32>
    %5 = tpu.matmul %4, %2, %cst_4 {dimension_numbers = #tpu.dot_dimension_numbers<[1], [0], [0], [1], [0, 0, 1, 1], [], []>} : vector<16x8xbf16>, vector<8x384xbf16>, vector<16x384xf32> -> vector<16x384xf32>
    %6 = arith.addf %0, %5 : vector<16x384xf32>
    %c0_5 = arith.constant 0 : index
    %c0_6 = arith.constant 0 : index
    %c24 = arith.constant 24 : index
    %7 = vector.load %arg1[%c0_5, %c0_6, %c24] : memref<1x8x512xbf16, #tpu.memory_space<vmem>>, vector<1x8x384xbf16>
    %8 = vector.shape_cast %7 : vector<1x8x384xbf16> to vector<8x384xbf16>
    %c1 = arith.constant 1 : index
    %c0_7 = arith.constant 0 : index
    %c0_8 = arith.constant 0 : index
    %9 = vector.load %arg3[%c1, %c0_7, %c0_8] : memref<25x16x8xbf16, #tpu.memory_space<vmem>>, vector<1x16x8xbf16>
    %10 = vector.shape_cast %9 : vector<1x16x8xbf16> to vector<16x8xbf16>
    %cst_9 = arith.constant dense<0.000000e+00> : vector<16x384xf32>
    %11 = tpu.matmul %10, %8, %cst_9 {dimension_numbers = #tpu.dot_dimension_numbers<[1], [0], [0], [1], [0, 0, 1, 1], [], []>} : vector<16x8xbf16>, vector<8x384xbf16>, vector<16x384xf32> -> vector<16x384xf32>
    %12 = arith.addf %6, %11 : vector<16x384xf32>
    %c0_10 = arith.constant 0 : index
    %c0_11 = arith.constant 0 : index
    %c25 = arith.constant 25 : index
    %13 = vector.load %arg1[%c0_10, %c0_11, %c25] : memref<1x8x512xbf16, #tpu.memory_space<vmem>>, vector<1x8x384xbf16>
    %14 = vector.shape_cast %13 : vector<1x8x384xbf16> to vector<8x384xbf16>
    %c2 = arith.constant 2 : index
    %c0_12 = arith.constant 0 : index
    %c0_13 = arith.constant 0 : index
    %15 = vector.load %arg3[%c2, %c0_12, %c0_13] : memref<25x16x8xbf16, #tpu.memory_space<vmem>>, vector<1x16x8xbf16>
    %16 = vector.shape_cast %15 : vector<1x16x8xbf16> to vector<16x8xbf16>
    %cst_14 = arith.constant dense<0.000000e+00> : vector<16x384xf32>
    %17 = tpu.matmul %16, %14, %cst_14 {dimension_numbers = #tpu.dot_dimension_numbers<[1], [0], [0], [1], [0, 0, 1, 1], [], []>} : vector<16x8xbf16>, vector<8x384xbf16>, vector<16x384xf32> -> vector<16x384xf32>
    %18 = arith.addf %12, %17 : vector<16x384xf32>
    %c0_15 = arith.constant 0 : index
    %c0_16 = arith.constant 0 : index
    %c26 = arith.constant 26 : index
    %19 = vector.load %arg1[%c0_15, %c0_16, %c26] : memref<1x8x512xbf16, #tpu.memory_space<vmem>>, vector<1x8x384xbf16>
    %20 = vector.shape_cast %19 : vector<1x8x384xbf16> to vector<8x384xbf16>
    %c3 = arith.constant 3 : index
    %c0_17 = arith.constant 0 : index
    %c0_18 = arith.constant 0 : index
    %21 = vector.load %arg3[%c3, %c0_17, %c0_18] : memref<25x16x8xbf16, #tpu.memory_space<vmem>>, vector<1x16x8xbf16>
    %22 = vector.shape_cast %21 : vector<1x16x8xbf16> to vector<16x8xbf16>
    %cst_19 = arith.constant dense<0.000000e+00> : vector<16x384xf32>
    %23 = tpu.matmul %22, %20, %cst_19 {dimension_numbers = #tpu.dot_dimension_numbers<[1], [0], [0], [1], [0, 0, 1, 1], [], []>} : vector<16x8xbf16>, vector<8x384xbf16>, vector<16x384xf32> -> vector<16x384xf32>
    %24 = arith.addf %18, %23 : vector<16x384xf32>
    %c0_20 = arith.constant 0 : index
    %c0_21 = arith.constant 0 : index
    %c27 = arith.constant 27 : index
    %25 = vector.load %arg1[%c0_20, %c0_21, %c27] : memref<1x8x512xbf16, #tpu.memory_space<vmem>>, vector<1x8x384xbf16>
    %26 = vector.shape_cast %25 : vector<1x8x384xbf16> to vector<8x384xbf16>
    %c4 = arith.constant 4 : index
    %c0_22 = arith.constant 0 : index
    %c0_23 = arith.constant 0 : index
    %27 = vector.load %arg3[%c4, %c0_22, %c0_23] : memref<25x16x8xbf16, #tpu.memory_space<vmem>>, vector<1x16x8xbf16>
    %28 = vector.shape_cast %27 : vector<1x16x8xbf16> to vector<16x8xbf16>
    %cst_24 = arith.constant dense<0.000000e+00> : vector<16x384xf32>
    %29 = tpu.matmul %28, %26, %cst_24 {dimension_numbers = #tpu.dot_dimension_numbers<[1], [0], [0], [1], [0, 0, 1, 1], [], []>} : vector<16x8xbf16>, vector<8x384xbf16>, vector<16x384xf32> -> vector<16x384xf32>
    %30 = arith.addf %24, %29 : vector<16x384xf32>
    %c0_25 = arith.constant 0 : index
    %c0_26 = arith.constant 0 : index
    %c45 = arith.constant 45 : index
    %31 = vector.load %arg1[%c0_25, %c0_26, %c45] : memref<1x8x512xbf16, #tpu.memory_space<vmem>>, vector<1x8x384xbf16>
    %32 = vector.shape_cast %31 : vector<1x8x384xbf16> to vector<8x384xbf16>
    %c5 = arith.constant 5 : index
    %c0_27 = arith.constant 0 : index
    %c0_28 = arith.constant 0 : index
    %33 = vector.load %arg3[%c5, %c0_27, %c0_28] : memref<25x16x8xbf16, #tpu.memory_space<vmem>>, vector<1x16x8xbf16>
    %34 = vector.shape_cast %33 : vector<1x16x8xbf16> to vector<16x8xbf16>
    %cst_29 = arith.constant dense<0.000000e+00> : vector<16x384xf32>
    %35 = tpu.matmul %34, %32, %cst_29 {dimension_numbers = #tpu.dot_dimension_numbers<[1], [0], [0], [1], [0, 0, 1, 1], [], []>} : vector<16x8xbf16>, vector<8x384xbf16>, vector<16x384xf32> -> vector<16x384xf32>
    %36 = arith.addf %30, %35 : vector<16x384xf32>
    %c0_30 = arith.constant 0 : index
    %c0_31 = arith.constant 0 : index
    %c46 = arith.constant 46 : index
    %37 = vector.load %arg1[%c0_30, %c0_31, %c46] : memref<1x8x512xbf16, #tpu.memory_space<vmem>>, vector<1x8x384xbf16>
    %38 = vector.shape_cast %37 : vector<1x8x384xbf16> to vector<8x384xbf16>
    %c6 = arith.constant 6 : index
    %c0_32 = arith.constant 0 : index
    %c0_33 = arith.constant 0 : index
    %39 = vector.load %arg3[%c6, %c0_32, %c0_33] : memref<25x16x8xbf16, #tpu.memory_space<vmem>>, vector<1x16x8xbf16>
    %40 = vector.shape_cast %39 : vector<1x16x8xbf16> to vector<16x8xbf16>
    %cst_34 = arith.constant dense<0.000000e+00> : vector<16x384xf32>
    %41 = tpu.matmul %40, %38, %cst_34 {dimension_numbers = #tpu.dot_dimension_numbers<[1], [0], [0], [1], [0, 0, 1, 1], [], []>} : vector<16x8xbf16>, vector<8x384xbf16>, vector<16x384xf32> -> vector<16x384xf32>
    %42 = arith.addf %36, %41 : vector<16x384xf32>
    %c0_35 = arith.constant 0 : index
    %c0_36 = arith.constant 0 : index
    %c47 = arith.constant 47 : index
    %43 = vector.load %arg1[%c0_35, %c0_36, %c47] : memref<1x8x512xbf16, #tpu.memory_space<vmem>>, vector<1x8x384xbf16>
    %44 = vector.shape_cast %43 : vector<1x8x384xbf16> to vector<8x384xbf16>
    %c7 = arith.constant 7 : index
    %c0_37 = arith.constant 0 : index
    %c0_38 = arith.constant 0 : index
    %45 = vector.load %arg3[%c7, %c0_37, %c0_38] : memref<25x16x8xbf16, #tpu.memory_space<vmem>>, vector<1x16x8xbf16>
    %46 = vector.shape_cast %45 : vector<1x16x8xbf16> to vector<16x8xbf16>
    %cst_39 = arith.constant dense<0.000000e+00> : vector<16x384xf32>
    %47 = tpu.matmul %46, %44, %cst_39 {dimension_numbers = #tpu.dot_dimension_numbers<[1], [0], [0], [1], [0, 0, 1, 1], [], []>} : vector<16x8xbf16>, vector<8x384xbf16>, vector<16x384xf32> -> vector<16x384xf32>
    %48 = arith.addf %42, %47 : vector<16x384xf32>
    %c0_40 = arith.constant 0 : index
    %c0_41 = arith.constant 0 : index
    %c48 = arith.constant 48 : index
    %49 = vector.load %arg1[%c0_40, %c0_41, %c48] : memref<1x8x512xbf16, #tpu.memory_space<vmem>>, vector<1x8x384xbf16>
    %50 = vector.shape_cast %49 : vector<1x8x384xbf16> to vector<8x384xbf16>
    %c8 = arith.constant 8 : index
    %c0_42 = arith.constant 0 : index
    %c0_43 = arith.constant 0 : index
    %51 = vector.load %arg3[%c8, %c0_42, %c0_43] : memref<25x16x8xbf16, #tpu.memory_space<vmem>>, vector<1x16x8xbf16>
    %52 = vector.shape_cast %51 : vector<1x16x8xbf16> to vector<16x8xbf16>
    %cst_44 = arith.constant dense<0.000000e+00> : vector<16x384xf32>
    %53 = tpu.matmul %52, %50, %cst_44 {dimension_numbers = #tpu.dot_dimension_numbers<[1], [0], [0], [1], [0, 0, 1, 1], [], []>} : vector<16x8xbf16>, vector<8x384xbf16>, vector<16x384xf32> -> vector<16x384xf32>
    %54 = arith.addf %48, %53 : vector<16x384xf32>
    %c0_45 = arith.constant 0 : index
    %c0_46 = arith.constant 0 : index
    %c49 = arith.constant 49 : index
    %55 = vector.load %arg1[%c0_45, %c0_46, %c49] : memref<1x8x512xbf16, #tpu.memory_space<vmem>>, vector<1x8x384xbf16>
    %56 = vector.shape_cast %55 : vector<1x8x384xbf16> to vector<8x384xbf16>
    %c9 = arith.constant 9 : index
    %c0_47 = arith.constant 0 : index
    %c0_48 = arith.constant 0 : index
    %57 = vector.load %arg3[%c9, %c0_47, %c0_48] : memref<25x16x8xbf16, #tpu.memory_space<vmem>>, vector<1x16x8xbf16>
    %58 = vector.shape_cast %57 : vector<1x16x8xbf16> to vector<16x8xbf16>
    %cst_49 = arith.constant dense<0.000000e+00> : vector<16x384xf32>
    %59 = tpu.matmul %58, %56, %cst_49 {dimension_numbers = #tpu.dot_dimension_numbers<[1], [0], [0], [1], [0, 0, 1, 1], [], []>} : vector<16x8xbf16>, vector<8x384xbf16>, vector<16x384xf32> -> vector<16x384xf32>
    %60 = arith.addf %54, %59 : vector<16x384xf32>
    %c0_50 = arith.constant 0 : index
    %c0_51 = arith.constant 0 : index
    %c67 = arith.constant 67 : index
    %61 = vector.load %arg1[%c0_50, %c0_51, %c67] : memref<1x8x512xbf16, #tpu.memory_space<vmem>>, vector<1x8x384xbf16>
    %62 = vector.shape_cast %61 : vector<1x8x384xbf16> to vector<8x384xbf16>
    %c10 = arith.constant 10 : index
    %c0_52 = arith.constant 0 : index
    %c0_53 = arith.constant 0 : index
    %63 = vector.load %arg3[%c10, %c0_52, %c0_53] : memref<25x16x8xbf16, #tpu.memory_space<vmem>>, vector<1x16x8xbf16>
    %64 = vector.shape_cast %63 : vector<1x16x8xbf16> to vector<16x8xbf16>
    %cst_54 = arith.constant dense<0.000000e+00> : vector<16x384xf32>
    %65 = tpu.matmul %64, %62, %cst_54 {dimension_numbers = #tpu.dot_dimension_numbers<[1], [0], [0], [1], [0, 0, 1, 1], [], []>} : vector<16x8xbf16>, vector<8x384xbf16>, vector<16x384xf32> -> vector<16x384xf32>
    %66 = arith.addf %60, %65 : vector<16x384xf32>
    %c0_55 = arith.constant 0 : index
    %c0_56 = arith.constant 0 : index
    %c68 = arith.constant 68 : index
    %67 = vector.load %arg1[%c0_55, %c0_56, %c68] : memref<1x8x512xbf16, #tpu.memory_space<vmem>>, vector<1x8x384xbf16>
    %68 = vector.shape_cast %67 : vector<1x8x384xbf16> to vector<8x384xbf16>
    %c11 = arith.constant 11 : index
    %c0_57 = arith.constant 0 : index
    %c0_58 = arith.constant 0 : index
    %69 = vector.load %arg3[%c11, %c0_57, %c0_58] : memref<25x16x8xbf16, #tpu.memory_space<vmem>>, vector<1x16x8xbf16>
    %70 = vector.shape_cast %69 : vector<1x16x8xbf16> to vector<16x8xbf16>
    %cst_59 = arith.constant dense<0.000000e+00> : vector<16x384xf32>
    %71 = tpu.matmul %70, %68, %cst_59 {dimension_numbers = #tpu.dot_dimension_numbers<[1], [0], [0], [1], [0, 0, 1, 1], [], []>} : vector<16x8xbf16>, vector<8x384xbf16>, vector<16x384xf32> -> vector<16x384xf32>
    %72 = arith.addf %66, %71 : vector<16x384xf32>
    %c0_60 = arith.constant 0 : index
    %c0_61 = arith.constant 0 : index
    %c69 = arith.constant 69 : index
    %73 = vector.load %arg1[%c0_60, %c0_61, %c69] : memref<1x8x512xbf16, #tpu.memory_space<vmem>>, vector<1x8x384xbf16>
    %74 = vector.shape_cast %73 : vector<1x8x384xbf16> to vector<8x384xbf16>
    %c12 = arith.constant 12 : index
    %c0_62 = arith.constant 0 : index
    %c0_63 = arith.constant 0 : index
    %75 = vector.load %arg3[%c12, %c0_62, %c0_63] : memref<25x16x8xbf16, #tpu.memory_space<vmem>>, vector<1x16x8xbf16>
    %76 = vector.shape_cast %75 : vector<1x16x8xbf16> to vector<16x8xbf16>
    %cst_64 = arith.constant dense<0.000000e+00> : vector<16x384xf32>
    %77 = tpu.matmul %76, %74, %cst_64 {dimension_numbers = #tpu.dot_dimension_numbers<[1], [0], [0], [1], [0, 0, 1, 1], [], []>} : vector<16x8xbf16>, vector<8x384xbf16>, vector<16x384xf32> -> vector<16x384xf32>
    %78 = arith.addf %72, %77 : vector<16x384xf32>
    %c0_65 = arith.constant 0 : index
    %c0_66 = arith.constant 0 : index
    %c70 = arith.constant 70 : index
    %79 = vector.load %arg1[%c0_65, %c0_66, %c70] : memref<1x8x512xbf16, #tpu.memory_space<vmem>>, vector<1x8x384xbf16>
    %80 = vector.shape_cast %79 : vector<1x8x384xbf16> to vector<8x384xbf16>
    %c13 = arith.constant 13 : index
    %c0_67 = arith.constant 0 : index
    %c0_68 = arith.constant 0 : index
    %81 = vector.load %arg3[%c13, %c0_67, %c0_68] : memref<25x16x8xbf16, #tpu.memory_space<vmem>>, vector<1x16x8xbf16>
    %82 = vector.shape_cast %81 : vector<1x16x8xbf16> to vector<16x8xbf16>
    %cst_69 = arith.constant dense<0.000000e+00> : vector<16x384xf32>
    %83 = tpu.matmul %82, %80, %cst_69 {dimension_numbers = #tpu.dot_dimension_numbers<[1], [0], [0], [1], [0, 0, 1, 1], [], []>} : vector<16x8xbf16>, vector<8x384xbf16>, vector<16x384xf32> -> vector<16x384xf32>
    %84 = arith.addf %78, %83 : vector<16x384xf32>
    %c0_70 = arith.constant 0 : index
    %c0_71 = arith.constant 0 : index
    %c71 = arith.constant 71 : index
    %85 = vector.load %arg1[%c0_70, %c0_71, %c71] : memref<1x8x512xbf16, #tpu.memory_space<vmem>>, vector<1x8x384xbf16>
    %86 = vector.shape_cast %85 : vector<1x8x384xbf16> to vector<8x384xbf16>
    %c14 = arith.constant 14 : index
    %c0_72 = arith.constant 0 : index
    %c0_73 = arith.constant 0 : index
    %87 = vector.load %arg3[%c14, %c0_72, %c0_73] : memref<25x16x8xbf16, #tpu.memory_space<vmem>>, vector<1x16x8xbf16>
    %88 = vector.shape_cast %87 : vector<1x16x8xbf16> to vector<16x8xbf16>
    %cst_74 = arith.constant dense<0.000000e+00> : vector<16x384xf32>
    %89 = tpu.matmul %88, %86, %cst_74 {dimension_numbers = #tpu.dot_dimension_numbers<[1], [0], [0], [1], [0, 0, 1, 1], [], []>} : vector<16x8xbf16>, vector<8x384xbf16>, vector<16x384xf32> -> vector<16x384xf32>
    %90 = arith.addf %84, %89 : vector<16x384xf32>
    %c0_75 = arith.constant 0 : index
    %c0_76 = arith.constant 0 : index
    %c89 = arith.constant 89 : index
    %91 = vector.load %arg1[%c0_75, %c0_76, %c89] : memref<1x8x512xbf16, #tpu.memory_space<vmem>>, vector<1x8x384xbf16>
    %92 = vector.shape_cast %91 : vector<1x8x384xbf16> to vector<8x384xbf16>
    %c15 = arith.constant 15 : index
    %c0_77 = arith.constant 0 : index
    %c0_78 = arith.constant 0 : index
    %93 = vector.load %arg3[%c15, %c0_77, %c0_78] : memref<25x16x8xbf16, #tpu.memory_space<vmem>>, vector<1x16x8xbf16>
    %94 = vector.shape_cast %93 : vector<1x16x8xbf16> to vector<16x8xbf16>
    %cst_79 = arith.constant dense<0.000000e+00> : vector<16x384xf32>
    %95 = tpu.matmul %94, %92, %cst_79 {dimension_numbers = #tpu.dot_dimension_numbers<[1], [0], [0], [1], [0, 0, 1, 1], [], []>} : vector<16x8xbf16>, vector<8x384xbf16>, vector<16x384xf32> -> vector<16x384xf32>
    %96 = arith.addf %90, %95 : vector<16x384xf32>
    %c0_80 = arith.constant 0 : index
    %c0_81 = arith.constant 0 : index
    %c90 = arith.constant 90 : index
    %97 = vector.load %arg1[%c0_80, %c0_81, %c90] : memref<1x8x512xbf16, #tpu.memory_space<vmem>>, vector<1x8x384xbf16>
    %98 = vector.shape_cast %97 : vector<1x8x384xbf16> to vector<8x384xbf16>
    %c16 = arith.constant 16 : index
    %c0_82 = arith.constant 0 : index
    %c0_83 = arith.constant 0 : index
    %99 = vector.load %arg3[%c16, %c0_82, %c0_83] : memref<25x16x8xbf16, #tpu.memory_space<vmem>>, vector<1x16x8xbf16>
    %100 = vector.shape_cast %99 : vector<1x16x8xbf16> to vector<16x8xbf16>
    %cst_84 = arith.constant dense<0.000000e+00> : vector<16x384xf32>
    %101 = tpu.matmul %100, %98, %cst_84 {dimension_numbers = #tpu.dot_dimension_numbers<[1], [0], [0], [1], [0, 0, 1, 1], [], []>} : vector<16x8xbf16>, vector<8x384xbf16>, vector<16x384xf32> -> vector<16x384xf32>
    %102 = arith.addf %96, %101 : vector<16x384xf32>
    %c0_85 = arith.constant 0 : index
    %c0_86 = arith.constant 0 : index
    %c91 = arith.constant 91 : index
    %103 = vector.load %arg1[%c0_85, %c0_86, %c91] : memref<1x8x512xbf16, #tpu.memory_space<vmem>>, vector<1x8x384xbf16>
    %104 = vector.shape_cast %103 : vector<1x8x384xbf16> to vector<8x384xbf16>
    %c17 = arith.constant 17 : index
    %c0_87 = arith.constant 0 : index
    %c0_88 = arith.constant 0 : index
    %105 = vector.load %arg3[%c17, %c0_87, %c0_88] : memref<25x16x8xbf16, #tpu.memory_space<vmem>>, vector<1x16x8xbf16>
    %106 = vector.shape_cast %105 : vector<1x16x8xbf16> to vector<16x8xbf16>
    %cst_89 = arith.constant dense<0.000000e+00> : vector<16x384xf32>
    %107 = tpu.matmul %106, %104, %cst_89 {dimension_numbers = #tpu.dot_dimension_numbers<[1], [0], [0], [1], [0, 0, 1, 1], [], []>} : vector<16x8xbf16>, vector<8x384xbf16>, vector<16x384xf32> -> vector<16x384xf32>
    %108 = arith.addf %102, %107 : vector<16x384xf32>
    %c0_90 = arith.constant 0 : index
    %c0_91 = arith.constant 0 : index
    %c92 = arith.constant 92 : index
    %109 = vector.load %arg1[%c0_90, %c0_91, %c92] : memref<1x8x512xbf16, #tpu.memory_space<vmem>>, vector<1x8x384xbf16>
    %110 = vector.shape_cast %109 : vector<1x8x384xbf16> to vector<8x384xbf16>
    %c18 = arith.constant 18 : index
    %c0_92 = arith.constant 0 : index
    %c0_93 = arith.constant 0 : index
    %111 = vector.load %arg3[%c18, %c0_92, %c0_93] : memref<25x16x8xbf16, #tpu.memory_space<vmem>>, vector<1x16x8xbf16>
    %112 = vector.shape_cast %111 : vector<1x16x8xbf16> to vector<16x8xbf16>
    %cst_94 = arith.constant dense<0.000000e+00> : vector<16x384xf32>
    %113 = tpu.matmul %112, %110, %cst_94 {dimension_numbers = #tpu.dot_dimension_numbers<[1], [0], [0], [1], [0, 0, 1, 1], [], []>} : vector<16x8xbf16>, vector<8x384xbf16>, vector<16x384xf32> -> vector<16x384xf32>
    %114 = arith.addf %108, %113 : vector<16x384xf32>
    %c0_95 = arith.constant 0 : index
    %c0_96 = arith.constant 0 : index
    %c93 = arith.constant 93 : index
    %115 = vector.load %arg1[%c0_95, %c0_96, %c93] : memref<1x8x512xbf16, #tpu.memory_space<vmem>>, vector<1x8x384xbf16>
    %116 = vector.shape_cast %115 : vector<1x8x384xbf16> to vector<8x384xbf16>
    %c19 = arith.constant 19 : index
    %c0_97 = arith.constant 0 : index
    %c0_98 = arith.constant 0 : index
    %117 = vector.load %arg3[%c19, %c0_97, %c0_98] : memref<25x16x8xbf16, #tpu.memory_space<vmem>>, vector<1x16x8xbf16>
    %118 = vector.shape_cast %117 : vector<1x16x8xbf16> to vector<16x8xbf16>
    %cst_99 = arith.constant dense<0.000000e+00> : vector<16x384xf32>
    %119 = tpu.matmul %118, %116, %cst_99 {dimension_numbers = #tpu.dot_dimension_numbers<[1], [0], [0], [1], [0, 0, 1, 1], [], []>} : vector<16x8xbf16>, vector<8x384xbf16>, vector<16x384xf32> -> vector<16x384xf32>
    %120 = arith.addf %114, %119 : vector<16x384xf32>
    %c0_100 = arith.constant 0 : index
    %c0_101 = arith.constant 0 : index
    %c111 = arith.constant 111 : index
    %121 = vector.load %arg1[%c0_100, %c0_101, %c111] : memref<1x8x512xbf16, #tpu.memory_space<vmem>>, vector<1x8x384xbf16>
    %122 = vector.shape_cast %121 : vector<1x8x384xbf16> to vector<8x384xbf16>
    %c20 = arith.constant 20 : index
    %c0_102 = arith.constant 0 : index
    %c0_103 = arith.constant 0 : index
    %123 = vector.load %arg3[%c20, %c0_102, %c0_103] : memref<25x16x8xbf16, #tpu.memory_space<vmem>>, vector<1x16x8xbf16>
    %124 = vector.shape_cast %123 : vector<1x16x8xbf16> to vector<16x8xbf16>
    %cst_104 = arith.constant dense<0.000000e+00> : vector<16x384xf32>
    %125 = tpu.matmul %124, %122, %cst_104 {dimension_numbers = #tpu.dot_dimension_numbers<[1], [0], [0], [1], [0, 0, 1, 1], [], []>} : vector<16x8xbf16>, vector<8x384xbf16>, vector<16x384xf32> -> vector<16x384xf32>
    %126 = arith.addf %120, %125 : vector<16x384xf32>
    %c0_105 = arith.constant 0 : index
    %c0_106 = arith.constant 0 : index
    %c112 = arith.constant 112 : index
    %127 = vector.load %arg1[%c0_105, %c0_106, %c112] : memref<1x8x512xbf16, #tpu.memory_space<vmem>>, vector<1x8x384xbf16>
    %128 = vector.shape_cast %127 : vector<1x8x384xbf16> to vector<8x384xbf16>
    %c21 = arith.constant 21 : index
    %c0_107 = arith.constant 0 : index
    %c0_108 = arith.constant 0 : index
    %129 = vector.load %arg3[%c21, %c0_107, %c0_108] : memref<25x16x8xbf16, #tpu.memory_space<vmem>>, vector<1x16x8xbf16>
    %130 = vector.shape_cast %129 : vector<1x16x8xbf16> to vector<16x8xbf16>
    %cst_109 = arith.constant dense<0.000000e+00> : vector<16x384xf32>
    %131 = tpu.matmul %130, %128, %cst_109 {dimension_numbers = #tpu.dot_dimension_numbers<[1], [0], [0], [1], [0, 0, 1, 1], [], []>} : vector<16x8xbf16>, vector<8x384xbf16>, vector<16x384xf32> -> vector<16x384xf32>
    %132 = arith.addf %126, %131 : vector<16x384xf32>
    %c0_110 = arith.constant 0 : index
    %c0_111 = arith.constant 0 : index
    %c113 = arith.constant 113 : index
    %133 = vector.load %arg1[%c0_110, %c0_111, %c113] : memref<1x8x512xbf16, #tpu.memory_space<vmem>>, vector<1x8x384xbf16>
    %134 = vector.shape_cast %133 : vector<1x8x384xbf16> to vector<8x384xbf16>
    %c22 = arith.constant 22 : index
    %c0_112 = arith.constant 0 : index
    %c0_113 = arith.constant 0 : index
    %135 = vector.load %arg3[%c22, %c0_112, %c0_113] : memref<25x16x8xbf16, #tpu.memory_space<vmem>>, vector<1x16x8xbf16>
    %136 = vector.shape_cast %135 : vector<1x16x8xbf16> to vector<16x8xbf16>
    %cst_114 = arith.constant dense<0.000000e+00> : vector<16x384xf32>
    %137 = tpu.matmul %136, %134, %cst_114 {dimension_numbers = #tpu.dot_dimension_numbers<[1], [0], [0], [1], [0, 0, 1, 1], [], []>} : vector<16x8xbf16>, vector<8x384xbf16>, vector<16x384xf32> -> vector<16x384xf32>
    %138 = arith.addf %132, %137 : vector<16x384xf32>
    %c0_115 = arith.constant 0 : index
    %c0_116 = arith.constant 0 : index
    %c114 = arith.constant 114 : index
    %139 = vector.load %arg1[%c0_115, %c0_116, %c114] : memref<1x8x512xbf16, #tpu.memory_space<vmem>>, vector<1x8x384xbf16>
    %140 = vector.shape_cast %139 : vector<1x8x384xbf16> to vector<8x384xbf16>
    %c23_117 = arith.constant 23 : index
    %c0_118 = arith.constant 0 : index
    %c0_119 = arith.constant 0 : index
    %141 = vector.load %arg3[%c23_117, %c0_118, %c0_119] : memref<25x16x8xbf16, #tpu.memory_space<vmem>>, vector<1x16x8xbf16>
    %142 = vector.shape_cast %141 : vector<1x16x8xbf16> to vector<16x8xbf16>
    %cst_120 = arith.constant dense<0.000000e+00> : vector<16x384xf32>
    %143 = tpu.matmul %142, %140, %cst_120 {dimension_numbers = #tpu.dot_dimension_numbers<[1], [0], [0], [1], [0, 0, 1, 1], [], []>} : vector<16x8xbf16>, vector<8x384xbf16>, vector<16x384xf32> -> vector<16x384xf32>
    %144 = arith.addf %138, %143 : vector<16x384xf32>
    %c0_121 = arith.constant 0 : index
    %c0_122 = arith.constant 0 : index
    %c115 = arith.constant 115 : index
    %145 = vector.load %arg1[%c0_121, %c0_122, %c115] : memref<1x8x512xbf16, #tpu.memory_space<vmem>>, vector<1x8x384xbf16>
    %146 = vector.shape_cast %145 : vector<1x8x384xbf16> to vector<8x384xbf16>
    %c24_123 = arith.constant 24 : index
    %c0_124 = arith.constant 0 : index
    %c0_125 = arith.constant 0 : index
    %147 = vector.load %arg3[%c24_123, %c0_124, %c0_125] : memref<25x16x8xbf16, #tpu.memory_space<vmem>>, vector<1x16x8xbf16>
    %148 = vector.shape_cast %147 : vector<1x16x8xbf16> to vector<16x8xbf16>
    %cst_126 = arith.constant dense<0.000000e+00> : vector<16x384xf32>
    %149 = tpu.matmul %148, %146, %cst_126 {dimension_numbers = #tpu.dot_dimension_numbers<[1], [0], [0], [1], [0, 0, 1, 1], [], []>} : vector<16x8xbf16>, vector<8x384xbf16>, vector<16x384xf32> -> vector<16x384xf32>
    %150 = arith.addf %144, %149 : vector<16x384xf32>
    %c0_127 = arith.constant 0 : index
    %c0_128 = arith.constant 0 : index
    %151 = vector.load %arg5[%c0_127, %c0_128] : memref<16x1xf32, #tpu.memory_space<vmem>>, vector<16x1xf32>
    %152 = vector.broadcast %151 : vector<16x1xf32> to vector<16x384xf32>
    %153 = arith.addf %150, %152 : vector<16x384xf32>
    %c0_129 = arith.constant 0 : index
    %c0_130 = arith.constant 0 : index
    %c0_131 = arith.constant 0 : index
    %154 = vector.load %arg7[%c0_129, %c0_130, %c0_131] : memref<1x16x384xf32, #tpu.memory_space<vmem>>, vector<1x16x384xf32>
    %155 = vector.shape_cast %154 : vector<1x16x384xf32> to vector<16x384xf32>
    %156 = vector.shape_cast %153 : vector<16x384xf32> to vector<1x16x384xf32>
    tpu.vector_store %arg7[%c0_129, %c0_130, %c0_131], %156 {strides = array<i32>} : memref<1x16x384xf32, #tpu.memory_space<vmem>>, vector<1x16x384xf32>,
    %cst_132 = arith.constant 0.000000e+00 : f32
    %157 = vector.broadcast %cst_132 : f32 to vector<8x256xf32>
    %c0_133 = arith.constant 0 : index
    %c0_134 = arith.constant 0 : index
    %c0_135 = arith.constant 0 : index
    %158 = vector.load %arg2[%c0_133, %c0_134, %c0_135] : memref<1x8x384xbf16, #tpu.memory_space<vmem>>, vector<1x8x256xbf16>
    %159 = vector.shape_cast %158 : vector<1x8x256xbf16> to vector<8x256xbf16>
    %c0_136 = arith.constant 0 : index
    %c0_137 = arith.constant 0 : index
    %c0_138 = arith.constant 0 : index
    %160 = vector.load %arg4[%c0_136, %c0_137, %c0_138] : memref<28x8x8xbf16, #tpu.memory_space<vmem>>, vector<1x8x8xbf16>
    %161 = vector.shape_cast %160 : vector<1x8x8xbf16> to vector<8x8xbf16>
    %cst_139 = arith.constant dense<0.000000e+00> : vector<8x256xf32>
    %162 = tpu.matmul %161, %159, %cst_139 {dimension_numbers = #tpu.dot_dimension_numbers<[1], [0], [0], [1], [0, 0, 1, 1], [], []>} : vector<8x8xbf16>, vector<8x256xbf16>, vector<8x256xf32> -> vector<8x256xf32>
    %163 = arith.addf %157, %162 : vector<8x256xf32>
    %c0_140 = arith.constant 0 : index
    %c0_141 = arith.constant 0 : index
    %c1_142 = arith.constant 1 : index
    %164 = vector.load %arg2[%c0_140, %c0_141, %c1_142] : memref<1x8x384xbf16, #tpu.memory_space<vmem>>, vector<1x8x256xbf16>
    %165 = vector.shape_cast %164 : vector<1x8x256xbf16> to vector<8x256xbf16>
    %c1_143 = arith.constant 1 : index
    %c0_144 = arith.constant 0 : index
    %c0_145 = arith.constant 0 : index
    %166 = vector.load %arg4[%c1_143, %c0_144, %c0_145] : memref<28x8x8xbf16, #tpu.memory_space<vmem>>, vector<1x8x8xbf16>
    %167 = vector.shape_cast %166 : vector<1x8x8xbf16> to vector<8x8xbf16>
    %cst_146 = arith.constant dense<0.000000e+00> : vector<8x256xf32>
    %168 = tpu.matmul %167, %165, %cst_146 {dimension_numbers = #tpu.dot_dimension_numbers<[1], [0], [0], [1], [0, 0, 1, 1], [], []>} : vector<8x8xbf16>, vector<8x256xbf16>, vector<8x256xf32> -> vector<8x256xf32>
    %169 = arith.addf %163, %168 : vector<8x256xf32>
    %c0_147 = arith.constant 0 : index
    %c0_148 = arith.constant 0 : index
    %c2_149 = arith.constant 2 : index
    %170 = vector.load %arg2[%c0_147, %c0_148, %c2_149] : memref<1x8x384xbf16, #tpu.memory_space<vmem>>, vector<1x8x256xbf16>
    %171 = vector.shape_cast %170 : vector<1x8x256xbf16> to vector<8x256xbf16>
    %c2_150 = arith.constant 2 : index
    %c0_151 = arith.constant 0 : index
    %c0_152 = arith.constant 0 : index
    %172 = vector.load %arg4[%c2_150, %c0_151, %c0_152] : memref<28x8x8xbf16, #tpu.memory_space<vmem>>, vector<1x8x8xbf16>
    %173 = vector.shape_cast %172 : vector<1x8x8xbf16> to vector<8x8xbf16>
    %cst_153 = arith.constant dense<0.000000e+00> : vector<8x256xf32>
    %174 = tpu.matmul %173, %171, %cst_153 {dimension_numbers = #tpu.dot_dimension_numbers<[1], [0], [0], [1], [0, 0, 1, 1], [], []>} : vector<8x8xbf16>, vector<8x256xbf16>, vector<8x256xf32> -> vector<8x256xf32>
    %175 = arith.addf %169, %174 : vector<8x256xf32>
    %c0_154 = arith.constant 0 : index
    %c0_155 = arith.constant 0 : index
    %c3_156 = arith.constant 3 : index
    %176 = vector.load %arg2[%c0_154, %c0_155, %c3_156] : memref<1x8x384xbf16, #tpu.memory_space<vmem>>, vector<1x8x256xbf16>
    %177 = vector.shape_cast %176 : vector<1x8x256xbf16> to vector<8x256xbf16>
    %c3_157 = arith.constant 3 : index
    %c0_158 = arith.constant 0 : index
    %c0_159 = arith.constant 0 : index
    %178 = vector.load %arg4[%c3_157, %c0_158, %c0_159] : memref<28x8x8xbf16, #tpu.memory_space<vmem>>, vector<1x8x8xbf16>
    %179 = vector.shape_cast %178 : vector<1x8x8xbf16> to vector<8x8xbf16>
    %cst_160 = arith.constant dense<0.000000e+00> : vector<8x256xf32>
    %180 = tpu.matmul %179, %177, %cst_160 {dimension_numbers = #tpu.dot_dimension_numbers<[1], [0], [0], [1], [0, 0, 1, 1], [], []>} : vector<8x8xbf16>, vector<8x256xbf16>, vector<8x256xf32> -> vector<8x256xf32>
    %181 = arith.addf %175, %180 : vector<8x256xf32>
    %c0_161 = arith.constant 0 : index
    %c0_162 = arith.constant 0 : index
    %c11_163 = arith.constant 11 : index
    %182 = vector.load %arg2[%c0_161, %c0_162, %c11_163] : memref<1x8x384xbf16, #tpu.memory_space<vmem>>, vector<1x8x256xbf16>
    %183 = vector.shape_cast %182 : vector<1x8x256xbf16> to vector<8x256xbf16>
    %c4_164 = arith.constant 4 : index
    %c0_165 = arith.constant 0 : index
    %c0_166 = arith.constant 0 : index
    %184 = vector.load %arg4[%c4_164, %c0_165, %c0_166] : memref<28x8x8xbf16, #tpu.memory_space<vmem>>, vector<1x8x8xbf16>
    %185 = vector.shape_cast %184 : vector<1x8x8xbf16> to vector<8x8xbf16>
    %cst_167 = arith.constant dense<0.000000e+00> : vector<8x256xf32>
    %186 = tpu.matmul %185, %183, %cst_167 {dimension_numbers = #tpu.dot_dimension_numbers<[1], [0], [0], [1], [0, 0, 1, 1], [], []>} : vector<8x8xbf16>, vector<8x256xbf16>, vector<8x256xf32> -> vector<8x256xf32>
    %187 = arith.addf %181, %186 : vector<8x256xf32>
    %c0_168 = arith.constant 0 : index
    %c0_169 = arith.constant 0 : index
    %c12_170 = arith.constant 12 : index
    %188 = vector.load %arg2[%c0_168, %c0_169, %c12_170] : memref<1x8x384xbf16, #tpu.memory_space<vmem>>, vector<1x8x256xbf16>
    %189 = vector.shape_cast %188 : vector<1x8x256xbf16> to vector<8x256xbf16>
    %c5_171 = arith.constant 5 : index
    %c0_172 = arith.constant 0 : index
    %c0_173 = arith.constant 0 : index
    %190 = vector.load %arg4[%c5_171, %c0_172, %c0_173] : memref<28x8x8xbf16, #tpu.memory_space<vmem>>, vector<1x8x8xbf16>
    %191 = vector.shape_cast %190 : vector<1x8x8xbf16> to vector<8x8xbf16>
    %cst_174 = arith.constant dense<0.000000e+00> : vector<8x256xf32>
    %192 = tpu.matmul %191, %189, %cst_174 {dimension_numbers = #tpu.dot_dimension_numbers<[1], [0], [0], [1], [0, 0, 1, 1], [], []>} : vector<8x8xbf16>, vector<8x256xbf16>, vector<8x256xf32> -> vector<8x256xf32>
    %193 = arith.addf %187, %192 : vector<8x256xf32>
    %c0_175 = arith.constant 0 : index
    %c0_176 = arith.constant 0 : index
    %c13_177 = arith.constant 13 : index
    %194 = vector.load %arg2[%c0_175, %c0_176, %c13_177] : memref<1x8x384xbf16, #tpu.memory_space<vmem>>, vector<1x8x256xbf16>
    %195 = vector.shape_cast %194 : vector<1x8x256xbf16> to vector<8x256xbf16>
    %c6_178 = arith.constant 6 : index
    %c0_179 = arith.constant 0 : index
    %c0_180 = arith.constant 0 : index
    %196 = vector.load %arg4[%c6_178, %c0_179, %c0_180] : memref<28x8x8xbf16, #tpu.memory_space<vmem>>, vector<1x8x8xbf16>
    %197 = vector.shape_cast %196 : vector<1x8x8xbf16> to vector<8x8xbf16>
    %cst_181 = arith.constant dense<0.000000e+00> : vector<8x256xf32>
    %198 = tpu.matmul %197, %195, %cst_181 {dimension_numbers = #tpu.dot_dimension_numbers<[1], [0], [0], [1], [0, 0, 1, 1], [], []>} : vector<8x8xbf16>, vector<8x256xbf16>, vector<8x256xf32> -> vector<8x256xf32>
    %199 = arith.addf %193, %198 : vector<8x256xf32>
    %c0_182 = arith.constant 0 : index
    %c0_183 = arith.constant 0 : index
    %c14_184 = arith.constant 14 : index
    %200 = vector.load %arg2[%c0_182, %c0_183, %c14_184] : memref<1x8x384xbf16, #tpu.memory_space<vmem>>, vector<1x8x256xbf16>
    %201 = vector.shape_cast %200 : vector<1x8x256xbf16> to vector<8x256xbf16>
    %c7_185 = arith.constant 7 : index
    %c0_186 = arith.constant 0 : index
    %c0_187 = arith.constant 0 : index
    %202 = vector.load %arg4[%c7_185, %c0_186, %c0_187] : memref<28x8x8xbf16, #tpu.memory_space<vmem>>, vector<1x8x8xbf16>
    %203 = vector.shape_cast %202 : vector<1x8x8xbf16> to vector<8x8xbf16>
    %cst_188 = arith.constant dense<0.000000e+00> : vector<8x256xf32>
    %204 = tpu.matmul %203, %201, %cst_188 {dimension_numbers = #tpu.dot_dimension_numbers<[1], [0], [0], [1], [0, 0, 1, 1], [], []>} : vector<8x8xbf16>, vector<8x256xbf16>, vector<8x256xf32> -> vector<8x256xf32>
    %205 = arith.addf %199, %204 : vector<8x256xf32>
    %c0_189 = arith.constant 0 : index
    %c0_190 = arith.constant 0 : index
    %c22_191 = arith.constant 22 : index
    %206 = vector.load %arg2[%c0_189, %c0_190, %c22_191] : memref<1x8x384xbf16, #tpu.memory_space<vmem>>, vector<1x8x256xbf16>
    %207 = vector.shape_cast %206 : vector<1x8x256xbf16> to vector<8x256xbf16>
    %c8_192 = arith.constant 8 : index
    %c0_193 = arith.constant 0 : index
    %c0_194 = arith.constant 0 : index
    %208 = vector.load %arg4[%c8_192, %c0_193, %c0_194] : memref<28x8x8xbf16, #tpu.memory_space<vmem>>, vector<1x8x8xbf16>
    %209 = vector.shape_cast %208 : vector<1x8x8xbf16> to vector<8x8xbf16>
    %cst_195 = arith.constant dense<0.000000e+00> : vector<8x256xf32>
    %210 = tpu.matmul %209, %207, %cst_195 {dimension_numbers = #tpu.dot_dimension_numbers<[1], [0], [0], [1], [0, 0, 1, 1], [], []>} : vector<8x8xbf16>, vector<8x256xbf16>, vector<8x256xf32> -> vector<8x256xf32>
    %211 = arith.addf %205, %210 : vector<8x256xf32>
    %c0_196 = arith.constant 0 : index
    %c0_197 = arith.constant 0 : index
    %c23_198 = arith.constant 23 : index
    %212 = vector.load %arg2[%c0_196, %c0_197, %c23_198] : memref<1x8x384xbf16, #tpu.memory_space<vmem>>, vector<1x8x256xbf16>
    %213 = vector.shape_cast %212 : vector<1x8x256xbf16> to vector<8x256xbf16>
    %c9_199 = arith.constant 9 : index
    %c0_200 = arith.constant 0 : index
    %c0_201 = arith.constant 0 : index
    %214 = vector.load %arg4[%c9_199, %c0_200, %c0_201] : memref<28x8x8xbf16, #tpu.memory_space<vmem>>, vector<1x8x8xbf16>
    %215 = vector.shape_cast %214 : vector<1x8x8xbf16> to vector<8x8xbf16>
    %cst_202 = arith.constant dense<0.000000e+00> : vector<8x256xf32>
    %216 = tpu.matmul %215, %213, %cst_202 {dimension_numbers = #tpu.dot_dimension_numbers<[1], [0], [0], [1], [0, 0, 1, 1], [], []>} : vector<8x8xbf16>, vector<8x256xbf16>, vector<8x256xf32> -> vector<8x256xf32>
    %217 = arith.addf %211, %216 : vector<8x256xf32>
    %c0_203 = arith.constant 0 : index
    %c0_204 = arith.constant 0 : index
    %c24_205 = arith.constant 24 : index
    %218 = vector.load %arg2[%c0_203, %c0_204, %c24_205] : memref<1x8x384xbf16, #tpu.memory_space<vmem>>, vector<1x8x256xbf16>
    %219 = vector.shape_cast %218 : vector<1x8x256xbf16> to vector<8x256xbf16>
    %c10_206 = arith.constant 10 : index
    %c0_207 = arith.constant 0 : index
    %c0_208 = arith.constant 0 : index
    %220 = vector.load %arg4[%c10_206, %c0_207, %c0_208] : memref<28x8x8xbf16, #tpu.memory_space<vmem>>, vector<1x8x8xbf16>
    %221 = vector.shape_cast %220 : vector<1x8x8xbf16> to vector<8x8xbf16>
    %cst_209 = arith.constant dense<0.000000e+00> : vector<8x256xf32>
    %222 = tpu.matmul %221, %219, %cst_209 {dimension_numbers = #tpu.dot_dimension_numbers<[1], [0], [0], [1], [0, 0, 1, 1], [], []>} : vector<8x8xbf16>, vector<8x256xbf16>, vector<8x256xf32> -> vector<8x256xf32>
    %223 = arith.addf %217, %222 : vector<8x256xf32>
    %c0_210 = arith.constant 0 : index
    %c0_211 = arith.constant 0 : index
    %c25_212 = arith.constant 25 : index
    %224 = vector.load %arg2[%c0_210, %c0_211, %c25_212] : memref<1x8x384xbf16, #tpu.memory_space<vmem>>, vector<1x8x256xbf16>
    %225 = vector.shape_cast %224 : vector<1x8x256xbf16> to vector<8x256xbf16>
    %c11_213 = arith.constant 11 : index
    %c0_214 = arith.constant 0 : index
    %c0_215 = arith.constant 0 : index
    %226 = vector.load %arg4[%c11_213, %c0_214, %c0_215] : memref<28x8x8xbf16, #tpu.memory_space<vmem>>, vector<1x8x8xbf16>
    %227 = vector.shape_cast %226 : vector<1x8x8xbf16> to vector<8x8xbf16>
    %cst_216 = arith.constant dense<0.000000e+00> : vector<8x256xf32>
    %228 = tpu.matmul %227, %225, %cst_216 {dimension_numbers = #tpu.dot_dimension_numbers<[1], [0], [0], [1], [0, 0, 1, 1], [], []>} : vector<8x8xbf16>, vector<8x256xbf16>, vector<8x256xf32> -> vector<8x256xf32>
    %229 = arith.addf %223, %228 : vector<8x256xf32>
    %c0_217 = arith.constant 0 : index
    %c0_218 = arith.constant 0 : index
    %c33 = arith.constant 33 : index
    %230 = vector.load %arg2[%c0_217, %c0_218, %c33] : memref<1x8x384xbf16, #tpu.memory_space<vmem>>, vector<1x8x256xbf16>
    %231 = vector.shape_cast %230 : vector<1x8x256xbf16> to vector<8x256xbf16>
    %c12_219 = arith.constant 12 : index
    %c0_220 = arith.constant 0 : index
    %c0_221 = arith.constant 0 : index
    %232 = vector.load %arg4[%c12_219, %c0_220, %c0_221] : memref<28x8x8xbf16, #tpu.memory_space<vmem>>, vector<1x8x8xbf16>
    %233 = vector.shape_cast %232 : vector<1x8x8xbf16> to vector<8x8xbf16>
    %cst_222 = arith.constant dense<0.000000e+00> : vector<8x256xf32>
    %234 = tpu.matmul %233, %231, %cst_222 {dimension_numbers = #tpu.dot_dimension_numbers<[1], [0], [0], [1], [0, 0, 1, 1], [], []>} : vector<8x8xbf16>, vector<8x256xbf16>, vector<8x256xf32> -> vector<8x256xf32>
    %235 = arith.addf %229, %234 : vector<8x256xf32>
    %c0_223 = arith.constant 0 : index
    %c0_224 = arith.constant 0 : index
    %c34 = arith.constant 34 : index
    %236 = vector.load %arg2[%c0_223, %c0_224, %c34] : memref<1x8x384xbf16, #tpu.memory_space<vmem>>, vector<1x8x256xbf16>
    %237 = vector.shape_cast %236 : vector<1x8x256xbf16> to vector<8x256xbf16>
    %c13_225 = arith.constant 13 : index
    %c0_226 = arith.constant 0 : index
    %c0_227 = arith.constant 0 : index
    %238 = vector.load %arg4[%c13_225, %c0_226, %c0_227] : memref<28x8x8xbf16, #tpu.memory_space<vmem>>, vector<1x8x8xbf16>
    %239 = vector.shape_cast %238 : vector<1x8x8xbf16> to vector<8x8xbf16>
    %cst_228 = arith.constant dense<0.000000e+00> : vector<8x256xf32>
    %240 = tpu.matmul %239, %237, %cst_228 {dimension_numbers = #tpu.dot_dimension_numbers<[1], [0], [0], [1], [0, 0, 1, 1], [], []>} : vector<8x8xbf16>, vector<8x256xbf16>, vector<8x256xf32> -> vector<8x256xf32>
    %241 = arith.addf %235, %240 : vector<8x256xf32>
    %c0_229 = arith.constant 0 : index
    %c0_230 = arith.constant 0 : index
    %c35 = arith.constant 35 : index
    %242 = vector.load %arg2[%c0_229, %c0_230, %c35] : memref<1x8x384xbf16, #tpu.memory_space<vmem>>, vector<1x8x256xbf16>
    %243 = vector.shape_cast %242 : vector<1x8x256xbf16> to vector<8x256xbf16>
    %c14_231 = arith.constant 14 : index
    %c0_232 = arith.constant 0 : index
    %c0_233 = arith.constant 0 : index
    %244 = vector.load %arg4[%c14_231, %c0_232, %c0_233] : memref<28x8x8xbf16, #tpu.memory_space<vmem>>, vector<1x8x8xbf16>
    %245 = vector.shape_cast %244 : vector<1x8x8xbf16> to vector<8x8xbf16>
    %cst_234 = arith.constant dense<0.000000e+00> : vector<8x256xf32>
    %246 = tpu.matmul %245, %243, %cst_234 {dimension_numbers = #tpu.dot_dimension_numbers<[1], [0], [0], [1], [0, 0, 1, 1], [], []>} : vector<8x8xbf16>, vector<8x256xbf16>, vector<8x256xf32> -> vector<8x256xf32>
    %247 = arith.addf %241, %246 : vector<8x256xf32>
    %c0_235 = arith.constant 0 : index
    %c0_236 = arith.constant 0 : index
    %c36 = arith.constant 36 : index
    %248 = vector.load %arg2[%c0_235, %c0_236, %c36] : memref<1x8x384xbf16, #tpu.memory_space<vmem>>, vector<1x8x256xbf16>
    %249 = vector.shape_cast %248 : vector<1x8x256xbf16> to vector<8x256xbf16>
    %c15_237 = arith.constant 15 : index
    %c0_238 = arith.constant 0 : index
    %c0_239 = arith.constant 0 : index
    %250 = vector.load %arg4[%c15_237, %c0_238, %c0_239] : memref<28x8x8xbf16, #tpu.memory_space<vmem>>, vector<1x8x8xbf16>
    %251 = vector.shape_cast %250 : vector<1x8x8xbf16> to vector<8x8xbf16>
    %cst_240 = arith.constant dense<0.000000e+00> : vector<8x256xf32>
    %252 = tpu.matmul %251, %249, %cst_240 {dimension_numbers = #tpu.dot_dimension_numbers<[1], [0], [0], [1], [0, 0, 1, 1], [], []>} : vector<8x8xbf16>, vector<8x256xbf16>, vector<8x256xf32> -> vector<8x256xf32>
    %253 = arith.addf %247, %252 : vector<8x256xf32>
    %c0_241 = arith.constant 0 : index
    %c0_242 = arith.constant 0 : index
    %c44 = arith.constant 44 : index
    %254 = vector.load %arg2[%c0_241, %c0_242, %c44] : memref<1x8x384xbf16, #tpu.memory_space<vmem>>, vector<1x8x256xbf16>
    %255 = vector.shape_cast %254 : vector<1x8x256xbf16> to vector<8x256xbf16>
    %c16_243 = arith.constant 16 : index
    %c0_244 = arith.constant 0 : index
    %c0_245 = arith.constant 0 : index
    %256 = vector.load %arg4[%c16_243, %c0_244, %c0_245] : memref<28x8x8xbf16, #tpu.memory_space<vmem>>, vector<1x8x8xbf16>
    %257 = vector.shape_cast %256 : vector<1x8x8xbf16> to vector<8x8xbf16>
    %cst_246 = arith.constant dense<0.000000e+00> : vector<8x256xf32>
    %258 = tpu.matmul %257, %255, %cst_246 {dimension_numbers = #tpu.dot_dimension_numbers<[1], [0], [0], [1], [0, 0, 1, 1], [], []>} : vector<8x8xbf16>, vector<8x256xbf16>, vector<8x256xf32> -> vector<8x256xf32>
    %259 = arith.addf %253, %258 : vector<8x256xf32>
    %c0_247 = arith.constant 0 : index
    %c0_248 = arith.constant 0 : index
    %c45_249 = arith.constant 45 : index
    %260 = vector.load %arg2[%c0_247, %c0_248, %c45_249] : memref<1x8x384xbf16, #tpu.memory_space<vmem>>, vector<1x8x256xbf16>
    %261 = vector.shape_cast %260 : vector<1x8x256xbf16> to vector<8x256xbf16>
    %c17_250 = arith.constant 17 : index
    %c0_251 = arith.constant 0 : index
    %c0_252 = arith.constant 0 : index
    %262 = vector.load %arg4[%c17_250, %c0_251, %c0_252] : memref<28x8x8xbf16, #tpu.memory_space<vmem>>, vector<1x8x8xbf16>
    %263 = vector.shape_cast %262 : vector<1x8x8xbf16> to vector<8x8xbf16>
    %cst_253 = arith.constant dense<0.000000e+00> : vector<8x256xf32>
    %264 = tpu.matmul %263, %261, %cst_253 {dimension_numbers = #tpu.dot_dimension_numbers<[1], [0], [0], [1], [0, 0, 1, 1], [], []>} : vector<8x8xbf16>, vector<8x256xbf16>, vector<8x256xf32> -> vector<8x256xf32>
    %265 = arith.addf %259, %264 : vector<8x256xf32>
    %c0_254 = arith.constant 0 : index
    %c0_255 = arith.constant 0 : index
    %c46_256 = arith.constant 46 : index
    %266 = vector.load %arg2[%c0_254, %c0_255, %c46_256] : memref<1x8x384xbf16, #tpu.memory_space<vmem>>, vector<1x8x256xbf16>
    %267 = vector.shape_cast %266 : vector<1x8x256xbf16> to vector<8x256xbf16>
    %c18_257 = arith.constant 18 : index
    %c0_258 = arith.constant 0 : index
    %c0_259 = arith.constant 0 : index
    %268 = vector.load %arg4[%c18_257, %c0_258, %c0_259] : memref<28x8x8xbf16, #tpu.memory_space<vmem>>, vector<1x8x8xbf16>
    %269 = vector.shape_cast %268 : vector<1x8x8xbf16> to vector<8x8xbf16>
    %cst_260 = arith.constant dense<0.000000e+00> : vector<8x256xf32>
    %270 = tpu.matmul %269, %267, %cst_260 {dimension_numbers = #tpu.dot_dimension_numbers<[1], [0], [0], [1], [0, 0, 1, 1], [], []>} : vector<8x8xbf16>, vector<8x256xbf16>, vector<8x256xf32> -> vector<8x256xf32>
    %271 = arith.addf %265, %270 : vector<8x256xf32>
    %c0_261 = arith.constant 0 : index
    %c0_262 = arith.constant 0 : index
    %c47_263 = arith.constant 47 : index
    %272 = vector.load %arg2[%c0_261, %c0_262, %c47_263] : memref<1x8x384xbf16, #tpu.memory_space<vmem>>, vector<1x8x256xbf16>
    %273 = vector.shape_cast %272 : vector<1x8x256xbf16> to vector<8x256xbf16>
    %c19_264 = arith.constant 19 : index
    %c0_265 = arith.constant 0 : index
    %c0_266 = arith.constant 0 : index
    %274 = vector.load %arg4[%c19_264, %c0_265, %c0_266] : memref<28x8x8xbf16, #tpu.memory_space<vmem>>, vector<1x8x8xbf16>
    %275 = vector.shape_cast %274 : vector<1x8x8xbf16> to vector<8x8xbf16>
    %cst_267 = arith.constant dense<0.000000e+00> : vector<8x256xf32>
    %276 = tpu.matmul %275, %273, %cst_267 {dimension_numbers = #tpu.dot_dimension_numbers<[1], [0], [0], [1], [0, 0, 1, 1], [], []>} : vector<8x8xbf16>, vector<8x256xbf16>, vector<8x256xf32> -> vector<8x256xf32>
    %277 = arith.addf %271, %276 : vector<8x256xf32>
    %c0_268 = arith.constant 0 : index
    %c0_269 = arith.constant 0 : index
    %c55 = arith.constant 55 : index
    %278 = vector.load %arg2[%c0_268, %c0_269, %c55] : memref<1x8x384xbf16, #tpu.memory_space<vmem>>, vector<1x8x256xbf16>
    %279 = vector.shape_cast %278 : vector<1x8x256xbf16> to vector<8x256xbf16>
    %c20_270 = arith.constant 20 : index
    %c0_271 = arith.constant 0 : index
    %c0_272 = arith.constant 0 : index
    %280 = vector.load %arg4[%c20_270, %c0_271, %c0_272] : memref<28x8x8xbf16, #tpu.memory_space<vmem>>, vector<1x8x8xbf16>
    %281 = vector.shape_cast %280 : vector<1x8x8xbf16> to vector<8x8xbf16>
    %cst_273 = arith.constant dense<0.000000e+00> : vector<8x256xf32>
    %282 = tpu.matmul %281, %279, %cst_273 {dimension_numbers = #tpu.dot_dimension_numbers<[1], [0], [0], [1], [0, 0, 1, 1], [], []>} : vector<8x8xbf16>, vector<8x256xbf16>, vector<8x256xf32> -> vector<8x256xf32>
    %283 = arith.addf %277, %282 : vector<8x256xf32>
    %c0_274 = arith.constant 0 : index
    %c0_275 = arith.constant 0 : index
    %c56 = arith.constant 56 : index
    %284 = vector.load %arg2[%c0_274, %c0_275, %c56] : memref<1x8x384xbf16, #tpu.memory_space<vmem>>, vector<1x8x256xbf16>
    %285 = vector.shape_cast %284 : vector<1x8x256xbf16> to vector<8x256xbf16>
    %c21_276 = arith.constant 21 : index
    %c0_277 = arith.constant 0 : index
    %c0_278 = arith.constant 0 : index
    %286 = vector.load %arg4[%c21_276, %c0_277, %c0_278] : memref<28x8x8xbf16, #tpu.memory_space<vmem>>, vector<1x8x8xbf16>
    %287 = vector.shape_cast %286 : vector<1x8x8xbf16> to vector<8x8xbf16>
    %cst_279 = arith.constant dense<0.000000e+00> : vector<8x256xf32>
    %288 = tpu.matmul %287, %285, %cst_279 {dimension_numbers = #tpu.dot_dimension_numbers<[1], [0], [0], [1], [0, 0, 1, 1], [], []>} : vector<8x8xbf16>, vector<8x256xbf16>, vector<8x256xf32> -> vector<8x256xf32>
    %289 = arith.addf %283, %288 : vector<8x256xf32>
    %c0_280 = arith.constant 0 : index
    %c0_281 = arith.constant 0 : index
    %c57 = arith.constant 57 : index
    %290 = vector.load %arg2[%c0_280, %c0_281, %c57] : memref<1x8x384xbf16, #tpu.memory_space<vmem>>, vector<1x8x256xbf16>
    %291 = vector.shape_cast %290 : vector<1x8x256xbf16> to vector<8x256xbf16>
    %c22_282 = arith.constant 22 : index
    %c0_283 = arith.constant 0 : index
    %c0_284 = arith.constant 0 : index
    %292 = vector.load %arg4[%c22_282, %c0_283, %c0_284] : memref<28x8x8xbf16, #tpu.memory_space<vmem>>, vector<1x8x8xbf16>
    %293 = vector.shape_cast %292 : vector<1x8x8xbf16> to vector<8x8xbf16>
    %cst_285 = arith.constant dense<0.000000e+00> : vector<8x256xf32>
    %294 = tpu.matmul %293, %291, %cst_285 {dimension_numbers = #tpu.dot_dimension_numbers<[1], [0], [0], [1], [0, 0, 1, 1], [], []>} : vector<8x8xbf16>, vector<8x256xbf16>, vector<8x256xf32> -> vector<8x256xf32>
    %295 = arith.addf %289, %294 : vector<8x256xf32>
    %c0_286 = arith.constant 0 : index
    %c0_287 = arith.constant 0 : index
    %c58 = arith.constant 58 : index
    %296 = vector.load %arg2[%c0_286, %c0_287, %c58] : memref<1x8x384xbf16, #tpu.memory_space<vmem>>, vector<1x8x256xbf16>
    %297 = vector.shape_cast %296 : vector<1x8x256xbf16> to vector<8x256xbf16>
    %c23_288 = arith.constant 23 : index
    %c0_289 = arith.constant 0 : index
    %c0_290 = arith.constant 0 : index
    %298 = vector.load %arg4[%c23_288, %c0_289, %c0_290] : memref<28x8x8xbf16, #tpu.memory_space<vmem>>, vector<1x8x8xbf16>
    %299 = vector.shape_cast %298 : vector<1x8x8xbf16> to vector<8x8xbf16>
    %cst_291 = arith.constant dense<0.000000e+00> : vector<8x256xf32>
    %300 = tpu.matmul %299, %297, %cst_291 {dimension_numbers = #tpu.dot_dimension_numbers<[1], [0], [0], [1], [0, 0, 1, 1], [], []>} : vector<8x8xbf16>, vector<8x256xbf16>, vector<8x256xf32> -> vector<8x256xf32>
    %301 = arith.addf %295, %300 : vector<8x256xf32>
    %c0_292 = arith.constant 0 : index
    %c0_293 = arith.constant 0 : index
    %c66 = arith.constant 66 : index
    %302 = vector.load %arg2[%c0_292, %c0_293, %c66] : memref<1x8x384xbf16, #tpu.memory_space<vmem>>, vector<1x8x256xbf16>
    %303 = vector.shape_cast %302 : vector<1x8x256xbf16> to vector<8x256xbf16>
    %c24_294 = arith.constant 24 : index
    %c0_295 = arith.constant 0 : index
    %c0_296 = arith.constant 0 : index
    %304 = vector.load %arg4[%c24_294, %c0_295, %c0_296] : memref<28x8x8xbf16, #tpu.memory_space<vmem>>, vector<1x8x8xbf16>
    %305 = vector.shape_cast %304 : vector<1x8x8xbf16> to vector<8x8xbf16>
    %cst_297 = arith.constant dense<0.000000e+00> : vector<8x256xf32>
    %306 = tpu.matmul %305, %303, %cst_297 {dimension_numbers = #tpu.dot_dimension_numbers<[1], [0], [0], [1], [0, 0, 1, 1], [], []>} : vector<8x8xbf16>, vector<8x256xbf16>, vector<8x256xf32> -> vector<8x256xf32>
    %307 = arith.addf %301, %306 : vector<8x256xf32>
    %c0_298 = arith.constant 0 : index
    %c0_299 = arith.constant 0 : index
    %c67_300 = arith.constant 67 : index
    %308 = vector.load %arg2[%c0_298, %c0_299, %c67_300] : memref<1x8x384xbf16, #tpu.memory_space<vmem>>, vector<1x8x256xbf16>
    %309 = vector.shape_cast %308 : vector<1x8x256xbf16> to vector<8x256xbf16>
    %c25_301 = arith.constant 25 : index
    %c0_302 = arith.constant 0 : index
    %c0_303 = arith.constant 0 : index
    %310 = vector.load %arg4[%c25_301, %c0_302, %c0_303] : memref<28x8x8xbf16, #tpu.memory_space<vmem>>, vector<1x8x8xbf16>
    %311 = vector.shape_cast %310 : vector<1x8x8xbf16> to vector<8x8xbf16>
    %cst_304 = arith.constant dense<0.000000e+00> : vector<8x256xf32>
    %312 = tpu.matmul %311, %309, %cst_304 {dimension_numbers = #tpu.dot_dimension_numbers<[1], [0], [0], [1], [0, 0, 1, 1], [], []>} : vector<8x8xbf16>, vector<8x256xbf16>, vector<8x256xf32> -> vector<8x256xf32>
    %313 = arith.addf %307, %312 : vector<8x256xf32>
    %c0_305 = arith.constant 0 : index
    %c0_306 = arith.constant 0 : index
    %c68_307 = arith.constant 68 : index
    %314 = vector.load %arg2[%c0_305, %c0_306, %c68_307] : memref<1x8x384xbf16, #tpu.memory_space<vmem>>, vector<1x8x256xbf16>
    %315 = vector.shape_cast %314 : vector<1x8x256xbf16> to vector<8x256xbf16>
    %c26_308 = arith.constant 26 : index
    %c0_309 = arith.constant 0 : index
    %c0_310 = arith.constant 0 : index
    %316 = vector.load %arg4[%c26_308, %c0_309, %c0_310] : memref<28x8x8xbf16, #tpu.memory_space<vmem>>, vector<1x8x8xbf16>
    %317 = vector.shape_cast %316 : vector<1x8x8xbf16> to vector<8x8xbf16>
    %cst_311 = arith.constant dense<0.000000e+00> : vector<8x256xf32>
    %318 = tpu.matmul %317, %315, %cst_311 {dimension_numbers = #tpu.dot_dimension_numbers<[1], [0], [0], [1], [0, 0, 1, 1], [], []>} : vector<8x8xbf16>, vector<8x256xbf16>, vector<8x256xf32> -> vector<8x256xf32>
    %319 = arith.addf %313, %318 : vector<8x256xf32>
    %c0_312 = arith.constant 0 : index
    %c0_313 = arith.constant 0 : index
    %c69_314 = arith.constant 69 : index
    %320 = vector.load %arg2[%c0_312, %c0_313, %c69_314] : memref<1x8x384xbf16, #tpu.memory_space<vmem>>, vector<1x8x256xbf16>
    %321 = vector.shape_cast %320 : vector<1x8x256xbf16> to vector<8x256xbf16>
    %c27_315 = arith.constant 27 : index
    %c0_316 = arith.constant 0 : index
    %c0_317 = arith.constant 0 : index
    %322 = vector.load %arg4[%c27_315, %c0_316, %c0_317] : memref<28x8x8xbf16, #tpu.memory_space<vmem>>, vector<1x8x8xbf16>
    %323 = vector.shape_cast %322 : vector<1x8x8xbf16> to vector<8x8xbf16>
    %cst_318 = arith.constant dense<0.000000e+00> : vector<8x256xf32>
    %324 = tpu.matmul %323, %321, %cst_318 {dimension_numbers = #tpu.dot_dimension_numbers<[1], [0], [0], [1], [0, 0, 1, 1], [], []>} : vector<8x8xbf16>, vector<8x256xbf16>, vector<8x256xf32> -> vector<8x256xf32>
    %325 = arith.addf %319, %324 : vector<8x256xf32>
    %c0_319 = arith.constant 0 : index
    %c0_320 = arith.constant 0 : index
    %326 = vector.load %arg6[%c0_319, %c0_320] : memref<8x1xf32, #tpu.memory_space<vmem>>, vector<8x1xf32>
    %327 = vector.broadcast %326 : vector<8x1xf32> to vector<8x256xf32>
    %328 = arith.addf %325, %327 : vector<8x256xf32>
    %c0_321 = arith.constant 0 : index
    %c0_322 = arith.constant 0 : index
    %c0_323 = arith.constant 0 : index
    %329 = vector.load %arg8[%c0_321, %c0_322, %c0_323] : memref<1x8x256xf32, #tpu.memory_space<vmem>>, vector<1x8x256xf32>
    %330 = vector.shape_cast %329 : vector<1x8x256xf32> to vector<8x256xf32>
    %331 = vector.shape_cast %328 : vector<8x256xf32> to vector<1x8x256xf32>
    tpu.vector_store %arg8[%c0_321, %c0_322, %c0_323], %331 {strides = array<i32>} : memref<1x8x256xf32, #tpu.memory_space<vmem>>, vector<1x8x256xf32>,
    return
  }
  func.func @transform_0(%arg0: i32) -> (i32, i32, i32) {
    %c0_i32 = arith.constant 0 : i32
    %c0_i32_0 = arith.constant 0 : i32
    %c0_i32_1 = arith.constant 0 : i32
    return %arg0, %c0_i32, %c0_i32_0 : i32, i32, i32
  }
  func.func @transform_1(%arg0: i32) -> (i32, i32, i32) {
    %c0_i32 = arith.constant 0 : i32
    %c0_i32_0 = arith.constant 0 : i32
    %c0_i32_1 = arith.constant 0 : i32
    return %arg0, %c0_i32, %c0_i32_0 : i32, i32, i32
  }
  func.func @transform_2(%arg0: i32) -> (i32, i32, i32) {
    %c0_i32 = arith.constant 0 : i32
    %c0_i32_0 = arith.constant 0 : i32
    %c0_i32_1 = arith.constant 0 : i32
    %c0_i32_2 = arith.constant 0 : i32
    return %c0_i32, %c0_i32_0, %c0_i32_1 : i32, i32, i32
  }
  func.func @transform_3(%arg0: i32) -> (i32, i32, i32) {
    %c0_i32 = arith.constant 0 : i32
    %c0_i32_0 = arith.constant 0 : i32
    %c0_i32_1 = arith.constant 0 : i32
    %c0_i32_2 = arith.constant 0 : i32
    return %c0_i32, %c0_i32_0, %c0_i32_1 : i32, i32, i32
  }
  func.func @transform_4(%arg0: i32) -> (i32, i32) {
    %c0_i32 = arith.constant 0 : i32
    %c0_i32_0 = arith.constant 0 : i32
    %c0_i32_1 = arith.constant 0 : i32
    return %c0_i32, %c0_i32_0 : i32, i32
  }
  func.func @transform_5(%arg0: i32) -> (i32, i32) {
    %c0_i32 = arith.constant 0 : i32
    %c0_i32_0 = arith.constant 0 : i32
    %c0_i32_1 = arith.constant 0 : i32
    return %c0_i32, %c0_i32_0 : i32, i32
  }
  func.func @transform_6(%arg0: i32) -> (i32, i32, i32) {
    %c0_i32 = arith.constant 0 : i32
    %c0_i32_0 = arith.constant 0 : i32
    %c0_i32_1 = arith.constant 0 : i32
    return %arg0, %c0_i32, %c0_i32_0 : i32, i32, i32
  }
  func.func @transform_7(%arg0: i32) -> (i32, i32, i32) {
    %c0_i32 = arith.constant 0 : i32
    %c0_i32_0 = arith.constant 0 : i32
    %c0_i32_1 = arith.constant 0 : i32
    return %arg0, %c0_i32, %c0_i32_0 : i32, i32, i32
  }
}

</mosaic_0001>

<bundles_post_ra>
// kernel: model_forward.1
= control target key start
LH: loop header
LB: loop body
LE: loop exit
PB: predicated region body
PF: predicated region fallthrough
CT: control target
= control target key end

     0   :  { %s5897_s24 = smov 0   ;;  %s6903_s0 = inlined_call_operand.vmem [shape: bf16[2,8,512], index: 0, kind: input, shape index: {}]   ;;  %s6904_s1 = inlined_call_operand.vmem [shape: bf16[2,8,384], index: 1, kind: input, shape index: {}]   ;;  %s6905_s2 = inlined_call_operand.vmem [shape: bf16[25,16,8], index: 2, kind: input, shape index: {}]   ;;  %s6906_s3 = inlined_call_operand.vmem [shape: bf16[28,8,8], index: 3, kind: input, shape index: {}]   ;;  %s6907_s4 = inlined_call_operand.vmem [shape: f32[16,1], index: 4, kind: input, shape index: {}]   ;;  %s6908_s5 = inlined_call_operand.vmem [shape: f32[8,1], index: 5, kind: input, shape index: {}]   ;;  %s6909_s6 = inlined_call_operand.vmem [shape: f32[2,16,384], index: 6, kind: output, shape index: {0}]   ;;  %s6910_s7 = inlined_call_operand.vmem [shape: f32[2,8,256], index: 7, kind: output, shape index: {1}]  }
   0x1 LB: > { %s5255_s25 = sadd.s32 4294967295, %s5809_s24   ;;  %p5259_p0 = scmp.ge.s32.totalorder %s5809_s24, 1  ;;  %s5809_s24 = sphi %s5897_s24, %s18_s24  }
   0x2   : > { %p250_p1 = scmp.lt.s32.totalorder %s5809_s24, 3 }
   0x4   : > { %p251_p2 = pnand %p5259_p0, %p250_p1 }
   0x5   : > { %p292_p3 = scmp.lt.s32.totalorder (!%p251_p2), %s5255_s25, 1  ;;  %s5814_s11 = smov (!%p251_p2), 104  }
   0x6   : > { %254 = sbr.rel (%p251_p2) target bundleno = 698 (0x2ba), region = 44  ;;  %s5815_s12 = smov (!%p251_p2), 105  }
   0x7   : > { %s5816_s13 = smov (!%p251_p2), 103   ;;  %s5817_s14 = smov (!%p251_p2), 102  }
   0x8   : > { %s5818_s15 = smov (!%p251_p2), 101   ;;  %s5819_s16 = smov (!%p251_p2), 83  }
   0x9   : > { %s5820_s17 = smov (!%p251_p2), 82   ;;  %s5821_s18 = smov (!%p251_p2), 81  }
   0xa   : > { %s5822_s19 = smov (!%p251_p2), 80   ;;  %s5823_s20 = smov (!%p251_p2), 79  }
   0xb   : > { %v5811_v0 = vmov 0.0   ;;  %s6912_s25 = smov (!%p292_p3, %s5255_s25), 1  ;;  %v5812_v1 = vmov 0   ;;  %vm5813_vm0 = vmmov 0   ;;  %s5824_s21 = smov 61   ;;  %vm343_vm1 = vcmask 850944  }
   0xc   : > { %5560 = vmatprep.subr.bf16.mxu1 %v5811_v0  ;;  %s5508_s26 = sshll.u32 %s6912_s25, 4  ;;  %s5710_s27 = smul.u32 12, %s6912_s25  ;;  %393 = vmatprep.mubr.bf16.mxu0 %v5812_v1  ;;  %vm351_vm2 = vcmask 1043456   ;;  %v5775_v17 = vld [vmem:[%s6905_s2 + $0x8] sm:$0xff]   ;;  %vm347_vm3 = vcmask 64512   ;;  %vm458_vm4 = vcmask 859136  }
   0xd   : > { %s296_s30 = scalar_lea.vmem %s6903_s0, %s5508_s26  ;;  %5562 = vmatprep.mubr.msk.bf16.mxu1 %vm5813_vm0, %v5811_v0  ;;  %5766 = vset.pattern.permute.xlu1 %v5812_v1  ;;  %s5825_s22 = smov 60   ;;  %v5776_v27 = vld [vmem:[%s6905_s2] sm:$0xff]   ;;  %vm574_vm5 = vcmask 842752   ;;  %v5777_v37 = vld [vmem:[%s6905_s2 + $0x10] sm:$0xff]   ;;  %vm696_vm6 = vcmask 834560   ;;  %v5778_v47 = vld [vmem:[%s6905_s2 + $0x18] sm:$0xff]  }
   0xe   : > { %s5921_s10 = scalar_lea.vmem %s6904_s1, %s5710_s27  ;;  %v314_v2 = vld [vmem:[%s296_s30 + $0x8] sm:$0xff]  ;;  %v313_v3 = vld [vmem:[%s296_s30] sm:$0xff]  ;;  %5767 = vset.pattern.permute.xlu0 %v5812_v1  ;;  %s5826_s23 = smov 59   ;;  %vm818_vm7 = vcmask 826368   ;;  %vm940_vm8 = vcmask 678912   ;;  %vm1062_vm9 = vcmask 670720  }
   0xf   : > { %v5925_v4 = vcombine.low %v314_v2, %v314_v2  ;;  %v5927_v5 = vcombine.low %v313_v3, %v313_v3  ;;  %v5933_v6 = vcombine.high %v314_v2, %v314_v2  ;;  %v5935_v7 = vcombine.high %v313_v3, %v313_v3  ;;  %s5827_s27 = smov 58   ;;  %s5828_s28 = smov 57   ;;  %v5779_v57 = vld [vmem:[%s6905_s2 + $0x20] sm:$0xff]  }
  0x10   : > { %s5829_s29 = smov 39   ;;  %s5830_s9 = smov 38   ;;  %vm1184_vm10 = vcmask 662528   ;;  %vm1306_vm11 = vcmask 654336   ;;  %vm1428_vm12 = vcmask 646144   ;;  %vm1550_vm13 = vcmask 498688  }
  0x11   : > { %339 = vrot.lane.b32.xlu1 %v5925_v4, %s5814_s11  ;;  %335 = vrot.lane.b32.xlu0 %v5927_v5, %s5814_s11  ;;  %s5833_s8 = smov 35   ;;  %s5836_s30 = smov 15   ;;  %vm1672_vm14 = vcmask 490496   ;;  %vm1794_vm15 = vcmask 482304  }
  0x15   : > { %341 = vrot.lane.b32.xlu1 %v5933_v6, %s5814_s11  ;;  %337 = vrot.lane.b32.xlu0 %v5935_v7, %s5814_s11 }
  0x19   : > { %452 = vrot.lane.b32.xlu1 %v5935_v7, %s5815_s12  ;;  %450 = vrot.lane.b32.xlu0 %v5927_v5, %s5815_s12 }
  0x1d   : > { %456 = vrot.lane.b32.xlu1 %v5933_v6, %s5815_s12  ;;  %454 = vrot.lane.b32.xlu0 %v5925_v4, %s5815_s12 }
  0x21   : > { %568 = vrot.lane.b32.xlu1 %v5935_v7, %s5816_s13  ;;  %566 = vrot.lane.b32.xlu0 %v5927_v5, %s5816_s13 }
  0x25   : > { %572 = vrot.lane.b32.xlu1 %v5933_v6, %s5816_s13  ;;  %570 = vrot.lane.b32.xlu0 %v5925_v4, %s5816_s13 }
  0x29   : > { %690 = vrot.lane.b32.xlu1 %v5935_v7, %s5817_s14  ;;  %688 = vrot.lane.b32.xlu0 %v5927_v5, %s5817_s14 }
  0x2d   : > { %694 = vrot.lane.b32.xlu1 %v5933_v6, %s5817_s14  ;;  %692 = vrot.lane.b32.xlu0 %v5925_v4, %s5817_s14  ;;  %s5837_s14 = smov 14  }
  0x31   : > { %812 = vrot.lane.b32.xlu1 %v5935_v7, %s5818_s15  ;;  %810 = vrot.lane.b32.xlu0 %v5927_v5, %s5818_s15 }
  0x35   : > { %816 = vrot.lane.b32.xlu1 %v5933_v6, %s5818_s15  ;;  %814 = vrot.lane.b32.xlu0 %v5925_v4, %s5818_s15  ;;  %s5834_s15 = smov 17  }
  0x39   : > { %934 = vrot.lane.b32.xlu1 %v5935_v7, %s5819_s16  ;;  %932 = vrot.lane.b32.xlu0 %v5927_v5, %s5819_s16 }
  0x3d   : > { %938 = vrot.lane.b32.xlu1 %v5933_v6, %s5819_s16  ;;  %936 = vrot.lane.b32.xlu0 %v5925_v4, %s5819_s16 }
  0x41   : > { %1056 = vrot.lane.b32.xlu1 %v5935_v7, %s5820_s17  ;;  %1054 = vrot.lane.b32.xlu0 %v5927_v5, %s5820_s17 }
  0x45   : > { %1060 = vrot.lane.b32.xlu1 %v5933_v6, %s5820_s17  ;;  %1058 = vrot.lane.b32.xlu0 %v5925_v4, %s5820_s17 }
  0x49   : > { %1178 = vrot.lane.b32.xlu1 %v5935_v7, %s5821_s18  ;;  %1176 = vrot.lane.b32.xlu0 %v5927_v5, %s5821_s18 }
  0x4d   : > { %1182 = vrot.lane.b32.xlu1 %v5933_v6, %s5821_s18  ;;  %1180 = vrot.lane.b32.xlu0 %v5925_v4, %s5821_s18 }
  0x51   : > { %1300 = vrot.lane.b32.xlu1 %v5935_v7, %s5822_s19  ;;  %1298 = vrot.lane.b32.xlu0 %v5927_v5, %s5822_s19 }
  0x55   : > { %1304 = vrot.lane.b32.xlu1 %v5933_v6, %s5822_s19  ;;  %1302 = vrot.lane.b32.xlu0 %v5925_v4, %s5822_s19  ;;  %s5831_s19 = smov 37  }
  0x59   : > { %1422 = vrot.lane.b32.xlu1 %v5935_v7, %s5823_s20  ;;  %1420 = vrot.lane.b32.xlu0 %v5927_v5, %s5823_s20 }
  0x5d   : > { %1426 = vrot.lane.b32.xlu1 %v5933_v6, %s5823_s20  ;;  %1424 = vrot.lane.b32.xlu0 %v5925_v4, %s5823_s20  ;;  %s5838_s20 = smov 13  }
  0x61   : > { %1544 = vrot.lane.b32.xlu1 %v5935_v7, %s5824_s21  ;;  %1542 = vrot.lane.b32.xlu0 %v5927_v5, %s5824_s21 }
  0x65   : > { %1548 = vrot.lane.b32.xlu1 %v5933_v6, %s5824_s21  ;;  %1546 = vrot.lane.b32.xlu0 %v5925_v4, %s5824_s21 }
  0x69   : > { %1666 = vrot.lane.b32.xlu1 %v5935_v7, %s5825_s22  ;;  %1664 = vrot.lane.b32.xlu0 %v5927_v5, %s5825_s22 }
  0x6d   : > { %1670 = vrot.lane.b32.xlu1 %v5933_v6, %s5825_s22  ;;  %1668 = vrot.lane.b32.xlu0 %v5925_v4, %s5825_s22 }
  0x71   : > { %1788 = vrot.lane.b32.xlu1 %v5935_v7, %s5826_s23  ;;  %1786 = vrot.lane.b32.xlu0 %v5927_v5, %s5826_s23 }
  0x75   : > { %1792 = vrot.lane.b32.xlu1 %v5933_v6, %s5826_s23  ;;  %1790 = vrot.lane.b32.xlu0 %v5925_v4, %s5826_s23 }
  0x79   : > { %1910 = vrot.lane.b32.xlu1 %v5935_v7, %s5827_s27  ;;  %1908 = vrot.lane.b32.xlu0 %v5927_v5, %s5827_s27 }
  0x7d   : > { %1914 = vrot.lane.b32.xlu1 %v5933_v6, %s5827_s27  ;;  %1912 = vrot.lane.b32.xlu0 %v5925_v4, %s5827_s27  ;;  %s5835_s27 = smov 16  }
  0x81   : > { %2032 = vrot.lane.b32.xlu1 %v5935_v7, %s5828_s28  ;;  %2030 = vrot.lane.b32.xlu0 %v5927_v5, %s5828_s28 }
  0x83   : > { %v340_v8 = vpop.permute.xlu1 %339  ;;  %v336_v9 = vpop.permute.xlu0 %335 }
  0x85   : > { %2036 = vrot.lane.b32.xlu1 %v5933_v6, %s5828_s28  ;;  %2034 = vrot.lane.b32.xlu0 %v5925_v4, %s5828_s28  ;;  %s5832_s28 = smov 36  }
  0x87   : > { %v342_v10 = vpop.permute.xlu1 %341  ;;  %v338_v11 = vpop.permute.xlu0 %337 }
  0x88   : > { %v345_v12 = vsel %vm343_vm1, %v338_v11, %v340_v8  ;;  %v344_v13 = vsel %vm343_vm1, %v336_v9, %v338_v11  ;;  %v346_v14 = vsel %vm343_vm1, %v340_v8, %v342_v10  ;;  %v5780_v9 = vld [vmem:[%s6905_s2 + $0x28] sm:$0xff]  }
  0x89   : > { %2154 = vrot.lane.b32.xlu1 %v5935_v7, %s5829_s29  ;;  %2152 = vrot.lane.b32.xlu0 %v5927_v5, %s5829_s29  ;;  %v353_v15 = vsel %vm351_vm2, %v344_v13, 0  ;;  %v359_v16 = vsel %vm351_vm2, %v346_v14, 0 }
  0x8a   : > { %5273 = vmatprep.subr.msk.bf16.mxu0 %vm351_vm2, %v345_v12  ;;  %5561 = vmatpush3.bf16.msra.mxu1 %v359_v16 }
  0x8b   : > { %376 = vmatpush1.bf16.msra.mxu0 %v353_v15  ;;  %v453_v18 = vpop.permute.xlu1 %452  ;;  %v451_v19 = vpop.permute.xlu0 %450  ;;  %5566 = vmatprep.subr.bf16.mxu1 %v5811_v0 }
  0x8c   : > { %v459_v20 = vsel %vm458_vm4, %v451_v19, %v453_v18  ;;  %v5781_v19 = vld [vmem:[%s6905_s2 + $0x30] sm:$0xff]  }
  0x8d   : > { %5563 = vmatmul.mubr.msk.bf16.vlgmr.msra.gmra.mxu1 %vm347_vm3, %v5775_v17  ;;  %2158 = vrot.lane.b32.xlu1 %v5933_v6, %s5829_s29  ;;  %v466_v25 = vsel %vm351_vm2, %v459_v20, 0 }
  0x8e   : > { %2156 = vrot.lane.b32.xlu0 %v5925_v4, %s5829_s29  ;;  %5274 = vmatmul.mubr.msk.bf16.vlgmr.msra.gmra.mxu0 %vm347_vm3, %v5775_v17  ;;  %s5839_s29 = smov 127  }
  0x8f   : > { %v457_v21 = vpop.permute.xlu1 %456  ;;  %v455_v22 = vpop.permute.xlu0 %454  ;;  %506 = vmatprep.mubr.bf16.mxu0 %v5812_v1  ;;  %5568 = vmatprep.mubr.msk.bf16.mxu1 %vm5813_vm0, %v5811_v0 }
  0x90   : > { %v461_v23 = vsel %vm458_vm4, %v455_v22, %v457_v21  ;;  %v460_v24 = vsel %vm458_vm4, %v453_v18, %v455_v22 }
  0x91   : > { %2276 = vrot.lane.b32.xlu1 %v5935_v7, %s5830_s9  ;;  %5277 = vmatprep.subr.msk.bf16.mxu0 %vm351_vm2, %v460_v24  ;;  %v472_v26 = vsel %vm351_vm2, %v461_v23, 0 }
  0x92   : > { %2274 = vrot.lane.b32.xlu0 %v5927_v5, %s5830_s9  ;;  %489 = vmatpush1.bf16.msra.mxu0 %v466_v25 }
  0x93   : > { %5567 = vmatpush3.bf16.msra.mxu1 %v472_v26  ;;  %v569_v28 = vpop.permute.xlu1 %568  ;;  %v567_v29 = vpop.permute.xlu0 %566 }
  0x94   : > { %5572 = vmatprep.subr.bf16.mxu1 %v5811_v0  ;;  %v575_v30 = vsel %vm574_vm5, %v567_v29, %v569_v28  ;;  %v5782_v29 = vld [vmem:[%s6905_s2 + $0x38] sm:$0xff]  }
  0x95   : > { %2280 = vrot.lane.b32.xlu1 %v5933_v6, %s5830_s9  ;;  %v582_v35 = vsel %vm351_vm2, %v575_v30, 0 }
  0x96   : > { %2278 = vrot.lane.b32.xlu0 %v5925_v4, %s5830_s9  ;;  %5278 = vmatmul.mubr.msk.bf16.vlgmr.msra.gmra.mxu0 %vm347_vm3, %v5776_v27  ;;  %s5840_s9 = smov 126  }
  0x97   : > { %5569 = vmatmul.mubr.msk.bf16.vlgmr.msra.gmra.mxu1 %vm347_vm3, %v5776_v27  ;;  %v573_v31 = vpop.permute.xlu1 %572  ;;  %v571_v32 = vpop.permute.xlu0 %570  ;;  %622 = vmatprep.mubr.bf16.mxu0 %v5812_v1 }
  0x98   : > { %v577_v33 = vsel %vm574_vm5, %v571_v32, %v573_v31  ;;  %v576_v34 = vsel %vm574_vm5, %v569_v28, %v571_v32  ;;  %5574 = vmatprep.mubr.msk.bf16.mxu1 %vm5813_vm0, %v5811_v0 }
  0x99   : > { %2398 = vrot.lane.b32.xlu1 %v5935_v7, %s5831_s19  ;;  %5283 = vmatprep.subr.msk.bf16.mxu0 %vm351_vm2, %v576_v34  ;;  %v588_v36 = vsel %vm351_vm2, %v577_v33, 0 }
  0x9a   : > { %2396 = vrot.lane.b32.xlu0 %v5927_v5, %s5831_s19  ;;  %605 = vmatpush1.bf16.msra.mxu0 %v582_v35 }
  0x9b   : > { %5573 = vmatpush3.bf16.msra.mxu1 %v588_v36  ;;  %v691_v38 = vpop.permute.xlu1 %690  ;;  %v689_v39 = vpop.permute.xlu0 %688 }
  0x9c   : > { %5578 = vmatprep.subr.bf16.mxu1 %v5811_v0  ;;  %v697_v40 = vsel %vm696_vm6, %v689_v39, %v691_v38  ;;  %v5783_v39 = vld [vmem:[%s6905_s2 + $0x40] sm:$0xff]  }
  0x9d   : > { %2402 = vrot.lane.b32.xlu1 %v5933_v6, %s5831_s19  ;;  %v704_v45 = vsel %vm351_vm2, %v697_v40, 0 }
  0x9e   : > { %2400 = vrot.lane.b32.xlu0 %v5925_v4, %s5831_s19  ;;  %5284 = vmatmul.mubr.msk.bf16.vlgmr.msra.gmra.mxu0 %vm347_vm3, %v5777_v37  ;;  %s5841_s19 = smov 125  }
  0x9f   : > { %5575 = vmatmul.mubr.msk.bf16.vlgmr.msra.gmra.mxu1 %vm347_vm3, %v5777_v37  ;;  %v695_v41 = vpop.permute.xlu1 %694  ;;  %v693_v42 = vpop.permute.xlu0 %692  ;;  %744 = vmatprep.mubr.bf16.mxu0 %v5812_v1 }
  0xa0   : > { %v699_v43 = vsel %vm696_vm6, %v693_v42, %v695_v41  ;;  %v698_v44 = vsel %vm696_vm6, %v691_v38, %v693_v42  ;;  %5580 = vmatprep.mubr.msk.bf16.mxu1 %vm5813_vm0, %v5811_v0  ;;  %vm1916_vm6 = vcmask 474112  }
  0xa1   : > { %2520 = vrot.lane.b32.xlu1 %v5935_v7, %s5832_s28  ;;  %5289 = vmatprep.subr.msk.bf16.mxu0 %vm351_vm2, %v698_v44  ;;  %v710_v46 = vsel %vm351_vm2, %v699_v43, 0 }
  0xa2   : > { %2518 = vrot.lane.b32.xlu0 %v5927_v5, %s5832_s28  ;;  %727 = vmatpush1.bf16.msra.mxu0 %v704_v45 }
  0xa3   : > { %5579 = vmatpush3.bf16.msra.mxu1 %v710_v46  ;;  %v813_v48 = vpop.permute.xlu1 %812  ;;  %v811_v49 = vpop.permute.xlu0 %810 }
  0xa4   : > { %5584 = vmatprep.subr.bf16.mxu1 %v5811_v0  ;;  %v819_v50 = vsel %vm818_vm7, %v811_v49, %v813_v48  ;;  %v3390_v49 = vld [vmem:[%s5921_s10] sm:$0xff] }
  0xa5   : > { %2524 = vrot.lane.b32.xlu1 %v5933_v6, %s5832_s28  ;;  %v826_v55 = vsel %vm351_vm2, %v819_v50, 0  ;;  %v5784_v50 = vld [vmem:[%s6905_s2 + $0x48] sm:$0xff]  }
  0xa6   : > { %2522 = vrot.lane.b32.xlu0 %v5925_v4, %s5832_s28  ;;  %5290 = vmatmul.mubr.msk.bf16.vlgmr.msra.gmra.mxu0 %vm347_vm3, %v5778_v47 }
  0xa7   : > { %5581 = vmatmul.mubr.msk.bf16.vlgmr.msra.gmra.mxu1 %vm347_vm3, %v5778_v47  ;;  %v817_v51 = vpop.permute.xlu1 %816  ;;  %v815_v52 = vpop.permute.xlu0 %814  ;;  %866 = vmatprep.mubr.bf16.mxu0 %v5812_v1 }
  0xa8   : > { %v821_v53 = vsel %vm818_vm7, %v815_v52, %v817_v51  ;;  %v820_v54 = vsel %vm818_vm7, %v813_v48, %v815_v52  ;;  %5586 = vmatprep.mubr.msk.bf16.mxu1 %vm5813_vm0, %v5811_v0  ;;  %vm2038_vm7 = vcmask 465920  }
  0xa9   : > { %2642 = vrot.lane.b32.xlu1 %v5935_v7, %s5833_s8  ;;  %5295 = vmatprep.subr.msk.bf16.mxu0 %vm351_vm2, %v820_v54  ;;  %v832_v56 = vsel %vm351_vm2, %v821_v53, 0  ;;  %v6201_v53 = vcombine.high %v3390_v49, %v3390_v49 }
  0xaa   : > { %2640 = vrot.lane.b32.xlu0 %v5927_v5, %s5833_s8  ;;  %849 = vmatpush1.bf16.msra.mxu0 %v826_v55 }
  0xab   : > { %5585 = vmatpush3.bf16.msra.mxu1 %v832_v56  ;;  %v935_v58 = vpop.permute.xlu1 %934  ;;  %v933_v59 = vpop.permute.xlu0 %932 }
  0xac   : > { %5590 = vmatprep.subr.bf16.mxu1 %v5811_v0  ;;  %v941_v60 = vsel %vm940_vm8, %v933_v59, %v935_v58  ;;  %v5785_v59 = vld [vmem:[%s6905_s2 + $0x50] sm:$0xff]  }
  0xad   : > { %2646 = vrot.lane.b32.xlu1 %v5933_v6, %s5833_s8  ;;  %v948_v3 = vsel %vm351_vm2, %v941_v60, 0 }
  0xae   : > { %2644 = vrot.lane.b32.xlu0 %v5925_v4, %s5833_s8  ;;  %5296 = vmatmul.mubr.msk.bf16.vlgmr.msra.gmra.mxu0 %vm347_vm3, %v5779_v57  ;;  %s5855_s8 = smov 70  }
  0xaf   : > { %5587 = vmatmul.mubr.msk.bf16.vlgmr.msra.gmra.mxu1 %vm347_vm3, %v5779_v57  ;;  %v939_v61 = vpop.permute.xlu1 %938  ;;  %v937_v62 = vpop.permute.xlu0 %936  ;;  %988 = vmatprep.mubr.bf16.mxu0 %v5812_v1 }
  0xb0   : > { %v943_v63 = vsel %vm940_vm8, %v937_v62, %v939_v61  ;;  %v942_v2 = vsel %vm940_vm8, %v935_v58, %v937_v62  ;;  %5592 = vmatprep.mubr.msk.bf16.mxu1 %vm5813_vm0, %v5811_v0  ;;  %v6220_v58 = vld [vmem:[%s5921_s10 + $0x8] ss:$0 sps:$4 sm:$0xff]  }
  0xb1   : > { %2764 = vrot.lane.b32.xlu1 %v5935_v7, %s5834_s15  ;;  %5301 = vmatprep.subr.msk.bf16.mxu0 %vm351_vm2, %v942_v2  ;;  %v954_v8 = vsel %vm351_vm2, %v943_v63, 0 }
  0xb2   : > { %2762 = vrot.lane.b32.xlu0 %v5927_v5, %s5834_s15  ;;  %971 = vmatpush1.bf16.msra.mxu0 %v948_v3 }
  0xb3   : > { %5591 = vmatpush3.bf16.msra.mxu1 %v954_v8  ;;  %v1057_v10 = vpop.permute.xlu1 %1056  ;;  %v1055_v11 = vpop.permute.xlu0 %1054 }
  0xb4   : > { %5596 = vmatprep.subr.bf16.mxu1 %v5811_v0  ;;  %v1063_v12 = vsel %vm1062_vm9, %v1055_v11, %v1057_v10  ;;  %v5786_v11 = vld [vmem:[%s6905_s2 + $0x58] sm:$0xff]  }
  0xb5   : > { %2768 = vrot.lane.b32.xlu1 %v5933_v6, %s5834_s15  ;;  %v1070_v17 = vsel %vm351_vm2, %v1063_v12, 0 }
  0xb6   : > { %2766 = vrot.lane.b32.xlu0 %v5925_v4, %s5834_s15  ;;  %5302 = vmatmul.mubr.msk.bf16.vlgmr.msra.gmra.mxu0 %vm347_vm3, %v5780_v9 }
  0xb7   : > { %5593 = vmatmul.mubr.msk.bf16.vlgmr.msra.gmra.mxu1 %vm347_vm3, %v5780_v9  ;;  %v1061_v13 = vpop.permute.xlu1 %1060  ;;  %v1059_v14 = vpop.permute.xlu0 %1058  ;;  %1110 = vmatprep.mubr.bf16.mxu0 %v5812_v1 }
  0xb8   : > { %v1065_v15 = vsel %vm1062_vm9, %v1059_v14, %v1061_v13  ;;  %v1064_v16 = vsel %vm1062_vm9, %v1057_v10, %v1059_v14  ;;  %5598 = vmatprep.mubr.msk.bf16.mxu1 %vm5813_vm0, %v5811_v0 }
  0xb9   : > { %2886 = vrot.lane.b32.xlu1 %v5935_v7, %s5835_s27  ;;  %5307 = vmatprep.subr.msk.bf16.mxu0 %vm351_vm2, %v1064_v16  ;;  %v1076_v18 = vsel %vm351_vm2, %v1065_v15, 0 }
  0xba   : > { %2884 = vrot.lane.b32.xlu0 %v5927_v5, %s5835_s27  ;;  %1093 = vmatpush1.bf16.msra.mxu0 %v1070_v17 }
  0xbb   : > { %5597 = vmatpush3.bf16.msra.mxu1 %v1076_v18  ;;  %v1179_v20 = vpop.permute.xlu1 %1178  ;;  %v1177_v21 = vpop.permute.xlu0 %1176 }
  0xbc   : > { %5602 = vmatprep.subr.bf16.mxu1 %v5811_v0  ;;  %v1185_v22 = vsel %vm1184_vm10, %v1177_v21, %v1179_v20  ;;  %v5787_v21 = vld [vmem:[%s6905_s2 + $0x60] sm:$0xff]  }
  0xbd   : > { %2890 = vrot.lane.b32.xlu1 %v5933_v6, %s5835_s27  ;;  %v1192_v27 = vsel %vm351_vm2, %v1185_v22, 0 }
  0xbe   : > { %2888 = vrot.lane.b32.xlu0 %v5925_v4, %s5835_s27  ;;  %5308 = vmatmul.mubr.msk.bf16.vlgmr.msra.gmra.mxu0 %vm347_vm3, %v5781_v19 }
  0xbf   : > { %5599 = vmatmul.mubr.msk.bf16.vlgmr.msra.gmra.mxu1 %vm347_vm3, %v5781_v19  ;;  %v1183_v23 = vpop.permute.xlu1 %1182  ;;  %v1181_v24 = vpop.permute.xlu0 %1180  ;;  %1232 = vmatprep.mubr.bf16.mxu0 %v5812_v1 }
  0xc0   : > { %v1187_v25 = vsel %vm1184_vm10, %v1181_v24, %v1183_v23  ;;  %v1186_v26 = vsel %vm1184_vm10, %v1179_v20, %v1181_v24  ;;  %5604 = vmatprep.mubr.msk.bf16.mxu1 %vm5813_vm0, %v5811_v0 }
  0xc1   : > { %3008 = vrot.lane.b32.xlu1 %v5935_v7, %s5836_s30  ;;  %5313 = vmatprep.subr.msk.bf16.mxu0 %vm351_vm2, %v1186_v26  ;;  %v1198_v28 = vsel %vm351_vm2, %v1187_v25, 0 }
  0xc2   : > { %3006 = vrot.lane.b32.xlu0 %v5927_v5, %s5836_s30  ;;  %1215 = vmatpush1.bf16.msra.mxu0 %v1192_v27 }
  0xc3   : > { %5603 = vmatpush3.bf16.msra.mxu1 %v1198_v28  ;;  %v1301_v30 = vpop.permute.xlu1 %1300  ;;  %v1299_v31 = vpop.permute.xlu0 %1298 }
  0xc4   : > { %5608 = vmatprep.subr.bf16.mxu1 %v5811_v0  ;;  %v1307_v32 = vsel %vm1306_vm11, %v1299_v31, %v1301_v30  ;;  %v5788_v31 = vld [vmem:[%s6905_s2 + $0x68] sm:$0xff]  }
  0xc5   : > { %3012 = vrot.lane.b32.xlu1 %v5933_v6, %s5836_s30  ;;  %v1314_v37 = vsel %vm351_vm2, %v1307_v32, 0 }
  0xc6   : > { %3010 = vrot.lane.b32.xlu0 %v5925_v4, %s5836_s30  ;;  %5314 = vmatmul.mubr.msk.bf16.vlgmr.msra.gmra.mxu0 %vm347_vm3, %v5782_v29  ;;  %s5851_s30 = smov 84  }
  0xc7   : > { %5605 = vmatmul.mubr.msk.bf16.vlgmr.msra.gmra.mxu1 %vm347_vm3, %v5782_v29  ;;  %v1305_v33 = vpop.permute.xlu1 %1304  ;;  %v1303_v34 = vpop.permute.xlu0 %1302  ;;  %1354 = vmatprep.mubr.bf16.mxu0 %v5812_v1 }
  0xc8   : > { %v1309_v35 = vsel %vm1306_vm11, %v1303_v34, %v1305_v33  ;;  %v1308_v36 = vsel %vm1306_vm11, %v1301_v30, %v1303_v34  ;;  %5610 = vmatprep.mubr.msk.bf16.mxu1 %vm5813_vm0, %v5811_v0  ;;  %vm2160_vm11 = vcmask 318464  }
  0xc9   : > { %3130 = vrot.lane.b32.xlu1 %v5935_v7, %s5837_s14  ;;  %5319 = vmatprep.subr.msk.bf16.mxu0 %vm351_vm2, %v1308_v36  ;;  %v1320_v38 = vsel %vm351_vm2, %v1309_v35, 0 }
  0xca   : > { %3128 = vrot.lane.b32.xlu0 %v5927_v5, %s5837_s14  ;;  %1337 = vmatpush1.bf16.msra.mxu0 %v1314_v37 }
  0xcb   : > { %5609 = vmatpush3.bf16.msra.mxu1 %v1320_v38  ;;  %v1423_v40 = vpop.permute.xlu1 %1422  ;;  %v1421_v41 = vpop.permute.xlu0 %1420 }
  0xcc   : > { %5614 = vmatprep.subr.bf16.mxu1 %v5811_v0  ;;  %v1429_v42 = vsel %vm1428_vm12, %v1421_v41, %v1423_v40  ;;  %v5789_v41 = vld [vmem:[%s6905_s2 + $0x70] sm:$0xff]  }
  0xcd   : > { %3134 = vrot.lane.b32.xlu1 %v5933_v6, %s5837_s14  ;;  %v1436_v47 = vsel %vm351_vm2, %v1429_v42, 0 }
  0xce   : > { %3132 = vrot.lane.b32.xlu0 %v5925_v4, %s5837_s14  ;;  %5320 = vmatmul.mubr.msk.bf16.vlgmr.msra.gmra.mxu0 %vm347_vm3, %v5783_v39  ;;  %s311_s14 = scalar_lea.vmem %s6910_s7, %s5508_s26 }
  0xcf   : > { %5611 = vmatmul.mubr.msk.bf16.vlgmr.msra.gmra.mxu1 %vm347_vm3, %v5783_v39  ;;  %v1427_v43 = vpop.permute.xlu1 %1426  ;;  %v1425_v44 = vpop.permute.xlu0 %1424  ;;  %1476 = vmatprep.mubr.bf16.mxu0 %v5812_v1 }
  0xd0   : > { %v1431_v45 = vsel %vm1428_vm12, %v1425_v44, %v1427_v43  ;;  %v1430_v46 = vsel %vm1428_vm12, %v1423_v40, %v1425_v44  ;;  %5616 = vmatprep.mubr.msk.bf16.mxu1 %vm5813_vm0, %v5811_v0  ;;  %vm2282_vm12 = vcmask 310272  }
  0xd1   : > { %3252 = vrot.lane.b32.xlu1 %v5935_v7, %s5838_s20  ;;  %5325 = vmatprep.subr.msk.bf16.mxu0 %vm351_vm2, %v1430_v46  ;;  %v1442_v48 = vsel %vm351_vm2, %v1431_v45, 0  ;;  %v6204_v7 = vcombine.low %v3390_v49, %v3390_v49 }
  0xd2   : > { %3250 = vrot.lane.b32.xlu0 %v5927_v5, %s5838_s20  ;;  %1459 = vmatpush1.bf16.msra.mxu0 %v1436_v47 }
  0xd3   : > { %5615 = vmatpush3.bf16.msra.mxu1 %v1442_v48  ;;  %v1545_v51 = vpop.permute.xlu1 %1544  ;;  %v1543_v52 = vpop.permute.xlu0 %1542 }
  0xd4   : > { %5620 = vmatprep.subr.bf16.mxu1 %v5811_v0  ;;  %v1551_v5 = vsel %vm1550_vm13, %v1543_v52, %v1545_v51 }
  0xd5   : > { %3256 = vrot.lane.b32.xlu1 %v5933_v6, %s5838_s20  ;;  %v1558_v6 = vsel %vm351_vm2, %v1551_v5, 0 }
  0xd6   : > { %3254 = vrot.lane.b32.xlu0 %v5925_v4, %s5838_s20  ;;  %5326 = vmatmul.mubr.msk.bf16.vlgmr.msra.gmra.mxu0 %vm347_vm3, %v5784_v50  ;;  %s5842_s20 = smov 117  }
  0xd7   : > { %5617 = vmatmul.mubr.msk.bf16.vlgmr.msra.gmra.mxu1 %vm347_vm3, %v5784_v50  ;;  %v1549_v54 = vpop.permute.xlu1 %1548  ;;  %v1547_v55 = vpop.permute.xlu0 %1546  ;;  %1598 = vmatprep.mubr.bf16.mxu0 %v5812_v1 }
  0xd8   : > { %v1553_v56 = vsel %vm1550_vm13, %v1547_v55, %v1549_v54  ;;  %v1552_v57 = vsel %vm1550_vm13, %v1545_v51, %v1547_v55  ;;  %5622 = vmatprep.mubr.msk.bf16.mxu1 %vm5813_vm0, %v5811_v0  ;;  %v5790_v51 = vld [vmem:[%s6905_s2 + $0x78] sm:$0xff]  }
  0xd9   : > { %3404 = vrot.lane.b32.xlu1 %v6201_v53, %s5839_s29  ;;  %5331 = vmatprep.subr.msk.bf16.mxu0 %vm351_vm2, %v1552_v57  ;;  %v1564_v4 = vsel %vm351_vm2, %v1553_v56, 0 }
  0xda   : > { %3402 = vrot.lane.b32.xlu0 %v6204_v7, %s5839_s29  ;;  %1581 = vmatpush1.bf16.msra.mxu0 %v1558_v6 }
  0xdb   : > { %5621 = vmatpush3.bf16.msra.mxu1 %v1564_v4  ;;  %v1667_v60 = vpop.permute.xlu1 %1666  ;;  %v1665_v61 = vpop.permute.xlu0 %1664 }
  0xdc   : > { %5626 = vmatprep.subr.bf16.mxu1 %v5811_v0  ;;  %v1673_v62 = vsel %vm1672_vm14, %v1665_v61, %v1667_v60 }
  0xdd   : > { %3518 = vrot.lane.b32.xlu1 %v6204_v7, %s5840_s9  ;;  %v1680_v9 = vsel %vm351_vm2, %v1673_v62, 0 }
  0xde   : > { %3406 = vrot.lane.b32.xlu0 %v6220_v58, %s5839_s29  ;;  %5332 = vmatmul.mubr.msk.bf16.vlgmr.msra.gmra.mxu0 %vm347_vm3, %v5785_v59  ;;  %s5843_s29 = smov 116  }
  0xdf   : > { %5623 = vmatmul.mubr.msk.bf16.vlgmr.msra.gmra.mxu1 %vm347_vm3, %v5785_v59  ;;  %v1671_v63 = vpop.permute.xlu1 %1670  ;;  %v1669_v2 = vpop.permute.xlu0 %1668  ;;  %1720 = vmatprep.mubr.bf16.mxu0 %v5812_v1 }
  0xe0   : > { %v1675_v3 = vsel %vm1672_vm14, %v1669_v2, %v1671_v63  ;;  %v1674_v8 = vsel %vm1672_vm14, %v1667_v60, %v1669_v2  ;;  %5628 = vmatprep.mubr.msk.bf16.mxu1 %vm5813_vm0, %v5811_v0  ;;  %v5791_v60 = vld [vmem:[%s6905_s2 + $0x80] sm:$0xff]  }
  0xe1   : > { %3522 = vrot.lane.b32.xlu1 %v6220_v58, %s5840_s9  ;;  %5337 = vmatprep.subr.msk.bf16.mxu0 %vm351_vm2, %v1674_v8  ;;  %v1686_v10 = vsel %vm351_vm2, %v1675_v3, 0 }
  0xe2   : > { %3520 = vrot.lane.b32.xlu0 %v6201_v53, %s5840_s9  ;;  %1703 = vmatpush1.bf16.msra.mxu0 %v1680_v9  ;;  %s5844_s9 = smov 115  }
  0xe3   : > { %5627 = vmatpush3.bf16.msra.mxu1 %v1686_v10  ;;  %v1789_v12 = vpop.permute.xlu1 %1788  ;;  %v1787_v13 = vpop.permute.xlu0 %1786 }
  0xe4   : > { %5632 = vmatprep.subr.bf16.mxu1 %v5811_v0  ;;  %v1795_v14 = vsel %vm1794_vm15, %v1787_v13, %v1789_v12 }
  0xe5   : > { %3583 = vrot.lane.b32.xlu1 %v6201_v53, %s5841_s19  ;;  %v1802_v19 = vsel %vm351_vm2, %v1795_v14, 0 }
  0xe6   : > { %3581 = vrot.lane.b32.xlu0 %v6204_v7, %s5841_s19  ;;  %5338 = vmatmul.mubr.msk.bf16.vlgmr.msra.gmra.mxu0 %vm347_vm3, %v5786_v11 }
  0xe7   : > { %5629 = vmatmul.mubr.msk.bf16.vlgmr.msra.gmra.mxu1 %vm347_vm3, %v5786_v11  ;;  %v1793_v15 = vpop.permute.xlu1 %1792  ;;  %v1791_v16 = vpop.permute.xlu0 %1790  ;;  %1842 = vmatprep.mubr.bf16.mxu0 %v5812_v1 }
  0xe8   : > { %v1797_v17 = vsel %vm1794_vm15, %v1791_v16, %v1793_v15  ;;  %v1796_v18 = vsel %vm1794_vm15, %v1789_v12, %v1791_v16  ;;  %5634 = vmatprep.mubr.msk.bf16.mxu1 %vm5813_vm0, %v5811_v0  ;;  %v5792_v12 = vld [vmem:[%s6905_s2 + $0x88] sm:$0xff]  }
  0xe9   : > { %3644 = vrot.lane.b32.xlu1 %v6204_v7, %s5842_s20  ;;  %5343 = vmatprep.subr.msk.bf16.mxu0 %vm351_vm2, %v1796_v18  ;;  %v1808_v20 = vsel %vm351_vm2, %v1797_v17, 0 }
  0xea   : > { %3585 = vrot.lane.b32.xlu0 %v6220_v58, %s5841_s19  ;;  %1825 = vmatpush1.bf16.msra.mxu0 %v1802_v19  ;;  %s5845_s19 = smov 114  }
  0xeb   : > { %5633 = vmatpush3.bf16.msra.mxu1 %v1808_v20  ;;  %v1911_v22 = vpop.permute.xlu1 %1910  ;;  %v1909_v23 = vpop.permute.xlu0 %1908 }
  0xec   : > { %5638 = vmatprep.subr.bf16.mxu1 %v5811_v0  ;;  %v1917_v24 = vsel %vm1916_vm6, %v1909_v23, %v1911_v22 }
  0xed   : > { %3648 = vrot.lane.b32.xlu1 %v6220_v58, %s5842_s20  ;;  %v1924_v29 = vsel %vm351_vm2, %v1917_v24, 0 }
  0xee   : > { %3646 = vrot.lane.b32.xlu0 %v6201_v53, %s5842_s20  ;;  %5344 = vmatmul.mubr.msk.bf16.vlgmr.msra.gmra.mxu0 %vm347_vm3, %v5787_v21  ;;  %s5846_s20 = smov 106  }
  0xef   : > { %5635 = vmatmul.mubr.msk.bf16.vlgmr.msra.gmra.mxu1 %vm347_vm3, %v5787_v21  ;;  %v1915_v25 = vpop.permute.xlu1 %1914  ;;  %v1913_v26 = vpop.permute.xlu0 %1912  ;;  %1964 = vmatprep.mubr.bf16.mxu0 %v5812_v1 }
  0xf0   : > { %v1919_v27 = vsel %vm1916_vm6, %v1913_v26, %v1915_v25  ;;  %v1918_v28 = vsel %vm1916_vm6, %v1911_v22, %v1913_v26  ;;  %5640 = vmatprep.mubr.msk.bf16.mxu1 %vm5813_vm0, %v5811_v0  ;;  %vm2404_vm6 = vcmask 302080   ;;  %v5793_v22 = vld [vmem:[%s6905_s2 + $0x90] sm:$0xff]  }
  0xf1   : > { %3709 = vrot.lane.b32.xlu1 %v6201_v53, %s5843_s29  ;;  %5349 = vmatprep.subr.msk.bf16.mxu0 %vm351_vm2, %v1918_v28  ;;  %v1930_v30 = vsel %vm351_vm2, %v1919_v27, 0 }
  0xf2   : > { %3707 = vrot.lane.b32.xlu0 %v6204_v7, %s5843_s29  ;;  %1947 = vmatpush1.bf16.msra.mxu0 %v1924_v29 }
  0xf3   : > { %5639 = vmatpush3.bf16.msra.mxu1 %v1930_v30  ;;  %v2033_v32 = vpop.permute.xlu1 %2032  ;;  %v2031_v33 = vpop.permute.xlu0 %2030 }
  0xf4   : > { %5644 = vmatprep.subr.bf16.mxu1 %v5811_v0  ;;  %v2039_v34 = vsel %vm2038_vm7, %v2031_v33, %v2033_v32 }
  0xf5   : > { %3770 = vrot.lane.b32.xlu1 %v6204_v7, %s5844_s9  ;;  %v2046_v39 = vsel %vm351_vm2, %v2039_v34, 0 }
  0xf6   : > { %3711 = vrot.lane.b32.xlu0 %v6220_v58, %s5843_s29  ;;  %5350 = vmatmul.mubr.msk.bf16.vlgmr.msra.gmra.mxu0 %vm347_vm3, %v5788_v31  ;;  %s5850_s29 = smov 92  }
  0xf7   : > { %5641 = vmatmul.mubr.msk.bf16.vlgmr.msra.gmra.mxu1 %vm347_vm3, %v5788_v31  ;;  %v2037_v35 = vpop.permute.xlu1 %2036  ;;  %v2035_v36 = vpop.permute.xlu0 %2034  ;;  %2086 = vmatprep.mubr.bf16.mxu0 %v5812_v1 }
  0xf8   : > { %v2041_v37 = vsel %vm2038_vm7, %v2035_v36, %v2037_v35  ;;  %v2040_v38 = vsel %vm2038_vm7, %v2033_v32, %v2035_v36  ;;  %5646 = vmatprep.mubr.msk.bf16.mxu1 %vm5813_vm0, %v5811_v0  ;;  %vm2526_vm7 = vcmask 293888   ;;  %v5794_v32 = vld [vmem:[%s6905_s2 + $0x98] sm:$0xff]  }
  0xf9   : > { %3774 = vrot.lane.b32.xlu1 %v6220_v58, %s5844_s9  ;;  %5355 = vmatprep.subr.msk.bf16.mxu0 %vm351_vm2, %v2040_v38  ;;  %v2052_v40 = vsel %vm351_vm2, %v2041_v37, 0 }
  0xfa   : > { %3772 = vrot.lane.b32.xlu0 %v6201_v53, %s5844_s9  ;;  %2069 = vmatpush1.bf16.msra.mxu0 %v2046_v39 }
  0xfb   : > { %5645 = vmatpush3.bf16.msra.mxu1 %v2052_v40  ;;  %v2155_v42 = vpop.permute.xlu1 %2154  ;;  %v2153_v43 = vpop.permute.xlu0 %2152 }
  0xfc   : > { %5650 = vmatprep.subr.bf16.mxu1 %v5811_v0  ;;  %v2161_v44 = vsel %vm2160_vm11, %v2153_v43, %v2155_v42 }
  0xfd   : > { %3835 = vrot.lane.b32.xlu1 %v6201_v53, %s5845_s19  ;;  %v2168_v49 = vsel %vm351_vm2, %v2161_v44, 0 }
  0xfe   : > { %3833 = vrot.lane.b32.xlu0 %v6204_v7, %s5845_s19  ;;  %5356 = vmatmul.mubr.msk.bf16.vlgmr.msra.gmra.mxu0 %vm347_vm3, %v5789_v41 }
  0xff   : > { %5647 = vmatmul.mubr.msk.bf16.vlgmr.msra.gmra.mxu1 %vm347_vm3, %v5789_v41  ;;  %v2159_v45 = vpop.permute.xlu1 %2158  ;;  %2208 = vmatprep.mubr.bf16.mxu0 %v5812_v1 }
 0x100   : > { %v2157_v46 = vpop.permute.xlu0 %2156  ;;  %5652 = vmatprep.mubr.msk.bf16.mxu1 %vm5813_vm0, %v5811_v0 }
 0x101   : > { %v2163_v47 = vsel %vm2160_vm11, %v2157_v46, %v2159_v45  ;;  %3896 = vrot.lane.b32.xlu1 %v6204_v7, %s5846_s20  ;;  %v2162_v48 = vsel %vm2160_vm11, %v2155_v42, %v2157_v46  ;;  %vm2648_vm11 = vcmask 285696   ;;  %v5795_v42 = vld [vmem:[%s6905_s2 + $0xa0] sm:$0xff]  }
 0x102   : > { %3837 = vrot.lane.b32.xlu0 %v6220_v58, %s5845_s19  ;;  %5361 = vmatprep.subr.msk.bf16.mxu0 %vm351_vm2, %v2162_v48  ;;  %v2174_v50 = vsel %vm351_vm2, %v2163_v47, 0 }
 0x103   : > { %2191 = vmatpush1.bf16.msra.mxu0 %v2168_v49  ;;  %5651 = vmatpush3.bf16.msra.mxu1 %v2174_v50  ;;  %v2277_v52 = vpop.permute.xlu1 %2276 }
 0x104   : > { %v2275_v5 = vpop.permute.xlu0 %2274  ;;  %5656 = vmatprep.subr.bf16.mxu1 %v5811_v0 }
 0x105   : > { %3900 = vrot.lane.b32.xlu1 %v6220_v58, %s5846_s20  ;;  %v2283_v54 = vsel %vm2282_vm12, %v2275_v5, %v2277_v52 }
 0x106   : > { %3898 = vrot.lane.b32.xlu0 %v6201_v53, %s5846_s20  ;;  %5362 = vmatmul.mubr.msk.bf16.vlgmr.msra.gmra.mxu0 %vm347_vm3, %v5790_v51  ;;  %v2290_v4 = vsel %vm351_vm2, %v2283_v54, 0  ;;  %s5849_s20 = smov 93  }
 0x107   : > { %5653 = vmatmul.mubr.msk.bf16.vlgmr.msra.gmra.mxu1 %vm347_vm3, %v5790_v51  ;;  %v2281_v55 = vpop.permute.xlu1 %2280  ;;  %2330 = vmatprep.mubr.bf16.mxu0 %v5812_v1 }
 0x108   : > { %v2279_v56 = vpop.permute.xlu0 %2278  ;;  %5658 = vmatprep.mubr.msk.bf16.mxu1 %vm5813_vm0, %v5811_v0 }
 0x109   : > { %v2285_v57 = vsel %vm2282_vm12, %v2279_v56, %v2281_v55  ;;  %3961 = vrot.lane.b32.xlu1 %v6201_v53, %s5815_s12  ;;  %v2284_v6 = vsel %vm2282_vm12, %v2277_v52, %v2279_v56  ;;  %vm2770_vm12 = vcmask 138240   ;;  %v5796_v52 = vld [vmem:[%s6905_s2 + $0xa8] sm:$0xff]  }
 0x10a   : > { %3959 = vrot.lane.b32.xlu0 %v6204_v7, %s5815_s12  ;;  %5367 = vmatprep.subr.msk.bf16.mxu0 %vm351_vm2, %v2284_v6  ;;  %v2296_v59 = vsel %vm351_vm2, %v2285_v57, 0 }
 0x10b   : > { %2313 = vmatpush1.bf16.msra.mxu0 %v2290_v4  ;;  %5657 = vmatpush3.bf16.msra.mxu1 %v2296_v59  ;;  %v2399_v61 = vpop.permute.xlu1 %2398 }
 0x10c   : > { %v2397_v62 = vpop.permute.xlu0 %2396  ;;  %5662 = vmatprep.subr.bf16.mxu1 %v5811_v0 }
 0x10d   : > { %4021 = vrot.lane.b32.xlu1 %v6204_v7, %s5814_s11  ;;  %v2405_v63 = vsel %vm2404_vm6, %v2397_v62, %v2399_v61 }
 0x10e   : > { %3963 = vrot.lane.b32.xlu0 %v6220_v58, %s5815_s12  ;;  %5368 = vmatmul.mubr.msk.bf16.vlgmr.msra.gmra.mxu0 %vm347_vm3, %v5791_v60  ;;  %v2412_v10 = vsel %vm351_vm2, %v2405_v63, 0 }
 0x10f   : > { %5659 = vmatmul.mubr.msk.bf16.vlgmr.msra.gmra.mxu1 %vm347_vm3, %v5791_v60  ;;  %v2403_v2 = vpop.permute.xlu1 %2402  ;;  %2452 = vmatprep.mubr.bf16.mxu0 %v5812_v1 }
 0x110   : > { %v2401_v3 = vpop.permute.xlu0 %2400  ;;  %5664 = vmatprep.mubr.msk.bf16.mxu1 %vm5813_vm0, %v5811_v0 }
 0x111   : > { %v2407_v8 = vsel %vm2404_vm6, %v2401_v3, %v2403_v2  ;;  %4025 = vrot.lane.b32.xlu1 %v6220_v58, %s5814_s11  ;;  %v2406_v9 = vsel %vm2404_vm6, %v2399_v61, %v2401_v3  ;;  %vm2892_vm6 = vcmask 130048   ;;  %v5797_v61 = vld [vmem:[%s6905_s2 + $0xb0] sm:$0xff]  }
 0x112   : > { %4023 = vrot.lane.b32.xlu0 %v6201_v53, %s5814_s11  ;;  %5373 = vmatprep.subr.msk.bf16.mxu0 %vm351_vm2, %v2406_v9  ;;  %v2418_v11 = vsel %vm351_vm2, %v2407_v8, 0  ;;  %s5847_s11 = smov 95  }
 0x113   : > { %2435 = vmatpush1.bf16.msra.mxu0 %v2412_v10  ;;  %5663 = vmatpush3.bf16.msra.mxu1 %v2418_v11  ;;  %v2521_v13 = vpop.permute.xlu1 %2520 }
 0x114   : > { %v2519_v14 = vpop.permute.xlu0 %2518  ;;  %5668 = vmatprep.subr.bf16.mxu1 %v5811_v0 }
 0x115   : > { %4085 = vrot.lane.b32.xlu1 %v6201_v53, %s5816_s13  ;;  %v2527_v15 = vsel %vm2526_vm7, %v2519_v14, %v2521_v13 }
 0x116   : > { %4083 = vrot.lane.b32.xlu0 %v6204_v7, %s5816_s13  ;;  %5374 = vmatmul.mubr.msk.bf16.vlgmr.msra.gmra.mxu0 %vm347_vm3, %v5792_v12  ;;  %v2534_v20 = vsel %vm351_vm2, %v2527_v15, 0 }
 0x117   : > { %5665 = vmatmul.mubr.msk.bf16.vlgmr.msra.gmra.mxu1 %vm347_vm3, %v5792_v12  ;;  %v2525_v16 = vpop.permute.xlu1 %2524  ;;  %2574 = vmatprep.mubr.bf16.mxu0 %v5812_v1 }
 0x118   : > { %v2523_v17 = vpop.permute.xlu0 %2522  ;;  %5670 = vmatprep.mubr.msk.bf16.mxu1 %vm5813_vm0, %v5811_v0 }
 0x119   : > { %v2529_v18 = vsel %vm2526_vm7, %v2523_v17, %v2525_v16  ;;  %4145 = vrot.lane.b32.xlu1 %v6204_v7, %s5847_s11  ;;  %v2528_v19 = vsel %vm2526_vm7, %v2521_v13, %v2523_v17  ;;  %vm3014_vm7 = vcmask 121856   ;;  %v5798_v13 = vld [vmem:[%s6905_s2 + $0xb8] sm:$0xff]   ;;  %v3388_v16 = vld [vmem:[%s5921_s10] sm:$0xff] }
 0x11a   : > { %4087 = vrot.lane.b32.xlu0 %v6220_v58, %s5816_s13  ;;  %5379 = vmatprep.subr.msk.bf16.mxu0 %vm351_vm2, %v2528_v19  ;;  %v2540_v21 = vsel %vm351_vm2, %v2529_v18, 0  ;;  %s5848_s13 = smov 94  }
 0x11b   : > { %2557 = vmatpush1.bf16.msra.mxu0 %v2534_v20  ;;  %5669 = vmatpush3.bf16.msra.mxu1 %v2540_v21  ;;  %v2643_v23 = vpop.permute.xlu1 %2642  ;;  %v5425_v20 = vcombine.high %v3388_v16, %v3388_v16 }
 0x11c   : > { %v2641_v24 = vpop.permute.xlu0 %2640  ;;  %5674 = vmatprep.subr.bf16.mxu1 %v5811_v0 }
 0x11d   : > { %4149 = vrot.lane.b32.xlu1 %v6220_v58, %s5847_s11  ;;  %v2649_v25 = vsel %vm2648_vm11, %v2641_v24, %v2643_v23 }
 0x11e   : > { %4147 = vrot.lane.b32.xlu0 %v6201_v53, %s5847_s11  ;;  %5380 = vmatmul.mubr.msk.bf16.vlgmr.msra.gmra.mxu0 %vm347_vm3, %v5793_v22  ;;  %v2656_v30 = vsel %vm351_vm2, %v2649_v25, 0 }
 0x11f   : > { %5671 = vmatmul.mubr.msk.bf16.vlgmr.msra.gmra.mxu1 %vm347_vm3, %v5793_v22  ;;  %v2647_v26 = vpop.permute.xlu1 %2646  ;;  %2696 = vmatprep.mubr.bf16.mxu0 %v5812_v1 }
 0x120   : > { %v2645_v27 = vpop.permute.xlu0 %2644  ;;  %5676 = vmatprep.mubr.msk.bf16.mxu1 %vm5813_vm0, %v5811_v0 }
 0x121   : > { %v2651_v28 = vsel %vm2648_vm11, %v2645_v27, %v2647_v26  ;;  %4210 = vrot.lane.b32.xlu1 %v6201_v53, %s5848_s13  ;;  %v2650_v29 = vsel %vm2648_vm11, %v2643_v23, %v2645_v27  ;;  %vm3136_vm11 = vcmask 113664   ;;  %v5424_v23 = vcombine.low %v3388_v16, %v3388_v16 }
 0x122   : > { %4208 = vrot.lane.b32.xlu0 %v6204_v7, %s5848_s13  ;;  %5385 = vmatprep.subr.msk.bf16.mxu0 %vm351_vm2, %v2650_v29  ;;  %v2662_v31 = vsel %vm351_vm2, %v2651_v28, 0 }
 0x123   : > { %2679 = vmatpush1.bf16.msra.mxu0 %v2656_v30  ;;  %5675 = vmatpush3.bf16.msra.mxu1 %v2662_v31  ;;  %v2765_v33 = vpop.permute.xlu1 %2764  ;;  %v3470_v29 = vsel %vm351_vm2, %v5424_v23, 0 }
 0x124   : > { %v2763_v34 = vpop.permute.xlu0 %2762  ;;  %5680 = vmatprep.subr.bf16.mxu1 %v5811_v0 }
 0x125   : > { %4271 = vrot.lane.b32.xlu1 %v6204_v7, %s5849_s20  ;;  %v2771_v35 = vsel %vm2770_vm12, %v2763_v34, %v2765_v33 }
 0x126   : > { %4212 = vrot.lane.b32.xlu0 %v6220_v58, %s5848_s13  ;;  %5386 = vmatmul.mubr.msk.bf16.vlgmr.msra.gmra.mxu0 %vm347_vm3, %v5794_v32  ;;  %v2778_v40 = vsel %vm351_vm2, %v2771_v35, 0 }
 0x127   : > { %5677 = vmatmul.mubr.msk.bf16.vlgmr.msra.gmra.mxu1 %vm347_vm3, %v5794_v32  ;;  %v2769_v36 = vpop.permute.xlu1 %2768  ;;  %2818 = vmatprep.mubr.bf16.mxu0 %v5812_v1 }
 0x128   : > { %v2767_v37 = vpop.permute.xlu0 %2766  ;;  %5682 = vmatprep.mubr.msk.bf16.mxu1 %vm5813_vm0, %v5811_v0 }
 0x129   : > { %v2773_v38 = vsel %vm2770_vm12, %v2767_v37, %v2769_v36  ;;  %4275 = vrot.lane.b32.xlu1 %v6220_v58, %s5849_s20  ;;  %v2772_v39 = vsel %vm2770_vm12, %v2765_v33, %v2767_v37  ;;  %vm3258_vm12 = vcmask 105472  }
 0x12a   : > { %4273 = vrot.lane.b32.xlu0 %v6201_v53, %s5849_s20  ;;  %5391 = vmatprep.subr.msk.bf16.mxu0 %vm351_vm2, %v2772_v39  ;;  %v2784_v41 = vsel %vm351_vm2, %v2773_v38, 0 }
 0x12b   : > { %2801 = vmatpush1.bf16.msra.mxu0 %v2778_v40  ;;  %5681 = vmatpush3.bf16.msra.mxu1 %v2784_v41  ;;  %v2887_v43 = vpop.permute.xlu1 %2886 }
 0x12c   : > { %v2885_v44 = vpop.permute.xlu0 %2884  ;;  %5686 = vmatprep.subr.bf16.mxu1 %v5811_v0 }
 0x12d   : > { %4336 = vrot.lane.b32.xlu1 %v6201_v53, %s5850_s29  ;;  %v2893_v45 = vsel %vm2892_vm6, %v2885_v44, %v2887_v43  ;;  %v5418_v44 = vld [vmem:[%s6906_s3 + $0x4] sm:$0xf] }
 0x12e   : > { %4334 = vrot.lane.b32.xlu0 %v6204_v7, %s5850_s29  ;;  %5392 = vmatmul.mubr.msk.bf16.vlgmr.msra.gmra.mxu0 %vm347_vm3, %v5795_v42  ;;  %v2900_v50 = vsel %vm351_vm2, %v2893_v45, 0  ;;  %v3389_v45 = vld [vmem:[%s6906_s3] sm:$0xf] }
 0x12f   : > { %5683 = vmatmul.mubr.msk.bf16.vlgmr.msra.gmra.mxu1 %vm347_vm3, %v5795_v42  ;;  %v2891_v46 = vpop.permute.xlu1 %2890  ;;  %2940 = vmatprep.mubr.bf16.mxu0 %v5812_v1 }
 0x130   : > { %v2889_v47 = vpop.permute.xlu0 %2888  ;;  %5688 = vmatprep.mubr.msk.bf16.mxu1 %vm5813_vm0, %v5811_v0 }
 0x131   : > { %v2894_v48 = vsel %vm2892_vm6, %v2887_v43, %v2889_v47  ;;  %v2895_v49 = vsel %vm2892_vm6, %v2889_v47, %v2891_v46  ;;  %4397 = vrot.lane.b32.xlu1 %v6204_v7, %s5851_s30  ;;  %vm3524_vm6 = vcmask 1031168  }
 0x132   : > { %v2906_v51 = vsel %vm351_vm2, %v2895_v49, 0  ;;  %4338 = vrot.lane.b32.xlu0 %v6220_v58, %s5850_s29  ;;  %5397 = vmatprep.subr.msk.bf16.mxu0 %vm351_vm2, %v2894_v48  ;;  %s5854_s29 = smov 71  }
 0x133   : > { %2923 = vmatpush1.bf16.msra.mxu0 %v2900_v50  ;;  %5687 = vmatpush3.bf16.msra.mxu1 %v2906_v51  ;;  %v3009_v5 = vpop.permute.xlu1 %3008 }
 0x134   : > { %v3007_v54 = vpop.permute.xlu0 %3006  ;;  %5692 = vmatprep.subr.bf16.mxu1 %v5811_v0 }
 0x135   : > { %4401 = vrot.lane.b32.xlu1 %v6220_v58, %s5851_s30  ;;  %v3015_v55 = vsel %vm3014_vm7, %v3007_v54, %v3009_v5 }
 0x136   : > { %4399 = vrot.lane.b32.xlu0 %v6201_v53, %s5851_s30  ;;  %5398 = vmatmul.mubr.msk.bf16.vlgmr.msra.gmra.mxu0 %vm347_vm3, %v5796_v52  ;;  %v3022_v59 = vsel %vm351_vm2, %v3015_v55, 0 }
 0x137   : > { %5689 = vmatmul.mubr.msk.bf16.vlgmr.msra.gmra.mxu1 %vm347_vm3, %v5796_v52  ;;  %v3013_v56 = vpop.permute.xlu1 %3012  ;;  %3062 = vmatprep.mubr.bf16.mxu0 %v5812_v1 }
 0x138   : > { %v3011_v57 = vpop.permute.xlu0 %3010  ;;  %5694 = vmatprep.mubr.msk.bf16.mxu1 %vm5813_vm0, %v5811_v0 }
 0x139   : > { %v3016_v6 = vsel %vm3014_vm7, %v3009_v5, %v3011_v57  ;;  %v3017_v4 = vsel %vm3014_vm7, %v3011_v57, %v3013_v56  ;;  %4462 = vrot.lane.b32.xlu1 %v6201_v53, %s5819_s16  ;;  %vm3587_vm7 = vcmask 1022976  }
 0x13a   : > { %v3028_v60 = vsel %vm351_vm2, %v3017_v4, 0  ;;  %4460 = vrot.lane.b32.xlu0 %v6204_v7, %s5819_s16  ;;  %5403 = vmatprep.subr.msk.bf16.mxu0 %vm351_vm2, %v3016_v6 }
 0x13b   : > { %3045 = vmatpush1.bf16.msra.mxu0 %v3022_v59  ;;  %5693 = vmatpush3.bf16.msra.mxu1 %v3028_v60  ;;  %v3131_v62 = vpop.permute.xlu1 %3130 }
 0x13c   : > { %v3129_v63 = vpop.permute.xlu0 %3128  ;;  %5698 = vmatprep.subr.bf16.mxu1 %v5811_v0 }
 0x13d   : > { %4522 = vrot.lane.b32.xlu1 %v6204_v7, %s5820_s17  ;;  %v3137_v2 = vsel %vm3136_vm11, %v3129_v63, %v3131_v62 }
 0x13e   : > { %4464 = vrot.lane.b32.xlu0 %v6220_v58, %s5819_s16  ;;  %5404 = vmatmul.mubr.msk.bf16.vlgmr.msra.gmra.mxu0 %vm347_vm3, %v5797_v61  ;;  %v3144_v11 = vsel %vm351_vm2, %v3137_v2, 0  ;;  %s5856_s16 = smov 62  }
 0x13f   : > { %5695 = vmatmul.mubr.msk.bf16.vlgmr.msra.gmra.mxu1 %vm347_vm3, %v5797_v61  ;;  %v3135_v3 = vpop.permute.xlu1 %3134  ;;  %3184 = vmatprep.mubr.bf16.mxu0 %v5812_v1 }
 0x140   : > { %v3133_v8 = vpop.permute.xlu0 %3132  ;;  %5700 = vmatprep.mubr.msk.bf16.mxu1 %vm5813_vm0, %v5811_v0 }
 0x141   : > { %v3138_v9 = vsel %vm3136_vm11, %v3131_v62, %v3133_v8  ;;  %v3139_v10 = vsel %vm3136_vm11, %v3133_v8, %v3135_v3  ;;  %4526 = vrot.lane.b32.xlu1 %v6220_v58, %s5820_s17  ;;  %v5428_v3 = vld [vmem:[%s6906_s3 + $0x8] sm:$0xf]  ;;  %vm3650_vm11 = vcmask 957440  }
 0x142   : > { %v3150_v12 = vsel %vm351_vm2, %v3139_v10, 0  ;;  %4524 = vrot.lane.b32.xlu0 %v6201_v53, %s5820_s17  ;;  %5409 = vmatprep.subr.msk.bf16.mxu0 %vm351_vm2, %v3138_v9  ;;  %s5852_s17 = smov 73  }
 0x143   : > { %3167 = vmatpush1.bf16.msra.mxu0 %v3144_v11  ;;  %5699 = vmatpush3.bf16.msra.mxu1 %v3150_v12  ;;  %v3253_v14 = vpop.permute.xlu1 %3252 }
 0x144   : > { %v3251_v15 = vpop.permute.xlu0 %3250  ;;  %5704 = vmatprep.subr.bf16.mxu1 %v5811_v0 }
 0x145   : > { %4586 = vrot.lane.b32.xlu1 %v6201_v53, %s5821_s18  ;;  %v3259_v17 = vsel %vm3258_vm12, %v3251_v15, %v3253_v14 }
 0x146   : > { %4584 = vrot.lane.b32.xlu0 %v6204_v7, %s5821_s18  ;;  %5410 = vmatmul.mubr.msk.bf16.vlgmr.msra.gmra.mxu0 %vm347_vm3, %v5798_v13  ;;  %v3266_v24 = vsel %vm351_vm2, %v3259_v17, 0 }
 0x147   : > { %5701 = vmatmul.mubr.msk.bf16.vlgmr.msra.gmra.mxu1 %vm347_vm3, %v5798_v13  ;;  %v3257_v18 = vpop.permute.xlu1 %3256  ;;  %3306 = vmatprep.mubr.bf16.mxu0 %v5812_v1 }
 0x148   : > { %v3255_v19 = vpop.permute.xlu0 %3254  ;;  %5706 = vmatprep.mubr.msk.bf16.mxu1 %vm5813_vm0, %v5811_v0  ;;  %v5799_v0 = vld [vmem:[%s6905_s2 + $0xc0] sm:$0xff]   ;;  %vm3408_vm0 = vcmask 1039360  }
 0x149   : > { %v3260_v21 = vsel %vm3258_vm12, %v3253_v14, %v3255_v19  ;;  %v3261_v22 = vsel %vm3258_vm12, %v3255_v19, %v3257_v18  ;;  %4646 = vrot.lane.b32.xlu1 %v6204_v7, %s5852_s17  ;;  %v5431_v19 = vld [vmem:[%s6906_s3 + $0xc] sm:$0xf]  ;;  %vm3713_vm12 = vcmask 949248  }
 0x14a   : > { %v3272_v25 = vsel %vm351_vm2, %v3261_v22, 0  ;;  %4588 = vrot.lane.b32.xlu0 %v6220_v58, %s5821_s18  ;;  %5415 = vmatprep.subr.msk.bf16.mxu0 %vm351_vm2, %v3260_v21  ;;  %s5853_s18 = smov 72  }
 0x14b   : > { %3289 = vmatpush1.bf16.msra.mxu0 %v3266_v24  ;;  %5705 = vmatpush3.bf16.msra.mxu1 %v3272_v25  ;;  %v3405_v26 = vpop.permute.xlu1 %3404 }
 0x14c   : > { %v3403_v27 = vpop.permute.xlu0 %3402  ;;  %5426 = vmatprep.subr.msk.bf16.mxu1 %vm351_vm2, %v5425_v20 }
 0x14d   : > { %v438_v28 = vpop.f32.mrf.mxu1  ;;  %4650 = vrot.lane.b32.xlu1 %v6220_v58, %s5852_s17  ;;  %v3409_v31 = vsel %vm3408_vm0, %v3403_v27, %v3405_v26 }
 0x14e   : > { %v395_v30 = vpop.f32.mrf.mxu0  ;;  %4648 = vrot.lane.b32.xlu0 %v6201_v53, %s5852_s17  ;;  %5416 = vmatmul.mubr.msk.bf16.vlgmr.msra.gmra.mxu0 %vm347_vm3, %v5799_v0  ;;  %v3415_v38 = vsel %vm351_vm2, %v3409_v31, 0  ;;  %v5434_v31 = vld [vmem:[%s6906_s3 + $0x10] sm:$0xf] }
 0x14f   : > { %5707 = vmatmul.mubr.msk.bf16.vlgmr.msra.gmra.mxu1 %vm347_vm3, %v5799_v0  ;;  %v5564_v32 = vpop.f32.mrf.mxu1  ;;  %v3519_v33 = vpop.permute.xlu1 %3518  ;;  %3452 = vmatprep.mubr.bf16.mxu0 %v5812_v1 }
 0x150   : > { %v397_v34 = vpop.f32.mrf.mxu0  ;;  %v3407_v35 = vpop.permute.xlu0 %3406  ;;  %3490 = vmatpush1.bf16.msra.mxu1 %v3470_v29  ;;  %3507 = vmatprep.mubr.bf16.mxu1 %v5812_v1 }
 0x151   : > { %v3410_v36 = vsel %vm3408_vm0, %v3405_v26, %v3407_v35  ;;  %v441_v37 = vpop.f32.mrf.mxu1  ;;  %4711 = vrot.lane.b32.xlu1 %v6201_v53, %s5853_s18  ;;  %vm3776_vm0 = vcmask 941056  }
 0x152   : > { %v399_v39 = vpop.f32.mrf.mxu0  ;;  %4709 = vrot.lane.b32.xlu0 %v6204_v7, %s5853_s18  ;;  %5422 = vmatprep.subr.msk.bf16.mxu0 %vm351_vm2, %v3410_v36 }
 0x153   : > { %3435 = vmatpush1.bf16.msra.mxu0 %v3415_v38  ;;  %v5565_v40 = vpop.f32.mrf.mxu1  ;;  %v3523_v41 = vpop.permute.xlu1 %3522 }
 0x154   : > { %v401_v42 = vpop.f32.mrf.mxu0  ;;  %v3521_v43 = vpop.permute.xlu0 %3520 }
 0x155   : > { %v3525_v46 = vsel %vm3524_vm6, %v3519_v33, %v3521_v43  ;;  %v3526_v47 = vsel %vm3524_vm6, %v3521_v43, %v3523_v41  ;;  %4772 = vrot.lane.b32.xlu1 %v6204_v7, %s5854_s29  ;;  %vm3839_vm6 = vcmask 932864  }
 0x156   : > { %v3531_v48 = vsel %vm351_vm2, %v3525_v46, 0  ;;  %v508_v49 = vpop.f32.mrf.mxu0  ;;  %4713 = vrot.lane.b32.xlu0 %v6220_v58, %s5853_s18  ;;  %5429 = vmatprep.subr.msk.bf16.mxu0 %vm351_vm2, %v3526_v47 }
 0x157   : > { %v509_v50 = vadd.f32 %v508_v49, %v395_v30  ;;  %v551_v51 = vpop.f32.mrf.mxu1  ;;  %5423 = vmatmul.mubr.msk.bf16.vlgmr.msra.gmra.mxu0 %vm347_vm3, %v5418_v44  ;;  %v3584_v52 = vpop.permute.xlu1 %3583  ;;  %5427 = vmatmul.mubr.msk.bf16.vlgmr.msra.gmra.mxu1 %vm347_vm3, %v3389_v45 }
 0x158   : > { %v552_v5 = vadd.f32 %v551_v51, %v438_v28  ;;  %3551 = vmatpush1.bf16.msra.mxu0 %v3531_v48  ;;  %v510_v54 = vpop.f32.mrf.mxu0  ;;  %v3582_v55 = vpop.permute.xlu0 %3581  ;;  %3568 = vmatprep.mubr.bf16.mxu0 %v5812_v1 }
 0x159   : > { %v511_v56 = vadd.f32 %v510_v54, %v397_v34  ;;  %v5570_v57 = vpop.f32.mrf.mxu1  ;;  %4776 = vrot.lane.b32.xlu1 %v6220_v58, %s5854_s29  ;;  %3631 = vmatprep.mubr.bf16.mxu1 %v5812_v1  ;;  %v3588_v4 = vsel %vm3587_vm7, %v3582_v55, %v3584_v52 }
 0x15a   : > { %v512_v6 = vpop.f32.mrf.mxu0  ;;  %4774 = vrot.lane.b32.xlu0 %v6201_v53, %s5854_s29  ;;  %v3594_v11 = vsel %vm351_vm2, %v3588_v4, 0 }
 0x15b   : > { %v513_v59 = vadd.f32 %v512_v6, %v399_v39  ;;  %v554_v60 = vpop.f32.mrf.mxu1  ;;  %v3645_v61 = vpop.permute.xlu1 %3644 }
 0x15c   : > { %v555_v62 = vadd.f32 %v554_v60, %v441_v37  ;;  %v514_v63 = vpop.f32.mrf.mxu0  ;;  %v3586_v2 = vpop.permute.xlu0 %3585 }
 0x15d   : > { %v515_v8 = vadd.f32 %v514_v63, %v401_v42  ;;  %v5571_v9 = vpop.f32.mrf.mxu1  ;;  %v3589_v10 = vsel %vm3587_vm7, %v3584_v52, %v3586_v2  ;;  %4837 = vrot.lane.b32.xlu1 %v6201_v53, %s5855_s8  ;;  %vm3902_vm7 = vcmask 867328  }
 0x15e   : > { %v624_v12 = vpop.f32.mrf.mxu0  ;;  %4835 = vrot.lane.b32.xlu0 %v6204_v7, %s5855_s8  ;;  %5432 = vmatprep.subr.msk.bf16.mxu1 %vm351_vm2, %v3589_v10 }
 0x15f   : > { %v674_v13 = vadd.f32 %v624_v12, %v509_v50  ;;  %v667_v14 = vpop.f32.mrf.mxu1  ;;  %3614 = vmatpush1.bf16.msra.mxu1 %v3594_v11  ;;  %v3649_v15 = vpop.permute.xlu1 %3648  ;;  %5430 = vmatmul.mubr.msk.bf16.vlgmr.msra.gmra.mxu0 %vm347_vm3, %v5428_v3 }
 0x160   : > { %v676_v16 = vadd.f32 %v667_v14, %v552_v5  ;;  %v626_v17 = vpop.f32.mrf.mxu0  ;;  %v3647_v18 = vpop.permute.xlu0 %3646  ;;  %3694 = vmatprep.mubr.bf16.mxu0 %v5812_v1  ;;  %v5437_v5 = vld [vmem:[%s6906_s3 + $0x14] sm:$0xf] }
 0x161   : > { %v675_v20 = vadd.f32 %v626_v17, %v511_v56  ;;  %v5576_v21 = vpop.f32.mrf.mxu1  ;;  %v3651_v22 = vsel %vm3650_vm11, %v3645_v61, %v3647_v18  ;;  %v3652_v23 = vsel %vm3650_vm11, %v3647_v18, %v3649_v15  ;;  %4898 = vrot.lane.b32.xlu1 %v6204_v7, %s5856_s16  ;;  %vm4340_vm11 = vcmask 752640  }
 0x162   : > { %v3657_v24 = vsel %vm351_vm2, %v3651_v22, 0  ;;  %v628_v25 = vpop.f32.mrf.mxu0  ;;  %4839 = vrot.lane.b32.xlu0 %v6220_v58, %s5855_s8  ;;  %5435 = vmatprep.subr.msk.bf16.mxu0 %vm351_vm2, %v3652_v23  ;;  %v3364_v22 = vld [vmem:[%s6907_s4] sm:$0xff] }
 0x163   : > { %v677_v0 = vadd.f32 %v628_v25, %v513_v59  ;;  %v670_v26 = vpop.f32.mrf.mxu1  ;;  %3677 = vmatpush1.bf16.msra.mxu0 %v3657_v24  ;;  %v3710_v27 = vpop.permute.xlu1 %3709  ;;  %5433 = vmatmul.mubr.msk.bf16.vlgmr.msra.gmra.mxu1 %vm347_vm3, %v5431_v19 }
 0x164   : > { %v679_v28 = vadd.f32 %v670_v26, %v555_v62  ;;  %v630_v29 = vpop.f32.mrf.mxu0  ;;  %v3708_v30 = vpop.permute.xlu0 %3707  ;;  %3757 = vmatprep.mubr.bf16.mxu1 %v5812_v1  ;;  %v5440_v62 = vld [vmem:[%s6906_s3 + $0x18] sm:$0xf] }
 0x165   : > { %v678_v32 = vadd.f32 %v630_v29, %v515_v8  ;;  %v5577_v33 = vpop.f32.mrf.mxu1  ;;  %4902 = vrot.lane.b32.xlu1 %v6220_v58, %s5856_s16  ;;  %v3714_v35 = vsel %vm3713_vm12, %v3708_v30, %v3710_v27 }
 0x166   : > { %v746_v34 = vpop.f32.mrf.mxu0  ;;  %4900 = vrot.lane.b32.xlu0 %v6201_v53, %s5856_s16  ;;  %v3720_v45 = vsel %vm351_vm2, %v3714_v35, 0  ;;  %v5802_v33 = vld [vmem:[%s5921_s10 + $0x8] ss:$0 sps:$4 sm:$0xff]   ;;  %s5711_s10 = smul.u32 48, %s6912_s25 }
 0x167   : > { %v796_v36 = vadd.f32 %v746_v34, %v674_v13  ;;  %v789_v37 = vpop.f32.mrf.mxu1  ;;  %v3771_v38 = vpop.permute.xlu1 %3770  ;;  %5436 = vmatmul.mubr.msk.bf16.vlgmr.msra.gmra.mxu0 %vm347_vm3, %v5434_v31 }
 0x168   : > { %v798_v39 = vadd.f32 %v789_v37, %v676_v16  ;;  %v748_v40 = vpop.f32.mrf.mxu0  ;;  %v3712_v41 = vpop.permute.xlu0 %3711  ;;  %3820 = vmatprep.mubr.bf16.mxu0 %v5812_v1  ;;  %v5446_v37 = vld [vmem:[%s6906_s3 + $0x20] sm:$0xf]  ;;  %s306_s11 = scalar_lea.vmem %s6909_s6, %s5711_s10 }
 0x169   : > { %v797_v42 = vadd.f32 %v748_v40, %v675_v20  ;;  %v5582_v43 = vpop.f32.mrf.mxu1  ;;  %v3715_v44 = vsel %vm3713_vm12, %v3710_v27, %v3712_v41  ;;  %4963 = vrot.lane.b32.xlu1 %v6201_v53, %s5824_s21  ;;  %v5443_v27 = vld [vmem:[%s6906_s3 + $0x1c] sm:$0xf]  ;;  %vm4403_vm12 = vcmask 687104  }
 0x16a   : > { %v750_v46 = vpop.f32.mrf.mxu0  ;;  %4961 = vrot.lane.b32.xlu0 %v6204_v7, %s5824_s21  ;;  %5438 = vmatprep.subr.msk.bf16.mxu1 %vm351_vm2, %v3715_v44 }
 0x16b   : > { %v799_v47 = vadd.f32 %v750_v46, %v677_v0  ;;  %v792_v48 = vpop.f32.mrf.mxu1  ;;  %3740 = vmatpush1.bf16.msra.mxu1 %v3720_v45  ;;  %v3775_v49 = vpop.permute.xlu1 %3774 }
 0x16c   : > { %v801_v50 = vadd.f32 %v792_v48, %v679_v28  ;;  %v752_v51 = vpop.f32.mrf.mxu0  ;;  %v3773_v52 = vpop.permute.xlu0 %3772 }
 0x16d   : > { %v800_v54 = vadd.f32 %v752_v51, %v678_v32  ;;  %v5583_v55 = vpop.f32.mrf.mxu1  ;;  %v3777_v56 = vsel %vm3776_vm0, %v3771_v38, %v3773_v52  ;;  %v3778_v57 = vsel %vm3776_vm0, %v3773_v52, %v3775_v49  ;;  %5023 = vrot.lane.b32.xlu1 %v6204_v7, %s5825_s22  ;;  %v3365_v38 = vld [vmem:[%s6907_s4 + $0x8] sm:$0xff]  ;;  %vm4841_vm0 = vcmask 572416  }
 0x16e   : > { %v3783_v6 = vsel %vm351_vm2, %v3777_v56, 0  ;;  %v868_v4 = vpop.f32.mrf.mxu0  ;;  %4965 = vrot.lane.b32.xlu0 %v6220_v58, %s5824_s21  ;;  %5441 = vmatprep.subr.msk.bf16.mxu0 %vm351_vm2, %v3778_v57 }
 0x16f   : > { %v918_v59 = vadd.f32 %v868_v4, %v796_v36  ;;  %v911_v60 = vpop.f32.mrf.mxu1  ;;  %3803 = vmatpush1.bf16.msra.mxu0 %v3783_v6  ;;  %v3836_v61 = vpop.permute.xlu1 %3835  ;;  %5439 = vmatmul.mubr.msk.bf16.vlgmr.msra.gmra.mxu1 %vm347_vm3, %v5437_v5 }
 0x170   : > { %v920_v63 = vadd.f32 %v911_v60, %v798_v39  ;;  %v870_v2 = vpop.f32.mrf.mxu0  ;;  %v3834_v3 = vpop.permute.xlu0 %3833  ;;  %3883 = vmatprep.mubr.bf16.mxu1 %v5812_v1 }
 0x171   : > { %v919_v8 = vadd.f32 %v870_v2, %v797_v42  ;;  %v5588_v9 = vpop.f32.mrf.mxu1  ;;  %5027 = vrot.lane.b32.xlu1 %v6220_v58, %s5825_s22  ;;  %v3840_v11 = vsel %vm3839_vm6, %v3834_v3, %v3836_v61 }
 0x172   : > { %v872_v10 = vpop.f32.mrf.mxu0  ;;  %5025 = vrot.lane.b32.xlu0 %v6201_v53, %s5825_s22  ;;  %5442 = vmatmul.mubr.msk.bf16.vlgmr.msra.gmra.mxu0 %vm347_vm3, %v5440_v62  ;;  %v3846_v20 = vsel %vm351_vm2, %v3840_v11, 0 }
 0x173   : > { %v921_v12 = vadd.f32 %v872_v10, %v799_v47  ;;  %v914_v13 = vpop.f32.mrf.mxu1  ;;  %v3897_v14 = vpop.permute.xlu1 %3896  ;;  %3946 = vmatprep.mubr.bf16.mxu0 %v5812_v1 }
 0x174   : > { %v923_v15 = vadd.f32 %v914_v13, %v801_v50  ;;  %v874_v16 = vpop.f32.mrf.mxu0  ;;  %v3838_v17 = vpop.permute.xlu0 %3837 }
 0x175   : > { %v922_v18 = vadd.f32 %v874_v16, %v800_v54  ;;  %v5589_v19 = vpop.f32.mrf.mxu1  ;;  %v3841_v58 = vsel %vm3839_vm6, %v3836_v61, %v3838_v17  ;;  %5087 = vrot.lane.b32.xlu1 %v6201_v53, %s5826_s23  ;;  %vm4904_vm6 = vcmask 506880  }
 0x176   : > { %v990_v21 = vpop.f32.mrf.mxu0  ;;  %5085 = vrot.lane.b32.xlu0 %v6204_v7, %s5826_s23  ;;  %5444 = vmatprep.subr.msk.bf16.mxu1 %vm351_vm2, %v3841_v58 }
 0x177   : > { %v1040_v23 = vadd.f32 %v990_v21, %v918_v59  ;;  %v1033_v24 = vpop.f32.mrf.mxu1  ;;  %3866 = vmatpush1.bf16.msra.mxu1 %v3846_v20  ;;  %v3901_v25 = vpop.permute.xlu1 %3900  ;;  %v5449_v59 = vld [vmem:[%s6906_s3 + $0x24] sm:$0xf] }
 0x178   : > { %v1042_v0 = vadd.f32 %v1033_v24, %v920_v63  ;;  %v992_v53 = vpop.f32.mrf.mxu0  ;;  %v3899_v26 = vpop.permute.xlu0 %3898 }
 0x179   : > { %v1041_v7 = vadd.f32 %v992_v53, %v919_v8  ;;  %v5594_v28 = vpop.f32.mrf.mxu1  ;;  %v3903_v29 = vsel %vm3902_vm7, %v3897_v14, %v3899_v26  ;;  %v3904_v30 = vsel %vm3902_vm7, %v3899_v26, %v3901_v25  ;;  %3368 = vperm.xlu1 %5766, %v3364_v22   ;;  %v5452_v14 = vld [vmem:[%s6906_s3 + $0x28] sm:$0xf] }
 0x17a   : > { %v3909_v31 = vsel %vm351_vm2, %v3903_v29, 0  ;;  %v994_v32 = vpop.f32.mrf.mxu0  ;;  %5089 = vrot.lane.b32.xlu0 %v5802_v33, %s5826_s23  ;;  %5447 = vmatprep.subr.msk.bf16.mxu0 %vm351_vm2, %v3904_v30 }
 0x17b   : > { %v1043_v34 = vadd.f32 %v994_v32, %v921_v12  ;;  %v1036_v35 = vpop.f32.mrf.mxu1  ;;  %3929 = vmatpush1.bf16.msra.mxu0 %v3909_v31  ;;  %v3962_v36 = vpop.permute.xlu1 %3961  ;;  %5445 = vmatmul.mubr.msk.bf16.vlgmr.msra.gmra.mxu1 %vm347_vm3, %v5443_v27  ;;  %v5455_v32 = vld [vmem:[%s6906_s3 + $0x2c] sm:$0xf] }
 0x17c   : > { %v1045_v39 = vadd.f32 %v1036_v35, %v923_v15  ;;  %v996_v40 = vpop.f32.mrf.mxu0  ;;  %v3960_v41 = vpop.permute.xlu0 %3959  ;;  %4008 = vmatprep.mubr.bf16.mxu1 %v5812_v1 }
 0x17d   : > { %v1044_v42 = vadd.f32 %v996_v40, %v922_v18  ;;  %v5595_v43 = vpop.f32.mrf.mxu1  ;;  %v3965_v45 = vsel %vm458_vm4, %v3960_v41, %v3962_v36 }
 0x17e   : > { %v1112_v44 = vpop.f32.mrf.mxu0  ;;  %5448 = vmatmul.mubr.msk.bf16.vlgmr.msra.gmra.mxu0 %vm347_vm3, %v5446_v37  ;;  %3373 = vperm.xlu0 %5767, %v3365_v38   ;;  %v3971_v55 = vsel %vm351_vm2, %v3965_v45, 0  ;;  %v5458_v45 = vld [vmem:[%s6906_s3 + $0x30] sm:$0xf] }
 0x17f   : > { %v1162_v46 = vadd.f32 %v1112_v44, %v1040_v23  ;;  %v1155_v47 = vpop.f32.mrf.mxu1  ;;  %v4022_v48 = vpop.permute.xlu1 %4021  ;;  %4070 = vmatprep.mubr.bf16.mxu0 %v5812_v1 }
 0x180   : > { %v1164_v49 = vadd.f32 %v1155_v47, %v1042_v0  ;;  %v1114_v50 = vpop.f32.mrf.mxu0  ;;  %v3964_v51 = vpop.permute.xlu0 %3963 }
 0x181   : > { %v1163_v52 = vadd.f32 %v1114_v50, %v1041_v7  ;;  %v5600_v5 = vpop.f32.mrf.mxu1  ;;  %v3966_v54 = vsel %vm458_vm4, %v3962_v36, %v3964_v51  ;;  %vm4214_vm4 = vcmask 769024  }
 0x182   : > { %v1116_v56 = vpop.f32.mrf.mxu0  ;;  %5450 = vmatprep.subr.msk.bf16.mxu1 %vm351_vm2, %v3966_v54 }
 0x183   : > { %v1165_v57 = vadd.f32 %v1116_v56, %v1043_v34  ;;  %v1158_v6 = vpop.f32.mrf.mxu1  ;;  %3991 = vmatpush1.bf16.msra.mxu1 %v3971_v55  ;;  %v4026_v4 = vpop.permute.xlu1 %4025 }
 0x184   : > { %v1167_v60 = vadd.f32 %v1158_v6, %v1045_v39  ;;  %v1118_v61 = vpop.f32.mrf.mxu0  ;;  %v4024_v62 = vpop.permute.xlu0 %4023 }
 0x185   : > { %v1166_v63 = vadd.f32 %v1118_v61, %v1044_v42  ;;  %v5601_v2 = vpop.f32.mrf.mxu1  ;;  %v4027_v3 = vsel %vm343_vm1, %v4022_v48, %v4024_v62  ;;  %v4028_v8 = vsel %vm343_vm1, %v4024_v62, %v4026_v4  ;;  %vm4151_vm1 = vcmask 777216  }
 0x186   : > { %v4033_v9 = vsel %vm351_vm2, %v4027_v3, 0  ;;  %v1234_v10 = vpop.f32.mrf.mxu0  ;;  %5453 = vmatprep.subr.msk.bf16.mxu0 %vm351_vm2, %v4028_v8  ;;  %5451 = vmatmul.mubr.msk.bf16.vlgmr.msra.gmra.mxu1 %vm347_vm3, %v5449_v59  ;;  %v5461_v8 = vld [vmem:[%s6906_s3 + $0x34] sm:$0xf] }
 0x187   : > { %v1284_v11 = vadd.f32 %v1234_v10, %v1162_v46  ;;  %v1277_v12 = vpop.f32.mrf.mxu1  ;;  %4053 = vmatpush1.bf16.msra.mxu0 %v4033_v9  ;;  %v4086_v13 = vpop.permute.xlu1 %4085  ;;  %4132 = vmatprep.mubr.bf16.mxu1 %v5812_v1 }
 0x188   : > { %v1286_v15 = vadd.f32 %v1277_v12, %v1164_v49  ;;  %v1236_v16 = vpop.f32.mrf.mxu0  ;;  %v4084_v17 = vpop.permute.xlu0 %4083 }
 0x189   : > { %v1285_v18 = vadd.f32 %v1236_v16, %v1163_v52  ;;  %v5606_v19 = vpop.f32.mrf.mxu1  ;;  %v4089_v20 = vsel %vm574_vm5, %v4084_v17, %v4086_v13 }
 0x18a   : > { %v1238_v58 = vpop.f32.mrf.mxu0  ;;  %5454 = vmatmul.mubr.msk.bf16.vlgmr.msra.gmra.mxu0 %vm347_vm3, %v5452_v14  ;;  %v4095_v7 = vsel %vm351_vm2, %v4089_v20, 0 }
 0x18b   : > { %v1287_v21 = vadd.f32 %v1238_v58, %v1165_v57  ;;  %v1280_v22 = vpop.f32.mrf.mxu1  ;;  %v4146_v23 = vpop.permute.xlu1 %4145  ;;  %4195 = vmatprep.mubr.bf16.mxu0 %v5812_v1  ;;  %v5464_v58 = vld [vmem:[%s6906_s3 + $0x38] sm:$0xf] }
 0x18c   : > { %v1289_v24 = vadd.f32 %v1280_v22, %v1167_v60  ;;  %v1240_v25 = vpop.f32.mrf.mxu0  ;;  %v4088_v0 = vpop.permute.xlu0 %4087 }
 0x18d   : > { %v1288_v53 = vadd.f32 %v1240_v25, %v1166_v63  ;;  %v5607_v26 = vpop.f32.mrf.mxu1  ;;  %v4090_v27 = vsel %vm574_vm5, %v4086_v13, %v4088_v0  ;;  %vm4277_vm5 = vcmask 760832   ;;  %v5145_v0 = vld [vmem:[%s6908_s5] sm:$0xff] }
 0x18e   : > { %v1356_v28 = vpop.f32.mrf.mxu0  ;;  %5456 = vmatprep.subr.msk.bf16.mxu1 %vm351_vm2, %v4090_v27  ;;  %5148 = vperm.xlu1 %5766, %v5145_v0  }
 0x18f   : > { %v1406_v29 = vadd.f32 %v1356_v28, %v1284_v11  ;;  %v1399_v30 = vpop.f32.mrf.mxu1  ;;  %4115 = vmatpush1.bf16.msra.mxu1 %v4095_v7  ;;  %v4150_v31 = vpop.permute.xlu1 %4149 }
 0x190   : > { %v1408_v33 = vadd.f32 %v1399_v30, %v1286_v15  ;;  %v1358_v34 = vpop.f32.mrf.mxu0  ;;  %v4148_v35 = vpop.permute.xlu0 %4147 }
 0x191   : > { %v1407_v36 = vadd.f32 %v1358_v34, %v1285_v18  ;;  %v5612_v37 = vpop.f32.mrf.mxu1  ;;  %v4152_v38 = vsel %vm4151_vm1, %v4146_v23, %v4148_v35  ;;  %v4153_v39 = vsel %vm4151_vm1, %v4148_v35, %v4150_v31 }
 0x192   : > { %v4158_v40 = vsel %vm351_vm2, %v4152_v38, 0  ;;  %v1360_v41 = vpop.f32.mrf.mxu0  ;;  %5459 = vmatprep.subr.msk.bf16.mxu0 %vm351_vm2, %v4153_v39  ;;  %5457 = vmatmul.mubr.msk.bf16.vlgmr.msra.gmra.mxu1 %vm347_vm3, %v5455_v32  ;;  %v5467_v38 = vld [vmem:[%s6906_s3 + $0x3c] sm:$0xf] }
 0x193   : > { %v1409_v42 = vadd.f32 %v1360_v41, %v1287_v21  ;;  %v1402_v43 = vpop.f32.mrf.mxu1  ;;  %4178 = vmatpush1.bf16.msra.mxu0 %v4158_v40  ;;  %v4211_v44 = vpop.permute.xlu1 %4210  ;;  %4258 = vmatprep.mubr.bf16.mxu1 %v5812_v1 }
 0x194   : > { %v1411_v46 = vadd.f32 %v1402_v43, %v1289_v24  ;;  %v1362_v47 = vpop.f32.mrf.mxu0  ;;  %v4209_v48 = vpop.permute.xlu0 %4208 }
 0x195   : > { %v6620_v49 = vadd.f32 %v1362_v47, %v1288_v53  ;;  %v5613_v50 = vpop.f32.mrf.mxu1  ;;  %v4215_v52 = vsel %vm4214_vm4, %v4209_v48, %v4211_v44 }
 0x196   : > { %v1478_v51 = vpop.f32.mrf.mxu0  ;;  %5460 = vmatmul.mubr.msk.bf16.vlgmr.msra.gmra.mxu0 %vm347_vm3, %v5458_v45  ;;  %v4221_v61 = vsel %vm351_vm2, %v4215_v52, 0 }
 0x197   : > { %v1528_v5 = vadd.f32 %v1478_v51, %v1406_v29  ;;  %v1521_v54 = vpop.f32.mrf.mxu1  ;;  %v4272_v55 = vpop.permute.xlu1 %4271  ;;  %4321 = vmatprep.mubr.bf16.mxu0 %v5812_v1 }
 0x198   : > { %v1530_v56 = vadd.f32 %v1521_v54, %v1408_v33  ;;  %v1480_v57 = vpop.f32.mrf.mxu0  ;;  %v4213_v6 = vpop.permute.xlu0 %4212 }
 0x199   : > { %v1529_v4 = vadd.f32 %v1480_v57, %v1407_v36  ;;  %v5618_v59 = vpop.f32.mrf.mxu1  ;;  %v4216_v60 = vsel %vm4214_vm4, %v4211_v44, %v4213_v6 }
 0x19a   : > { %v1482_v62 = vpop.f32.mrf.mxu0  ;;  %5462 = vmatprep.subr.msk.bf16.mxu1 %vm351_vm2, %v4216_v60 }
 0x19b   : > { %v1531_v63 = vadd.f32 %v1482_v62, %v1409_v42  ;;  %v1524_v2 = vpop.f32.mrf.mxu1  ;;  %4241 = vmatpush1.bf16.msra.mxu1 %v4221_v61  ;;  %v4276_v3 = vpop.permute.xlu1 %4275 }
 0x19c   : > { %v1533_v9 = vadd.f32 %v1524_v2, %v1411_v46  ;;  %v1484_v10 = vpop.f32.mrf.mxu0  ;;  %v4274_v11 = vpop.permute.xlu0 %4273 }
 0x19d   : > { %v5619_v12 = vpop.f32.mrf.mxu1  ;;  %v4278_v13 = vsel %vm4277_vm5, %v4272_v55, %v4274_v11  ;;  %v4279_v14 = vsel %vm4277_vm5, %v4274_v11, %v4276_v3  ;;  %v1532_v42 = vadd.f32 %v1484_v10, %v6620_v49  ;;  %v5470_v49 = vld [vmem:[%s6906_s3 + $0x40] sm:$0xf] }
 0x19e   : > { %v4284_v15 = vsel %vm351_vm2, %v4278_v13, 0  ;;  %v1600_v16 = vpop.f32.mrf.mxu0  ;;  %5465 = vmatprep.subr.msk.bf16.mxu0 %vm351_vm2, %v4279_v14  ;;  %5463 = vmatmul.mubr.msk.bf16.vlgmr.msra.gmra.mxu1 %vm347_vm3, %v5461_v8 }
 0x19f   : > { %v1650_v17 = vadd.f32 %v1600_v16, %v1528_v5  ;;  %v1643_v18 = vpop.f32.mrf.mxu1  ;;  %4304 = vmatpush1.bf16.msra.mxu0 %v4284_v15  ;;  %v4337_v19 = vpop.permute.xlu1 %4336  ;;  %4384 = vmatprep.mubr.bf16.mxu1 %v5812_v1  ;;  %v5473_v16 = vld [vmem:[%s6906_s3 + $0x44] sm:$0xf] }
 0x1a0   : > { %v1652_v20 = vadd.f32 %v1643_v18, %v1530_v56  ;;  %v1602_v21 = vpop.f32.mrf.mxu0  ;;  %v4335_v22 = vpop.permute.xlu0 %4334 }
 0x1a1   : > { %v1651_v23 = vadd.f32 %v1602_v21, %v1529_v4  ;;  %v5624_v24 = vpop.f32.mrf.mxu1  ;;  %v4341_v53 = vsel %vm4340_vm11, %v4335_v22, %v4337_v19 }
 0x1a2   : > { %v1604_v25 = vpop.f32.mrf.mxu0  ;;  %5466 = vmatmul.mubr.msk.bf16.vlgmr.msra.gmra.mxu0 %vm347_vm3, %v5464_v58  ;;  %v4347_v33 = vsel %vm351_vm2, %v4341_v53, 0 }
 0x1a3   : > { %v1653_v26 = vadd.f32 %v1604_v25, %v1531_v63  ;;  %v1646_v27 = vpop.f32.mrf.mxu1  ;;  %v4398_v7 = vpop.permute.xlu1 %4397  ;;  %4447 = vmatprep.mubr.bf16.mxu0 %v5812_v1 }
 0x1a4   : > { %v1655_v28 = vadd.f32 %v1646_v27, %v1533_v9  ;;  %v1606_v29 = vpop.f32.mrf.mxu0  ;;  %v4339_v30 = vpop.permute.xlu0 %4338 }
 0x1a5   : > { %v5625_v31 = vpop.f32.mrf.mxu1  ;;  %v4342_v32 = vsel %vm4340_vm11, %v4337_v19, %v4339_v30  ;;  %v1654_v50 = vadd.f32 %v1606_v29, %v1532_v42 }
 0x1a6   : > { %v1722_v34 = vpop.f32.mrf.mxu0  ;;  %5468 = vmatprep.subr.msk.bf16.mxu1 %vm351_vm2, %v4342_v32 }
 0x1a7   : > { %v1772_v35 = vadd.f32 %v1722_v34, %v1650_v17  ;;  %v1765_v36 = vpop.f32.mrf.mxu1  ;;  %4367 = vmatpush1.bf16.msra.mxu1 %v4347_v33  ;;  %v4402_v37 = vpop.permute.xlu1 %4401 }
 0x1a8   : > { %v1774_v39 = vadd.f32 %v1765_v36, %v1652_v20  ;;  %v1724_v40 = vpop.f32.mrf.mxu0  ;;  %v4400_v41 = vpop.permute.xlu0 %4399 }
 0x1a9   : > { %v1773_v43 = vadd.f32 %v1724_v40, %v1651_v23  ;;  %v5630_v44 = vpop.f32.mrf.mxu1  ;;  %v4404_v45 = vsel %vm4403_vm12, %v4398_v7, %v4400_v41  ;;  %v4405_v46 = vsel %vm4403_vm12, %v4400_v41, %v4402_v37 }
 0x1aa   : > { %v4410_v47 = vsel %vm351_vm2, %v4404_v45, 0  ;;  %v1726_v48 = vpop.f32.mrf.mxu0  ;;  %5469 = vmatmul.mubr.msk.bf16.vlgmr.msra.gmra.mxu1 %vm347_vm3, %v5467_v38  ;;  %5471 = vmatprep.subr.msk.bf16.mxu0 %vm351_vm2, %v4405_v46  ;;  %v5479_v46 = vld [vmem:[%s6906_s3 + $0x4c] sm:$0xf] }
 0x1ab   : > { %v1775_v51 = vadd.f32 %v1726_v48, %v1653_v26  ;;  %v1768_v52 = vpop.f32.mrf.mxu1  ;;  %4430 = vmatpush1.bf16.msra.mxu0 %v4410_v47  ;;  %v4463_v5 = vpop.permute.xlu1 %4462  ;;  %4509 = vmatprep.mubr.bf16.mxu1 %v5812_v1  ;;  %v5476_v26 = vld [vmem:[%s6906_s3 + $0x48] sm:$0xf] }
 0x1ac   : > { %v1777_v54 = vadd.f32 %v1768_v52, %v1655_v28  ;;  %v1728_v55 = vpop.f32.mrf.mxu0  ;;  %v4461_v56 = vpop.permute.xlu0 %4460 }
 0x1ad   : > { %v1776_v57 = vadd.f32 %v1728_v55, %v1654_v50  ;;  %v5631_v6 = vpop.f32.mrf.mxu1  ;;  %v4466_v59 = vsel %vm940_vm8, %v4461_v56, %v4463_v5  ;;  %v5482_v56 = vld [vmem:[%s6906_s3 + $0x50] sm:$0xf] }
 0x1ae   : > { %v1844_v4 = vpop.f32.mrf.mxu0  ;;  %5472 = vmatmul.mubr.msk.bf16.vlgmr.msra.gmra.mxu0 %vm347_vm3, %v5470_v49  ;;  %v4472_v11 = vsel %vm351_vm2, %v4466_v59, 0 }
 0x1af   : > { %v1894_v60 = vadd.f32 %v1844_v4, %v1772_v35  ;;  %v1887_v61 = vpop.f32.mrf.mxu1  ;;  %v4523_v62 = vpop.permute.xlu1 %4522  ;;  %4571 = vmatprep.mubr.bf16.mxu0 %v5812_v1 }
 0x1b0   : > { %v1896_v63 = vadd.f32 %v1887_v61, %v1774_v39  ;;  %v1846_v2 = vpop.f32.mrf.mxu0  ;;  %v4465_v3 = vpop.permute.xlu0 %4464 }
 0x1b1   : > { %v1895_v8 = vadd.f32 %v1846_v2, %v1773_v43  ;;  %v5636_v9 = vpop.f32.mrf.mxu1  ;;  %v4467_v10 = vsel %vm940_vm8, %v4463_v5, %v4465_v3  ;;  %vm4652_vm8 = vcmask 596992  }
 0x1b2   : > { %v1848_v12 = vpop.f32.mrf.mxu0  ;;  %5474 = vmatprep.subr.msk.bf16.mxu1 %vm351_vm2, %v4467_v10 }
 0x1b3   : > { %v1897_v13 = vadd.f32 %v1848_v12, %v1775_v51  ;;  %v1890_v14 = vpop.f32.mrf.mxu1  ;;  %4492 = vmatpush1.bf16.msra.mxu1 %v4472_v11  ;;  %v4527_v15 = vpop.permute.xlu1 %4526 }
 0x1b4   : > { %v1899_v17 = vadd.f32 %v1890_v14, %v1777_v54  ;;  %v1850_v18 = vpop.f32.mrf.mxu0  ;;  %v4525_v19 = vpop.permute.xlu0 %4524 }
 0x1b5   : > { %v1898_v58 = vadd.f32 %v1850_v18, %v1776_v57  ;;  %v5637_v20 = vpop.f32.mrf.mxu1  ;;  %v4528_v21 = vsel %vm1062_vm9, %v4523_v62, %v4525_v19  ;;  %v4529_v22 = vsel %vm1062_vm9, %v4525_v19, %v4527_v15  ;;  %vm4715_vm9 = vcmask 588800  }
 0x1b6   : > { %v4534_v23 = vsel %vm351_vm2, %v4528_v21, 0  ;;  %v1966_v24 = vpop.f32.mrf.mxu0  ;;  %5475 = vmatmul.mubr.msk.bf16.vlgmr.msra.gmra.mxu1 %vm347_vm3, %v5473_v16  ;;  %5477 = vmatprep.subr.msk.bf16.mxu0 %vm351_vm2, %v4529_v22  ;;  %v5488_v22 = vld [vmem:[%s6906_s3 + $0x58] sm:$0xf] }
 0x1b7   : > { %v6672_v25 = vadd.f32 %v1966_v24, %v1894_v60  ;;  %v2009_v0 = vpop.f32.mrf.mxu1  ;;  %4554 = vmatpush1.bf16.msra.mxu0 %v4534_v23  ;;  %v4587_v53 = vpop.permute.xlu1 %4586  ;;  %4633 = vmatprep.mubr.bf16.mxu1 %v5812_v1 }
 0x1b8   : > { %v6678_v27 = vadd.f32 %v2009_v0, %v1896_v63  ;;  %v1968_v7 = vpop.f32.mrf.mxu0  ;;  %v4585_v28 = vpop.permute.xlu0 %4584 }
 0x1b9   : > { %v6680_v29 = vadd.f32 %v1968_v7, %v1895_v8  ;;  %v5642_v30 = vpop.f32.mrf.mxu1  ;;  %v4590_v32 = vsel %vm1184_vm10, %v4585_v28, %v4587_v53 }
 0x1ba   : > { %v1970_v31 = vpop.f32.mrf.mxu0  ;;  %5478 = vmatmul.mubr.msk.bf16.vlgmr.msra.gmra.mxu0 %vm347_vm3, %v5476_v26  ;;  %v4596_v42 = vsel %vm351_vm2, %v4590_v32, 0 }
 0x1bb   : > { %v6684_v33 = vadd.f32 %v1970_v31, %v1897_v13  ;;  %v2012_v34 = vpop.f32.mrf.mxu1  ;;  %v4647_v35 = vpop.permute.xlu1 %4646  ;;  %4696 = vmatprep.mubr.bf16.mxu0 %v5812_v1  ;;  %v5485_v13 = vld [vmem:[%s6906_s3 + $0x54] sm:$0xf] }
 0x1bc   : > { %v6687_v36 = vadd.f32 %v2012_v34, %v1899_v17  ;;  %v1972_v37 = vpop.f32.mrf.mxu0  ;;  %v4589_v38 = vpop.permute.xlu0 %4588 }
 0x1bd   : > { %v6689_v39 = vadd.f32 %v1972_v37, %v1898_v58  ;;  %v5643_v40 = vpop.f32.mrf.mxu1  ;;  %v4591_v41 = vsel %vm1184_vm10, %v4587_v53, %v4589_v38  ;;  %vm4778_vm10 = vcmask 580608  }
 0x1be   : > { %v6693_v43 = vpop.f32.mrf.mxu0  ;;  %5480 = vmatprep.subr.msk.bf16.mxu1 %vm351_vm2, %v4591_v41  ;;  %v5491_v41 = vld [vmem:[%s6906_s3 + $0x5c] sm:$0xf] }
 0x1bf   : > { %v6696_v44 = vpop.f32.mrf.mxu1  ;;  %4616 = vmatpush1.bf16.msra.mxu1 %v4596_v42  ;;  %v4651_v45 = vpop.permute.xlu1 %4650 }
 0x1c0   : > { %v6701_v47 = vpop.f32.mrf.mxu0  ;;  %v4649_v48 = vpop.permute.xlu0 %4648 }
 0x1c1   : > { %v5648_v50 = vpop.f32.mrf.mxu1  ;;  %v4653_v51 = vsel %vm4652_vm8, %v4647_v35, %v4649_v48  ;;  %v4654_v52 = vsel %vm4652_vm8, %v4649_v48, %v4651_v45 }
 0x1c2   : > { %v4659_v5 = vsel %vm351_vm2, %v4653_v51, 0  ;;  %v6704_v49 = vpop.f32.mrf.mxu0  ;;  %5481 = vmatmul.mubr.msk.bf16.vlgmr.msra.gmra.mxu1 %vm347_vm3, %v5479_v46  ;;  %5483 = vmatprep.subr.msk.bf16.mxu0 %vm351_vm2, %v4654_v52 }
 0x1c3   : > { %v6708_v54 = vpop.f32.mrf.mxu1  ;;  %4679 = vmatpush1.bf16.msra.mxu0 %v4659_v5  ;;  %v4712_v55 = vpop.permute.xlu1 %4711  ;;  %4759 = vmatprep.mubr.bf16.mxu1 %v5812_v1 }
 0x1c4   : > { %v6714_v57 = vpop.f32.mrf.mxu0  ;;  %v4710_v6 = vpop.permute.xlu0 %4709 }
 0x1c5   : > { %v5649_v4 = vpop.f32.mrf.mxu1  ;;  %v4716_v60 = vsel %vm4715_vm9, %v4710_v6, %v4712_v55 }
 0x1c6   : > { %v6716_v59 = vpop.f32.mrf.mxu0  ;;  %5484 = vmatmul.mubr.msk.bf16.vlgmr.msra.gmra.mxu0 %vm347_vm3, %v5482_v56  ;;  %v4722_v9 = vsel %vm351_vm2, %v4716_v60, 0  ;;  %v5494_v56 = vld [vmem:[%s6906_s3 + $0x60] sm:$0xf] }
 0x1c7   : > { %v6719_v61 = vpop.f32.mrf.mxu1  ;;  %v4773_v62 = vpop.permute.xlu1 %4772  ;;  %4822 = vmatprep.mubr.bf16.mxu0 %v5812_v1 }
 0x1c8   : > { %v6722_v63 = vpop.f32.mrf.mxu0  ;;  %v4714_v2 = vpop.permute.xlu0 %4713 }
 0x1c9   : > { %v5654_v3 = vpop.f32.mrf.mxu1  ;;  %v4717_v8 = vsel %vm4715_vm9, %v4712_v55, %v4714_v2 }
 0x1ca   : > { %v6725_v10 = vpop.f32.mrf.mxu0  ;;  %5486 = vmatprep.subr.msk.bf16.mxu1 %vm351_vm2, %v4717_v8 }
 0x1cb   : > { %v6728_v11 = vpop.f32.mrf.mxu1  ;;  %4742 = vmatpush1.bf16.msra.mxu1 %v4722_v9  ;;  %v4777_v12 = vpop.permute.xlu1 %4776 }
 0x1cc   : > { %v6733_v14 = vpop.f32.mrf.mxu0  ;;  %v4775_v15 = vpop.permute.xlu0 %4774 }
 0x1cd   : > { %v5655_v16 = vpop.f32.mrf.mxu1  ;;  %v4779_v17 = vsel %vm4778_vm10, %v4773_v62, %v4775_v15  ;;  %v4780_v18 = vsel %vm4778_vm10, %v4775_v15, %v4777_v12 }
 0x1ce   : > { %v4785_v19 = vsel %vm351_vm2, %v4779_v17, 0  ;;  %v6736_v58 = vpop.f32.mrf.mxu0  ;;  %5487 = vmatmul.mubr.msk.bf16.vlgmr.msra.gmra.mxu1 %vm347_vm3, %v5485_v13  ;;  %5489 = vmatprep.subr.msk.bf16.mxu0 %vm351_vm2, %v4780_v18 }
 0x1cf   : > { %v6740_v20 = vpop.f32.mrf.mxu1  ;;  %4805 = vmatpush1.bf16.msra.mxu0 %v4785_v19  ;;  %v4838_v21 = vpop.permute.xlu1 %4837  ;;  %4885 = vmatprep.mubr.bf16.mxu1 %v5812_v1 }
 0x1d0   : > { %v6746_v23 = vpop.f32.mrf.mxu0  ;;  %v4836_v24 = vpop.permute.xlu0 %4835 }
 0x1d1   : > { %v5660_v0 = vpop.f32.mrf.mxu1  ;;  %v4842_v26 = vsel %vm4841_vm0, %v4836_v24, %v4838_v21 }
 0x1d2   : > { %v6748_v53 = vpop.f32.mrf.mxu0  ;;  %5490 = vmatmul.mubr.msk.bf16.vlgmr.msra.gmra.mxu0 %vm347_vm3, %v5488_v22  ;;  %v4848_v35 = vsel %vm351_vm2, %v4842_v26, 0 }
 0x1d3   : > { %v6751_v7 = vpop.f32.mrf.mxu1  ;;  %v4899_v28 = vpop.permute.xlu1 %4898  ;;  %4948 = vmatprep.mubr.bf16.mxu0 %v5812_v1 }
 0x1d4   : > { %v6754_v30 = vpop.f32.mrf.mxu0  ;;  %v4840_v31 = vpop.permute.xlu0 %4839 }
 0x1d5   : > { %v5661_v32 = vpop.f32.mrf.mxu1  ;;  %v4843_v34 = vsel %vm4841_vm0, %v4838_v21, %v4840_v31  ;;  %v5497_v21 = vld [vmem:[%s6906_s3 + $0x64] sm:$0xf] }
 0x1d6   : > { %v6757_v37 = vpop.f32.mrf.mxu0  ;;  %5492 = vmatprep.subr.msk.bf16.mxu1 %vm351_vm2, %v4843_v34 }
 0x1d7   : > { %v6760_v38 = vpop.f32.mrf.mxu1  ;;  %4868 = vmatpush1.bf16.msra.mxu1 %v4848_v35  ;;  %v4903_v40 = vpop.permute.xlu1 %4902 }
 0x1d8   : > { %v6765_v42 = vpop.f32.mrf.mxu0  ;;  %v4901_v45 = vpop.permute.xlu0 %4900 }
 0x1d9   : > { %v5666_v46 = vpop.f32.mrf.mxu1  ;;  %v4905_v48 = vsel %vm4904_vm6, %v4899_v28, %v4901_v45  ;;  %v4906_v50 = vsel %vm4904_vm6, %v4901_v45, %v4903_v40  ;;  %v5500_v40 = vld [vmem:[%s6906_s3 + $0x68] sm:$0xf] }
 0x1da   : > { %v4911_v51 = vsel %vm351_vm2, %v4905_v48, 0  ;;  %v6768_v52 = vpop.f32.mrf.mxu0  ;;  %5493 = vmatmul.mubr.msk.bf16.vlgmr.msra.gmra.mxu1 %vm347_vm3, %v5491_v41  ;;  %5495 = vmatprep.subr.msk.bf16.mxu0 %vm351_vm2, %v4906_v50 }
 0x1db   : > { %v6772_v5 = vpop.f32.mrf.mxu1  ;;  %4931 = vmatpush1.bf16.msra.mxu0 %v4911_v51  ;;  %v4964_v55 = vpop.permute.xlu1 %4963  ;;  %5010 = vmatprep.mubr.bf16.mxu1 %v5812_v1 }
 0x1dc   : > { %v6778_v6 = vpop.f32.mrf.mxu0  ;;  %v4962_v4 = vpop.permute.xlu0 %4961 }
 0x1dd   : > { %v5667_v60 = vpop.f32.mrf.mxu1  ;;  %v4967_v2 = vsel %vm1550_vm13, %v4962_v4, %v4964_v55 }
 0x1de   : > { %v6780_v62 = vpop.f32.mrf.mxu0  ;;  %5496 = vmatmul.mubr.msk.bf16.vlgmr.msra.gmra.mxu0 %vm347_vm3, %v5494_v56  ;;  %v4973_v16 = vsel %vm351_vm2, %v4967_v2, 0 }
 0x1df   : > { %v6784_v3 = vpop.f32.mrf.mxu1  ;;  %v5024_v8 = vpop.permute.xlu1 %5023  ;;  %5072 = vmatprep.mubr.bf16.mxu0 %v5812_v1 }
 0x1e0   : > { %v6787_v9 = vpop.f32.mrf.mxu0  ;;  %v4966_v12 = vpop.permute.xlu0 %4965 }
 0x1e1   : > { %v5672_v13 = vpop.f32.mrf.mxu1  ;;  %v4968_v15 = vsel %vm1550_vm13, %v4964_v55, %v4966_v12  ;;  %v5503_v12 = vld [vmem:[%s6906_s3 + $0x6c] sm:$0xf] }
 0x1e2   : > { %v6791_v17 = vpop.f32.mrf.mxu0  ;;  %5498 = vmatprep.subr.msk.bf16.mxu1 %vm351_vm2, %v4968_v15 }
 0x1e3   : > { %v6794_v18 = vpop.f32.mrf.mxu1  ;;  %4993 = vmatpush1.bf16.msra.mxu1 %v4973_v16  ;;  %v5028_v19 = vpop.permute.xlu1 %5027 }
 0x1e4   : > { %v6799_v22 = vpop.f32.mrf.mxu0  ;;  %v5026_v24 = vpop.permute.xlu0 %5025 }
 0x1e5   : > { %v5673_v0 = vpop.f32.mrf.mxu1  ;;  %v5029_v26 = vsel %vm1672_vm14, %v5024_v8, %v5026_v24  ;;  %v5030_v28 = vsel %vm1672_vm14, %v5026_v24, %v5028_v19 }
 0x1e6   : > { %v5035_v31 = vsel %vm351_vm2, %v5029_v26, 0  ;;  %v6804_v32 = vpop.f32.mrf.mxu0  ;;  %5499 = vmatmul.mubr.msk.bf16.vlgmr.msra.gmra.mxu1 %vm347_vm3, %v5497_v21  ;;  %5501 = vmatprep.subr.msk.bf16.mxu0 %vm351_vm2, %v5030_v28 }
 0x1e7   : > { %v6808_v34 = vpop.f32.mrf.mxu1  ;;  %5055 = vmatpush1.bf16.msra.mxu0 %v5035_v31  ;;  %v5088_v35 = vpop.permute.xlu1 %5087  ;;  %5134 = vmatprep.mubr.bf16.mxu1 %v5812_v1 }
 0x1e8   : > { %v6814_v41 = vpop.f32.mrf.mxu0  ;;  %v5086_v45 = vpop.permute.xlu0 %5085 }
 0x1e9   : > { %v5678_v46 = vpop.f32.mrf.mxu1  ;;  %v5091_v50 = vsel %vm1794_vm15, %v5086_v45, %v5088_v35 }
 0x1ea   : > { %v6816_v48 = vpop.f32.mrf.mxu0  ;;  %5502 = vmatmul.mubr.msk.bf16.vlgmr.msra.gmra.mxu0 %vm347_vm3, %v5500_v40  ;;  %v5097_v1 = vsel %vm351_vm2, %v5091_v50, 0  ;;  %v2138_v40 = vadd.f32 %v6693_v43, %v6672_v25  ;;  %v2140_v46 = vadd.f32 %v6696_v44, %v6678_v27  ;;  %v2143_v27 = vadd.f32 %v6708_v54, %v6687_v36 }
 0x1eb   : > { %v6820_v51 = vpop.f32.mrf.mxu1 }
 0x1ec   : > { %v6822_v55 = vpop.f32.mrf.mxu0  ;;  %v5090_v56 = vpop.permute.xlu0 %5089 }
 0x1ed   : > { %v5679_v4 = vpop.f32.mrf.mxu1  ;;  %v5092_v60 = vsel %vm1794_vm15, %v5088_v35, %v5090_v56  ;;  %v2139_v56 = vadd.f32 %v6701_v47, %v6680_v29  ;;  %v2142_v47 = vadd.f32 %v6714_v57, %v6689_v39 }
 0x1ee   : > { %v2820_v2 = vpop.f32.mrf.mxu0  ;;  %5504 = vmatprep.subr.msk.bf16.mxu1 %vm351_vm2, %v5092_v60  ;;  %v2260_v4 = vadd.f32 %v6716_v59, %v2138_v40 }
 0x1ef   : > { %v2863_v8 = vpop.f32.mrf.mxu1  ;;  %5117 = vmatpush1.bf16.msra.mxu1 %v5097_v1  ;;  %v2262_v1 = vadd.f32 %v6719_v61, %v2140_v46  ;;  %v2261_v25 = vadd.f32 %v6722_v63, %v2139_v56  ;;  %v2265_v63 = vadd.f32 %v6728_v11, %v2143_v27  ;;  %v2264_v36 = vadd.f32 %v6733_v14, %v2142_v47 }
 0x1f0   : > { %v2822_v13 = vpop.f32.mrf.mxu0  ;;  %v2382_v43 = vadd.f32 %v6736_v58, %v2260_v4 }
 0x1f1   : > { %v5684_v15 = vpop.f32.mrf.mxu1  ;;  %v2384_v44 = vadd.f32 %v6740_v20, %v2262_v1  ;;  %v2383_v61 = vadd.f32 %v6746_v23, %v2261_v25  ;;  %v2386_v40 = vadd.f32 %v6754_v30, %v2264_v36 }
 0x1f2   : > { %v6830_v16 = vpop.f32.mrf.mxu0  ;;  %5505 = vmatmul.mubr.msk.bf16.vlgmr.msra.gmra.mxu1 %vm347_vm3, %v5503_v12  ;;  %v2141_v15 = vadd.f32 %v6704_v49, %v6684_v33  ;;  %v2504_v33 = vadd.f32 %v6757_v37, %v2382_v43 }
 0x1f3   : > { %v6833_v19 = vpop.f32.mrf.mxu1  ;;  %v2506_v58 = vadd.f32 %v6760_v38, %v2384_v44  ;;  %v2505_v20 = vadd.f32 %v6765_v42, %v2383_v61  ;;  %v2508_v56 = vadd.f32 %v6778_v6, %v2386_v40 }
 0x1f4   : > { %v6835_v21 = vpop.f32.mrf.mxu0  ;;  %v2263_v59 = vadd.f32 %v6725_v10, %v2141_v15  ;;  %v2626_v39 = vadd.f32 %v6780_v62, %v2504_v33  ;;  %v2387_v10 = vadd.f32 %v6751_v7, %v2265_v63 }
 0x1f5   : > { %v5685_v24 = vpop.f32.mrf.mxu1  ;;  %v2628_v23 = vadd.f32 %v6784_v3, %v2506_v58  ;;  %v2627_v38 = vadd.f32 %v6787_v9, %v2505_v20 }
 0x1f6   : > { %v2942_v0 = vpop.f32.mrf.mxu0  ;;  %v2385_v54 = vadd.f32 %v6748_v53, %v2263_v59  ;;  %v2748_v14 = vadd.f32 %v6804_v32, %v2626_v39  ;;  %v2509_v53 = vadd.f32 %v6772_v5, %v2387_v10  ;;  %v2630_v32 = vadd.f32 %v6799_v22, %v2508_v56 }
 0x1f7   : > { %v2985_v26 = vpop.f32.mrf.mxu1  ;;  %v2750_v42 = vadd.f32 %v6808_v34, %v2628_v23  ;;  %v2749_v3 = vadd.f32 %v6814_v41, %v2627_v38 }
 0x1f8   : > { %v2944_v28 = vpop.f32.mrf.mxu0  ;;  %v2507_v11 = vadd.f32 %v6768_v52, %v2385_v54  ;;  %v2870_v4 = vadd.f32 %v2820_v2, %v2748_v14  ;;  %v2631_v52 = vadd.f32 %v6794_v18, %v2509_v53  ;;  %v2752_v41 = vadd.f32 %v6822_v55, %v2630_v32 }
 0x1f9   : > { %v5690_v31 = vpop.f32.mrf.mxu1  ;;  %v2871_v1 = vadd.f32 %v2822_v13, %v2749_v3 }
 0x1fa   : > { %v6837_v35 = vpop.f32.mrf.mxu0  ;;  %v2629_v7 = vadd.f32 %v6791_v17, %v2507_v11  ;;  %v2992_v34 = vadd.f32 %v2942_v0, %v2870_v4  ;;  %v2753_v6 = vadd.f32 %v6820_v51, %v2631_v52 }
 0x1fb   : > { %v6841_v45 = vpop.f32.mrf.mxu1  ;;  %v2993_v43 = vadd.f32 %v2944_v28, %v2871_v1 }
 0x1fc   : > { %v6845_v50 = vpop.f32.mrf.mxu0  ;;  %v2751_v5 = vadd.f32 %v6816_v48, %v2629_v7  ;;  %v2875_v27 = vadd.f32 %v6833_v19, %v2753_v6  ;;  %v2874_v48 = vadd.f32 %v6835_v21, %v2752_v41 }
 0x1fd   : > { %v5691_v60 = vpop.f32.mrf.mxu1 }
 0x1fe   : > { %v3064_v12 = vpop.f32.mrf.mxu0  ;;  %v2872_v60 = vadd.f32 %v2863_v8, %v2750_v42  ;;  %v2873_v2 = vadd.f32 %v6830_v16, %v2751_v5  ;;  %v2997_v47 = vadd.f32 %v6841_v45, %v2875_v27  ;;  %v3369_v16 = vpop.permute.xlu1 %3368  ;;  %v2996_v28 = vadd.f32 %v6845_v50, %v2874_v48 }
 0x1ff   : > { %v3107_v24 = vpop.f32.mrf.mxu1  ;;  %v3114_v18 = vadd.f32 %v3064_v12, %v2992_v34  ;;  %v3374_v50 = vpop.permute.xlu0 %3373 }
 0x200   : > { %v3066_v29 = vpop.f32.mrf.mxu0  ;;  %v2994_v25 = vadd.f32 %v2985_v26, %v2872_v60  ;;  %v2995_v13 = vadd.f32 %v6837_v35, %v2873_v2 }
 0x201   : > { %v5696_v49 = vpop.f32.mrf.mxu1  ;;  %v3115_v0 = vadd.f32 %v3066_v29, %v2993_v43 }
 0x202   : > { %v3068_v31 = vpop.f32.mrf.mxu0  ;;  %v3116_v22 = vadd.f32 %v3107_v24, %v2994_v25 }
 0x203   : > { %v3110_v57 = vpop.f32.mrf.mxu1  ;;  %v3117_v12 = vadd.f32 %v3068_v31, %v2995_v13 }
 0x204   : > { %v3070_v37 = vpop.f32.mrf.mxu0  ;;  %v3119_v33 = vadd.f32 %v3110_v57, %v2997_v47 }
 0x205   : > { %v5697_v46 = vpop.f32.mrf.mxu1  ;;  %v3118_v35 = vadd.f32 %v3070_v37, %v2996_v28 }
 0x206   : > { %v3186_v62 = vpop.f32.mrf.mxu0 }
 0x207   : > { %v3229_v30 = vpop.f32.mrf.mxu1  ;;  %v3236_v51 = vadd.f32 %v3186_v62, %v3114_v18 }
 0x208   : > { %v3188_v9 = vpop.f32.mrf.mxu0  ;;  %v3238_v55 = vadd.f32 %v3229_v30, %v3116_v22 }
 0x209   : > { %v5702_v15 = vpop.f32.mrf.mxu1  ;;  %v3237_v61 = vadd.f32 %v3188_v9, %v3115_v0 }
 0x20a   : > { %v3190_v17 = vpop.f32.mrf.mxu0 }
 0x20b   : > { %v3232_v8 = vpop.f32.mrf.mxu1  ;;  %v3239_v29 = vadd.f32 %v3190_v17, %v3117_v12 }
 0x20c   : > { %v3192_v44 = vpop.f32.mrf.mxu0  ;;  %v3241_v36 = vadd.f32 %v3232_v8, %v3119_v33 }
 0x20d   : > { %v5703_v26 = vpop.f32.mrf.mxu1  ;;  %v3240_v31 = vadd.f32 %v3192_v44, %v3118_v35 }
 0x20e   : > { %v3308_v59 = vpop.f32.mrf.mxu0 }
 0x20f   : > { %v3358_v19 = vadd.f32 %v3308_v59, %v3236_v51  ;;  %v3351_v24 = vpop.f32.mrf.mxu1 }
 0x210   : > { %v3360_v49 = vadd.f32 %v3351_v24, %v3238_v55  ;;  %v3310_v21 = vpop.f32.mrf.mxu0 }
 0x211   : > { %v3376_v63 = vadd.f32 %v3369_v16, %v3358_v19  ;;  %v3359_v45 = vadd.f32 %v3310_v21, %v3237_v61  ;;  %v5708_v58 = vpop.f32.mrf.mxu1 }
 0x212   : > { %v3378_v54 = vadd.f32 %v3369_v16, %v3360_v49  ;;  %v3312_v20 = vpop.f32.mrf.mxu0 }
 0x213   : > { %3382 = vst [vmem:[%s306_s11] sm:$0xff] %v3376_v63  ;;  %v3377_v39 = vadd.f32 %v3369_v16, %v3359_v45  ;;  %v3361_v10 = vadd.f32 %v3312_v20, %v3239_v29  ;;  %v3354_v57 = vpop.f32.mrf.mxu1 }
 0x214   : > { %3384 = vst [vmem:[%s306_s11 + $0x10] sm:$0xff] %v3378_v54  ;;  %v3363_v23 = vadd.f32 %v3354_v57, %v3241_v36  ;;  %v3314_v40 = vpop.f32.mrf.mxu0 }
 0x215   : > { %3383 = vst [vmem:[%s306_s11 + $0x8] sm:$0xff] %v3377_v39  ;;  %v3362_v11 = vadd.f32 %v3314_v40, %v3240_v31  ;;  %v3379_v38 = vadd.f32 %v3374_v50, %v3361_v10  ;;  %v5709_v37 = vpop.f32.mrf.mxu1 }
 0x216   : > { %v3381_v14 = vadd.f32 %v3374_v50, %v3363_v23 }
 0x217   : > { %v3380_v46 = vadd.f32 %v3374_v50, %v3362_v11  ;;  %3385 = vst [vmem:[%s306_s11 + $0x18] sm:$0xff] %v3379_v38  ;;  %v3454_v53 = vpop.f32.mrf.mxu0  ;;  %v3509_v42 = vpop.f32.mrf.mxu1 }
 0x218   : > { %3387 = vst [vmem:[%s306_s11 + $0x28] sm:$0xff] %v3381_v14  ;;  %v3510_v62 = vadd.f32 %v3509_v42, %v3454_v53 }
 0x219   : > { %3386 = vst [vmem:[%s306_s11 + $0x20] sm:$0xff] %v3380_v46  ;;  %v3456_v56 = vpop.f32.mrf.mxu0  ;;  %v3511_v7 = vpop.f32.mrf.mxu1 }
 0x21a   : > { %v3512_v3 = vadd.f32 %v3511_v7, %v3456_v56 }
 0x21b   : > { %v3458_v4 = vpop.f32.mrf.mxu0  ;;  %v3513_v30 = vpop.f32.mrf.mxu1 }
 0x21d   : > { %v3459_v52 = vpop.f32.mrf.mxu0  ;;  %v3514_v60 = vpop.f32.mrf.mxu1 }
 0x21f   : > { %v3570_v9 = vpop.f32.mrf.mxu0 }
 0x220   : > { %v3577_v32 = vadd.f32 %v3570_v9, %v3510_v62 }
 0x221   : > { %v3572_v5 = vpop.f32.mrf.mxu0 }
 0x222   : > { %v3578_v1 = vadd.f32 %v3572_v5, %v3512_v3 }
 0x223   : > { %v3574_v34 = vpop.f32.mrf.mxu0  ;;  %v3633_v15 = vpop.f32.mrf.mxu1 }
 0x224   : > { %v3640_v6 = vadd.f32 %v3633_v15, %v3577_v32 }
 0x225   : > { %v3575_v25 = vpop.f32.mrf.mxu0  ;;  %v3635_v17 = vpop.f32.mrf.mxu1 }
 0x226   : > { %v3641_v41 = vadd.f32 %v3635_v17, %v3578_v1 }
 0x227   : > { %v3696_v2 = vpop.f32.mrf.mxu0  ;;  %v3637_v43 = vpop.f32.mrf.mxu1 }
 0x228   : > { %v3703_v18 = vadd.f32 %v3696_v2, %v3640_v6 }
 0x229   : > { %v3698_v8 = vpop.f32.mrf.mxu0  ;;  %v3638_v27 = vpop.f32.mrf.mxu1 }
 0x22a   : > { %v3704_v22 = vadd.f32 %v3698_v8, %v3641_v41 }
 0x22b   : > { %v3700_v44 = vpop.f32.mrf.mxu0 }
 0x22d   : > { %v3701_v48 = vpop.f32.mrf.mxu0 }
 0x22f   : > { %v3759_v13 = vpop.f32.mrf.mxu1 }
 0x230   : > { %v3766_v0 = vadd.f32 %v3759_v13, %v3703_v18 }
 0x231   : > { %v3761_v51 = vpop.f32.mrf.mxu1 }
 0x232   : > { %v3767_v26 = vadd.f32 %v3761_v51, %v3704_v22  ;;  %v3822_v47 = vpop.f32.mrf.mxu0 }
 0x233   : > { %v3829_v55 = vadd.f32 %v3822_v47, %v3766_v0  ;;  %v3763_v59 = vpop.f32.mrf.mxu1 }
 0x234   : > { %v3824_v16 = vpop.f32.mrf.mxu0 }
 0x235   : > { %v3830_v28 = vadd.f32 %v3824_v16, %v3767_v26  ;;  %v3764_v12 = vpop.f32.mrf.mxu1 }
 0x236   : > { %v3826_v61 = vpop.f32.mrf.mxu0 }
 0x238   : > { %v3827_v19 = vpop.f32.mrf.mxu0 }
 0x23b   : > { %v3885_v24 = vpop.f32.mrf.mxu1 }
 0x23c   : > { %v3892_v33 = vadd.f32 %v3885_v24, %v3829_v55 }
 0x23d   : > { %v3887_v49 = vpop.f32.mrf.mxu1 }
 0x23e   : > { %v3893_v21 = vadd.f32 %v3887_v49, %v3830_v28  ;;  %v3948_v35 = vpop.f32.mrf.mxu0 }
 0x23f   : > { %v3955_v29 = vadd.f32 %v3948_v35, %v3892_v33  ;;  %v3889_v63 = vpop.f32.mrf.mxu1 }
 0x240   : > { %v3950_v45 = vpop.f32.mrf.mxu0 }
 0x241   : > { %v3956_v58 = vadd.f32 %v3950_v45, %v3893_v21  ;;  %v3890_v36 = vpop.f32.mrf.mxu1 }
 0x242   : > { %v3952_v54 = vpop.f32.mrf.mxu0 }
 0x244   : > { %v3953_v20 = vpop.f32.mrf.mxu0 }
 0x246   : > { %v4010_v50 = vpop.f32.mrf.mxu1 }
 0x247   : > { %v4017_v31 = vadd.f32 %v4010_v50, %v3955_v29 }
 0x248   : > { %v4012_v39 = vpop.f32.mrf.mxu1 }
 0x249   : > { %v4018_v10 = vadd.f32 %v4012_v39, %v3956_v58 }
 0x24a   : > { %v4072_v57 = vpop.f32.mrf.mxu0  ;;  %v4014_v23 = vpop.f32.mrf.mxu1 }
 0x24b   : > { %v4079_v40 = vadd.f32 %v4072_v57, %v4017_v31 }
 0x24c   : > { %v4074_v11 = vpop.f32.mrf.mxu0  ;;  %v4015_v38 = vpop.f32.mrf.mxu1 }
 0x24d   : > { %v4080_v37 = vadd.f32 %v4074_v11, %v4018_v10 }
 0x24e   : > { %v4076_v14 = vpop.f32.mrf.mxu0 }
 0x250   : > { %v4077_v46 = vpop.f32.mrf.mxu0 }
 0x252   : > { %v4134_v53 = vpop.f32.mrf.mxu1 }
 0x253   : > { %v4141_v42 = vadd.f32 %v4134_v53, %v4079_v40 }
 0x254   : > { %v4136_v62 = vpop.f32.mrf.mxu1 }
 0x255   : > { %v4142_v56 = vadd.f32 %v4136_v62, %v4080_v37 }
 0x256   : > { %v4197_v7 = vpop.f32.mrf.mxu0  ;;  %v4138_v3 = vpop.f32.mrf.mxu1 }
 0x257   : > { %v4204_v35 = vadd.f32 %v4197_v7, %v4141_v42 }
 0x258   : > { %v4199_v4 = vpop.f32.mrf.mxu0  ;;  %v4139_v30 = vpop.f32.mrf.mxu1 }
 0x259   : > { %v4205_v36 = vadd.f32 %v4199_v4, %v4142_v56 }
 0x25a   : > { %v4201_v52 = vpop.f32.mrf.mxu0 }
 0x25c   : > { %v4202_v60 = vpop.f32.mrf.mxu0 }
 0x25e   : > { %v4260_v9 = vpop.f32.mrf.mxu1 }
 0x25f   : > { %v4267_v54 = vadd.f32 %v4260_v9, %v4204_v35 }
 0x260   : > { %v4262_v32 = vpop.f32.mrf.mxu1 }
 0x261   : > { %v4268_v31 = vadd.f32 %v4262_v32, %v4205_v36 }
 0x262   : > { %v4323_v5 = vpop.f32.mrf.mxu0  ;;  %v4264_v1 = vpop.f32.mrf.mxu1 }
 0x263   : > { %v4330_v39 = vadd.f32 %v4323_v5, %v4267_v54 }
 0x264   : > { %v4325_v34 = vpop.f32.mrf.mxu0  ;;  %v4265_v15 = vpop.f32.mrf.mxu1 }
 0x265   : > { %v4331_v57 = vadd.f32 %v4325_v34, %v4268_v31 }
 0x266   : > { %v4327_v6 = vpop.f32.mrf.mxu0 }
 0x268   : > { %v4328_v25 = vpop.f32.mrf.mxu0 }
 0x26a   : > { %v4386_v17 = vpop.f32.mrf.mxu1 }
 0x26b   : > { %v4393_v23 = vadd.f32 %v4386_v17, %v4330_v39 }
 0x26c   : > { %v4388_v41 = vpop.f32.mrf.mxu1 }
 0x26d   : > { %v4394_v11 = vadd.f32 %v4388_v41, %v4331_v57 }
 0x26e   : > { %v4449_v2 = vpop.f32.mrf.mxu0  ;;  %v4390_v43 = vpop.f32.mrf.mxu1 }
 0x26f   : > { %v4456_v38 = vadd.f32 %v4449_v2, %v4393_v23 }
 0x270   : > { %v4451_v18 = vpop.f32.mrf.mxu0  ;;  %v4391_v8 = vpop.f32.mrf.mxu1 }
 0x271   : > { %v4457_v46 = vadd.f32 %v4451_v18, %v4394_v11 }
 0x272   : > { %v4453_v27 = vpop.f32.mrf.mxu0 }
 0x274   : > { %v4454_v22 = vpop.f32.mrf.mxu0 }
 0x276   : > { %v4511_v44 = vpop.f32.mrf.mxu1 }
 0x277   : > { %v4518_v53 = vadd.f32 %v4511_v44, %v4456_v38 }
 0x278   : > { %v4513_v48 = vpop.f32.mrf.mxu1 }
 0x279   : > { %v4519_v7 = vadd.f32 %v4513_v48, %v4457_v46 }
 0x27a   : > { %v4573_v13 = vpop.f32.mrf.mxu0  ;;  %v4515_v0 = vpop.f32.mrf.mxu1 }
 0x27b   : > { %v4580_v3 = vadd.f32 %v4573_v13, %v4518_v53 }
 0x27c   : > { %v4575_v51 = vpop.f32.mrf.mxu0  ;;  %v4516_v26 = vpop.f32.mrf.mxu1 }
 0x27d   : > { %v4581_v4 = vadd.f32 %v4575_v51, %v4519_v7 }
 0x27e   : > { %v4577_v47 = vpop.f32.mrf.mxu0 }
 0x280   : > { %v4578_v55 = vpop.f32.mrf.mxu0 }
 0x282   : > { %v4635_v59 = vpop.f32.mrf.mxu1 }
 0x283   : > { %v4642_v30 = vadd.f32 %v4635_v59, %v4580_v3  ;;  %v5149_v59 = vpop.permute.xlu1 %5148 }
 0x284   : > { %v4637_v16 = vpop.f32.mrf.mxu1 }
 0x285   : > { %v4643_v60 = vadd.f32 %v4637_v16, %v4581_v4 }
 0x286   : > { %v4698_v28 = vpop.f32.mrf.mxu0  ;;  %v4639_v12 = vpop.f32.mrf.mxu1 }
 0x287   : > { %v4705_v9 = vadd.f32 %v4698_v28, %v4642_v30 }
 0x288   : > { %v4700_v61 = vpop.f32.mrf.mxu0  ;;  %v4640_v19 = vpop.f32.mrf.mxu1 }
 0x289   : > { %v4706_v5 = vadd.f32 %v4700_v61, %v4643_v60 }
 0x28a   : > { %v4702_v24 = vpop.f32.mrf.mxu0 }
 0x28c   : > { %v4703_v33 = vpop.f32.mrf.mxu0 }
 0x28e   : > { %v4761_v49 = vpop.f32.mrf.mxu1 }
 0x28f   : > { %v4768_v1 = vadd.f32 %v4761_v49, %v4705_v9 }
 0x290   : > { %v4763_v21 = vpop.f32.mrf.mxu1 }
 0x291   : > { %v4769_v15 = vadd.f32 %v4763_v21, %v4706_v5 }
 0x292   : > { %v4824_v29 = vpop.f32.mrf.mxu0  ;;  %v4765_v63 = vpop.f32.mrf.mxu1 }
 0x293   : > { %v4831_v6 = vadd.f32 %v4824_v29, %v4768_v1 }
 0x294   : > { %v4826_v45 = vpop.f32.mrf.mxu0  ;;  %v4766_v58 = vpop.f32.mrf.mxu1 }
 0x295   : > { %v4832_v41 = vadd.f32 %v4826_v45, %v4769_v15 }
 0x296   : > { %v4828_v20 = vpop.f32.mrf.mxu0 }
 0x298   : > { %v4829_v50 = vpop.f32.mrf.mxu0 }
 0x29a   : > { %v4887_v10 = vpop.f32.mrf.mxu1 }
 0x29b   : > { %v4894_v2 = vadd.f32 %v4887_v10, %v4831_v6 }
 0x29c   : > { %v4889_v40 = vpop.f32.mrf.mxu1 }
 0x29d   : > { %v4895_v8 = vadd.f32 %v4889_v40, %v4832_v41 }
 0x29e   : > { %v4950_v37 = vpop.f32.mrf.mxu0  ;;  %v4891_v14 = vpop.f32.mrf.mxu1 }
 0x29f   : > { %v4957_v27 = vadd.f32 %v4950_v37, %v4894_v2 }
 0x2a0   : > { %v4952_v42 = vpop.f32.mrf.mxu0  ;;  %v4892_v62 = vpop.f32.mrf.mxu1 }
 0x2a1   : > { %v4958_v44 = vadd.f32 %v4952_v42, %v4895_v8 }
 0x2a2   : > { %v4954_v56 = vpop.f32.mrf.mxu0 }
 0x2a4   : > { %v4955_v52 = vpop.f32.mrf.mxu0 }
 0x2a6   : > { %v5012_v32 = vpop.f32.mrf.mxu1 }
 0x2a7   : > { %v5019_v48 = vadd.f32 %v5012_v32, %v4957_v27 }
 0x2a8   : > { %v5014_v34 = vpop.f32.mrf.mxu1 }
 0x2a9   : > { %v5020_v0 = vadd.f32 %v5014_v34, %v4958_v44 }
 0x2aa   : > { %v5074_v25 = vpop.f32.mrf.mxu0  ;;  %v5016_v17 = vpop.f32.mrf.mxu1 }
 0x2ab   : > { %v5081_v51 = vadd.f32 %v5074_v25, %v5019_v48 }
 0x2ac   : > { %v5076_v43 = vpop.f32.mrf.mxu0  ;;  %v5017_v18 = vpop.f32.mrf.mxu1 }
 0x2ad   : > { %v5082_v47 = vadd.f32 %v5076_v43, %v5020_v0 }
 0x2ae   : > { %v5078_v22 = vpop.f32.mrf.mxu0 }
 0x2b0   : > { %v5079_v13 = vpop.f32.mrf.mxu0 }
 0x2b2   : > { %v5136_v26 = vpop.f32.mrf.mxu1 }
 0x2b3   : > { %v5143_v55 = vadd.f32 %v5136_v26, %v5081_v51 }
 0x2b4   : > { %v5138_v16 = vpop.f32.mrf.mxu1 }
 0x2b5   : > { %v5151_v28 = vadd.f32 %v5149_v59, %v5143_v55  ;;  %v5144_v12 = vadd.f32 %v5138_v16, %v5082_v47 }
 0x2b6   : > { %v5140_v61 = vpop.f32.mrf.mxu1 }
 0x2b7   : > { %5153 = vst [vmem:[%s311_s14] sm:$0xff] %v5151_v28  ;;  %v5152_v19 = vadd.f32 %v5149_v59, %v5144_v12 }
 0x2b8   : > { %v5141_v24 = vpop.f32.mrf.mxu1 }
 0x2b9   : > { %5154 = vst [vmem:[%s311_s14 + $0x8] sm:$0xff] %v5152_v19 }
 0x2ba PF: > { %s18_s24 = sadd.s32 1, %s5809_s24  }
 0x2bb   : > { %p15_p4 = scmp.ge.s32.totalorder %s18_s24, 4  }
 0x2bd   :  { %17 = sbr.rel (!%p15_p4) target bundleno = 1 (0x1), region = 140 }

</bundles_post_ra>
